<compile_context>
chip_gen: v7x
topology: tpu7x:2x2x1
jax: 0.10.0
libtpu: 0.0.40
codegen_flags: <defaults>
</compile_context>

<pallas_src>
import math

import jax
import jax.numpy as jnp
from jax import lax
from jax.experimental import pallas as pl
from jax.experimental.pallas import tpu as pltpu

# Small stand-ins for (512, 8, 2048, 6, 100) in the reference module.
D_MODEL = 64
N_HEADS = 8
D_K = D_MODEL // N_HEADS
FF_UNITS = 128
N_LAYERS = 2
MAX_LEN = 16
LN_EPS = 1e-5

PE_SCALE = math.sqrt(float(D_MODEL))
INV_SQRT_DK = 1.0 / math.sqrt(float(D_K))

_PARAM_ORDER = (
    "wq", "bq", "wk", "bk", "wv", "bv", "wo", "bo",
    "w1", "b1", "w2", "b2",
    "n1_g", "n1_b", "n2_g", "n2_b", "norm_g", "norm_b",
)


# ----------------------------- fused kernel -----------------------------

def _encoder_kernel(x_ref, pe_ref,
                    wq_ref, bq_ref, wk_ref, bk_ref, wv_ref, bv_ref,
                    wo_ref, bo_ref, w1_ref, b1_ref, w2_ref, b2_ref,
                    n1g_ref, n1b_ref, n2g_ref, n2b_ref, ng_ref, nb_ref,
                    o_ref):
    # One grid step == one batch element; x_ref block is (1, S, D).
    S, D = x_ref.shape[1], x_ref.shape[2]

    def _ln(x, g, b):
        mean = jnp.mean(x, axis=-1, keepdims=True)
        var = jnp.mean(x * x, axis=-1, keepdims=True) - mean * mean
        return (x - mean) * lax.rsqrt(var + LN_EPS) * g + b

    # Positional encoding fused in (scale then add).
    h = x_ref[0] * PE_SCALE + pe_ref[...]                          # (S, D)

    # TODO(synk): optional attention mask (masked_fill with -1e9) not wired up;
    # module is exercised with mask=None.  Dropouts are identity (inference).
    for _ in range(N_LAYERS):      # layers share weights (deepcopy); unrolled
        # --- pre-LN self attention (normed query is also the K/V source) ---
        nq = _ln(h, n1g_ref[...], n1b_ref[...])                    # (S, D)
        nq_h = jnp.broadcast_to(nq, (N_HEADS, S, D))               # head batch dim

        # Head-batched projections: (H,S,D) x (H,D,dk) -> (H,S,dk)
        q = jnp.einsum('hsd,hdk->hsk', nq_h, wq_ref[...],
                       preferred_element_type=jnp.float32) + bq_ref[...]
        k = jnp.einsum('hsd,hdk->hsk', nq_h, wk_ref[...],
                       preferred_element_type=jnp.float32) + bk_ref[...]
        v = jnp.einsum('hsd,hdk->hsk', nq_h, wv_ref[...],
                       preferred_element_type=jnp.float32) + bv_ref[...]

        # q @ k^T per head without materializing a transpose.
        scores = jnp.einsum('hsk,htk->hst', q, k,
                            preferred_element_type=jnp.float32) * INV_SQRT_DK
        m = jnp.max(scores, axis=-1, keepdims=True)
        p = jnp.exp(scores - m)
        denom = jnp.sum(p, axis=-1, keepdims=True)
        alphas = p * pl.reciprocal(denom, approx=True)             # (H, S, S)

        ctx = jnp.einsum('hst,htk->hsk', alphas, v,
                         preferred_element_type=jnp.float32)       # (H, S, dk)
        # Head merge + output projection, then reduce over heads (cheap
        # leading-dim sum; avoids an (S,H,dk)->(S,D) relayout).
        states = jnp.einsum('hsk,hkd->hsd', ctx, wo_ref[...],
                            preferred_element_type=jnp.float32)    # (H, S, D)
        att = h + jnp.sum(states, axis=0) + bo_ref[...]            # residual (drop1=id)

        # --- position-wise FFN ---
        natt = _ln(att, n2g_ref[...], n2b_ref[...])
        ff = jnp.maximum(
            jnp.dot(natt, w1_ref[...], preferred_element_type=jnp.float32)
            + b1_ref[...], 0.0)
        h = att + jnp.dot(ff, w2_ref[...],
                          preferred_element_type=jnp.float32) + b2_ref[...]  # drop2=id

    # final LayerNorm of the encoder stack
    o_ref[0] = _ln(h, ng_ref[...], nb_ref[...]).astype(o_ref.dtype)


# ----------------------------- wrapper -----------------------------

def encoder_transformer(x, params):
    B, S, D = x.shape
    pe = params["pe"][:S]                                           # (S, D), once per call
    weights = [params[k] for k in _PARAM_ORDER]

    def const_spec(a):
        nd = a.ndim
        return pl.BlockSpec(a.shape, lambda b, _nd=nd: (0,) * _nd)  # resident in VMEM

    in_specs = ([pl.BlockSpec((1, S, D), lambda b: (b, 0, 0)),
                 const_spec(pe)]
                + [const_spec(w) for w in weights])

    return pl.pallas_call(
        _encoder_kernel,
        out_shape=jax.ShapeDtypeStruct((B, S, D), x.dtype),
        grid=(B,),
        in_specs=in_specs,
        out_specs=pl.BlockSpec((1, S, D), lambda b: (b, 0, 0)),
        compiler_params=pltpu.CompilerParams(
            dimension_semantics=("parallel",)),                     # megacore-friendly
    )(x, pe, *weights)


# ----------------------------- parameters -----------------------------

def _init_linear(key, in_f, out_f):
    # PyTorch nn.Linear default init, (out, in) layout.
    k1, k2 = jax.random.split(key)
    bound = 1.0 / math.sqrt(in_f)
    w = jax.random.uniform(k1, (out_f, in_f), jnp.float32, -bound, bound)
    b = jax.random.uniform(k2, (out_f,), jnp.float32, -bound, bound)
    return w, b


def init_params(key):
    ks = jax.random.split(key, 6)
    wq, bq = _init_linear(ks[0], D_MODEL, D_MODEL)
    wk, bk = _init_linear(ks[1], D_MODEL, D_MODEL)
    wv, bv = _init_linear(ks[2], D_MODEL, D_MODEL)
    wo, bo = _init_linear(ks[3], D_MODEL, D_MODEL)
    w1, b1 = _init_linear(ks[4], D_MODEL, FF_UNITS)
    w2, b2 = _init_linear(ks[5], FF_UNITS, D_MODEL)

    # Pre-arrange once at init into the layouts the kernel wants:
    #   QKV: (H, D, d_k) head-major (y_h = x @ Wq[h]), biases (H, 1, d_k)
    #   Wout: (H, d_k, D) so the head merge is a batched (S,dk)x(dk,D) dot
    #   FFN:  (in, out), biases (1, out)
    def qkv_layout(w):
        return w.T.reshape(D_MODEL, N_HEADS, D_K).transpose(1, 0, 2)

    params = dict(
        wq=qkv_layout(wq), bq=bq.reshape(N_HEADS, 1, D_K),
        wk=qkv_layout(wk), bk=bk.reshape(N_HEADS, 1, D_K),
        wv=qkv_layout(wv), bv=bv.reshape(N_HEADS, 1, D_K),
        wo=wo.T.reshape(N_HEADS, D_K, D_MODEL), bo=bo.reshape(1, D_MODEL),
        w1=w1.T, b1=b1.reshape(1, FF_UNITS),
        w2=w2.T, b2=b2.reshape(1, D_MODEL),
        n1_g=jnp.ones((1, D_MODEL), jnp.float32),
        n1_b=jnp.zeros((1, D_MODEL), jnp.float32),
        n2_g=jnp.ones((1, D_MODEL), jnp.float32),
        n2_b=jnp.zeros((1, D_MODEL), jnp.float32),
        norm_g=jnp.ones((1, D_MODEL), jnp.float32),
        norm_b=jnp.zeros((1, D_MODEL), jnp.float32),
    )

    # sinusoidal positional encoding buffer
    position = jnp.arange(MAX_LEN, dtype=jnp.float32)[:, None]
    angular = jnp.exp(jnp.arange(0, D_MODEL, 2, dtype=jnp.float32)
                      * (-math.log(10000.0) / D_MODEL))
    pe = jnp.zeros((MAX_LEN, D_MODEL), jnp.float32)
    pe = pe.at[:, 0::2].set(jnp.sin(position * angular))
    pe = pe.at[:, 1::2].set(jnp.cos(position * angular))
    params["pe"] = pe
    return params


# ----------------------------- pure-JAX reference -----------------------------

def _ref_ln(x, g, b):
    m = jnp.mean(x, -1, keepdims=True)
    v = jnp.mean((x - m) ** 2, -1, keepdims=True)
    return (x - m) / jnp.sqrt(v + LN_EPS) * g + b


def reference_forward(x, p):
    B, S, D = x.shape
    h = x * PE_SCALE + p["pe"][:S][None]
    for _ in range(N_LAYERS):
        nq = _ref_ln(h, p["n1_g"], p["n1_b"])
        q = jnp.einsum("bsd,hdk->bhsk", nq, p["wq"]) + p["bq"][None]
        k = jnp.einsum("bsd,hdk->bhsk", nq, p["wk"]) + p["bk"][None]
        v = jnp.einsum("bsd,hdk->bhsk", nq, p["wv"]) + p["bv"][None]
        scores = jnp.einsum("bhsk,bhtk->bhst", q, k) * INV_SQRT_DK
        alphas = jax.nn.softmax(scores, axis=-1)
        ctx = jnp.einsum("bhst,bhtk->bhsk", alphas, v)
        states = jnp.einsum("bhsk,hkf->bsf", ctx, p["wo"]) + p["bo"]
        att = h + states
        natt = _ref_ln(att, p["n2_g"], p["n2_b"])
        ff = jnp.maximum(natt @ p["w1"] + p["b1"], 0.0) @ p["w2"] + p["b2"]
        h = att + ff
    return _ref_ln(h, p["norm_g"], p["norm_b"])


# ----------------------------- main -----------------------------

if __name__ == "__main__":
    key = jax.random.PRNGKey(0)
    kx, kp = jax.random.split(key)
    batch, seq = 2, 8
    x = jax.random.normal(kx, (batch, seq, D_MODEL), jnp.float32)
    params = init_params(kp)

    out = jax.block_until_ready(encoder_transformer(x, params))

    ref = reference_forward(x, params)
    assert out.shape == (batch, seq, D_MODEL)
    assert jnp.allclose(out, ref, atol=2e-2, rtol=2e-2), "mismatch vs reference"
    print("KERNEL_OK")
</pallas_src>

<mosaic_0001>
module attributes {stable_mosaic.version = 11 : i64} {
  func.func @_encoder_kernel(%arg0: i32, %arg1: memref<1x8x64xf32, #tpu.memory_space<vmem>>, %arg2: memref<8x64xf32, #tpu.memory_space<vmem>>, %arg3: memref<8x64x8xf32, #tpu.memory_space<vmem>>, %arg4: memref<8x1x8xf32, #tpu.memory_space<vmem>>, %arg5: memref<8x64x8xf32, #tpu.memory_space<vmem>>, %arg6: memref<8x1x8xf32, #tpu.memory_space<vmem>>, %arg7: memref<8x64x8xf32, #tpu.memory_space<vmem>>, %arg8: memref<8x1x8xf32, #tpu.memory_space<vmem>>, %arg9: memref<8x8x64xf32, #tpu.memory_space<vmem>>, %arg10: memref<1x64xf32, #tpu.memory_space<vmem>>, %arg11: memref<64x128xf32, #tpu.memory_space<vmem>>, %arg12: memref<1x128xf32, #tpu.memory_space<vmem>>, %arg13: memref<128x64xf32, #tpu.memory_space<vmem>>, %arg14: memref<1x64xf32, #tpu.memory_space<vmem>>, %arg15: memref<1x64xf32, #tpu.memory_space<vmem>>, %arg16: memref<1x64xf32, #tpu.memory_space<vmem>>, %arg17: memref<1x64xf32, #tpu.memory_space<vmem>>, %arg18: memref<1x64xf32, #tpu.memory_space<vmem>>, %arg19: memref<1x64xf32, #tpu.memory_space<vmem>>, %arg20: memref<1x64xf32, #tpu.memory_space<vmem>>, %arg21: memref<1x8x64xf32, #tpu.memory_space<vmem>>) attributes {dimension_semantics = [#tpu.dimension_semantics<parallel>], iteration_bounds = array<i64: 2>, scalar_prefetch = 0 : i64, scratch_operands = 0 : i64, tpu.core_type = #tpu.core_type<tc>, window_params = [{transform_indices = @transform_0, window_bounds = array<i64: 1, 8, 64>}, {pipeline_mode = #tpu.pipeline_mode<synchronous>, transform_indices = @transform_1, window_bounds = array<i64: 8, 64>}, {pipeline_mode = #tpu.pipeline_mode<synchronous>, transform_indices = @transform_2, window_bounds = array<i64: 8, 64, 8>}, {pipeline_mode = #tpu.pipeline_mode<synchronous>, transform_indices = @transform_3, window_bounds = array<i64: 8, 1, 8>}, {pipeline_mode = #tpu.pipeline_mode<synchronous>, transform_indices = @transform_4, window_bounds = array<i64: 8, 64, 8>}, {pipeline_mode = #tpu.pipeline_mode<synchronous>, transform_indices = @transform_5, window_bounds = array<i64: 8, 1, 8>}, {pipeline_mode = #tpu.pipeline_mode<synchronous>, transform_indices = @transform_6, window_bounds = array<i64: 8, 64, 8>}, {pipeline_mode = #tpu.pipeline_mode<synchronous>, transform_indices = @transform_7, window_bounds = array<i64: 8, 1, 8>}, {pipeline_mode = #tpu.pipeline_mode<synchronous>, transform_indices = @transform_8, window_bounds = array<i64: 8, 8, 64>}, {pipeline_mode = #tpu.pipeline_mode<synchronous>, transform_indices = @transform_9, window_bounds = array<i64: 1, 64>}, {pipeline_mode = #tpu.pipeline_mode<synchronous>, transform_indices = @transform_10, window_bounds = array<i64: 64, 128>}, {pipeline_mode = #tpu.pipeline_mode<synchronous>, transform_indices = @transform_11, window_bounds = array<i64: 1, 128>}, {pipeline_mode = #tpu.pipeline_mode<synchronous>, transform_indices = @transform_12, window_bounds = array<i64: 128, 64>}, {pipeline_mode = #tpu.pipeline_mode<synchronous>, transform_indices = @transform_13, window_bounds = array<i64: 1, 64>}, {pipeline_mode = #tpu.pipeline_mode<synchronous>, transform_indices = @transform_14, window_bounds = array<i64: 1, 64>}, {pipeline_mode = #tpu.pipeline_mode<synchronous>, transform_indices = @transform_15, window_bounds = array<i64: 1, 64>}, {pipeline_mode = #tpu.pipeline_mode<synchronous>, transform_indices = @transform_16, window_bounds = array<i64: 1, 64>}, {pipeline_mode = #tpu.pipeline_mode<synchronous>, transform_indices = @transform_17, window_bounds = array<i64: 1, 64>}, {pipeline_mode = #tpu.pipeline_mode<synchronous>, transform_indices = @transform_18, window_bounds = array<i64: 1, 64>}, {pipeline_mode = #tpu.pipeline_mode<synchronous>, transform_indices = @transform_19, window_bounds = array<i64: 1, 64>}, {transform_indices = @transform_20, window_bounds = array<i64: 1, 8, 64>}]} {
    %c0 = arith.constant 0 : index
    %c0_0 = arith.constant 0 : index
    %c0_1 = arith.constant 0 : index
    %0 = vector.load %arg1[%c0, %c0_0, %c0_1] : memref<1x8x64xf32, #tpu.memory_space<vmem>>, vector<1x8x64xf32>
    %1 = vector.shape_cast %0 : vector<1x8x64xf32> to vector<8x64xf32>
    %cst = arith.constant 8.000000e+00 : f32
    %2 = vector.broadcast %cst : f32 to vector<8x64xf32>
    %3 = arith.mulf %1, %2 : vector<8x64xf32>
    %c0_2 = arith.constant 0 : index
    %c0_3 = arith.constant 0 : index
    %4 = vector.load %arg2[%c0_2, %c0_3] : memref<8x64xf32, #tpu.memory_space<vmem>>, vector<8x64xf32>
    %5 = arith.addf %3, %4 : vector<8x64xf32>
    %c0_4 = arith.constant 0 : index
    %c0_5 = arith.constant 0 : index
    %6 = vector.load %arg15[%c0_4, %c0_5] : memref<1x64xf32, #tpu.memory_space<vmem>>, vector<1x64xf32>
    %c0_6 = arith.constant 0 : index
    %c0_7 = arith.constant 0 : index
    %7 = vector.load %arg16[%c0_6, %c0_7] : memref<1x64xf32, #tpu.memory_space<vmem>>, vector<1x64xf32>
    %cst_8 = arith.constant dense<0.000000e+00> : vector<8xf32>
    %8 = vector.multi_reduction <add>, %5, %cst_8 [1] : vector<8x64xf32> to vector<8xf32>
    %9 = vector.shape_cast %8 : vector<8xf32> to vector<8x1xf32>
    %cst_9 = arith.constant 6.400000e+01 : f32
    %10 = vector.broadcast %cst_9 : f32 to vector<8x1xf32>
    %11 = arith.divf %9, %10 : vector<8x1xf32>
    %12 = arith.mulf %5, %5 : vector<8x64xf32>
    %cst_10 = arith.constant dense<0.000000e+00> : vector<8xf32>
    %13 = vector.multi_reduction <add>, %12, %cst_10 [1] : vector<8x64xf32> to vector<8xf32>
    %14 = vector.shape_cast %13 : vector<8xf32> to vector<8x1xf32>
    %cst_11 = arith.constant 6.400000e+01 : f32
    %15 = vector.broadcast %cst_11 : f32 to vector<8x1xf32>
    %16 = arith.divf %14, %15 : vector<8x1xf32>
    %17 = arith.mulf %11, %11 : vector<8x1xf32>
    %18 = arith.subf %16, %17 : vector<8x1xf32>
    %19 = vector.broadcast %11 : vector<8x1xf32> to vector<8x64xf32>
    %20 = arith.subf %5, %19 : vector<8x64xf32>
    %cst_12 = arith.constant 9.99999974E-6 : f32
    %21 = vector.broadcast %cst_12 : f32 to vector<8x1xf32>
    %22 = arith.addf %18, %21 : vector<8x1xf32>
    %23 = math.rsqrt %22 : vector<8x1xf32>
    %24 = vector.broadcast %23 : vector<8x1xf32> to vector<8x64xf32>
    %25 = arith.mulf %20, %24 : vector<8x64xf32>
    %26 = vector.broadcast %6 : vector<1x64xf32> to vector<8x64xf32>
    %27 = arith.mulf %25, %26 : vector<8x64xf32>
    %28 = vector.broadcast %7 : vector<1x64xf32> to vector<8x64xf32>
    %29 = arith.addf %27, %28 : vector<8x64xf32>
    %30 = vector.shape_cast %29 : vector<8x64xf32> to vector<1x8x64xf32>
    %31 = vector.broadcast %30 : vector<1x8x64xf32> to vector<8x8x64xf32>
    %c0_13 = arith.constant 0 : index
    %c0_14 = arith.constant 0 : index
    %c0_15 = arith.constant 0 : index
    %32 = vector.load %arg3[%c0_13, %c0_14, %c0_15] : memref<8x64x8xf32, #tpu.memory_space<vmem>>, vector<8x64x8xf32>
    "tpu.trace_start"() <{level = 10 : i32, message = "hsd,hdk->hsk"}> : () -> ()
    %cst_16 = arith.constant dense<0.000000e+00> : vector<8x8x8xf32>
    %33 = tpu.matmul %31, %32, %cst_16 {dimension_numbers = #tpu.dot_dimension_numbers<[2], [1], [1], [2], [0, 0, 0, 1, 1, 2], [0], [0]>} : vector<8x8x64xf32>, vector<8x64x8xf32>, vector<8x8x8xf32> -> vector<8x8x8xf32>
    "tpu.trace_stop"() : () -> ()
    %c0_17 = arith.constant 0 : index
    %c0_18 = arith.constant 0 : index
    %c0_19 = arith.constant 0 : index
    %34 = vector.load %arg4[%c0_17, %c0_18, %c0_19] : memref<8x1x8xf32, #tpu.memory_space<vmem>>, vector<8x1x8xf32>
    %35 = vector.broadcast %34 : vector<8x1x8xf32> to vector<8x8x8xf32>
    %36 = arith.addf %33, %35 : vector<8x8x8xf32>
    %c0_20 = arith.constant 0 : index
    %c0_21 = arith.constant 0 : index
    %c0_22 = arith.constant 0 : index
    %37 = vector.load %arg5[%c0_20, %c0_21, %c0_22] : memref<8x64x8xf32, #tpu.memory_space<vmem>>, vector<8x64x8xf32>
    "tpu.trace_start"() <{level = 10 : i32, message = "hsd,hdk->hsk"}> : () -> ()
    %cst_23 = arith.constant dense<0.000000e+00> : vector<8x8x8xf32>
    %38 = tpu.matmul %31, %37, %cst_23 {dimension_numbers = #tpu.dot_dimension_numbers<[2], [1], [1], [2], [0, 0, 0, 1, 1, 2], [0], [0]>} : vector<8x8x64xf32>, vector<8x64x8xf32>, vector<8x8x8xf32> -> vector<8x8x8xf32>
    "tpu.trace_stop"() : () -> ()
    %c0_24 = arith.constant 0 : index
    %c0_25 = arith.constant 0 : index
    %c0_26 = arith.constant 0 : index
    %39 = vector.load %arg6[%c0_24, %c0_25, %c0_26] : memref<8x1x8xf32, #tpu.memory_space<vmem>>, vector<8x1x8xf32>
    %40 = vector.broadcast %39 : vector<8x1x8xf32> to vector<8x8x8xf32>
    %41 = arith.addf %38, %40 : vector<8x8x8xf32>
    %c0_27 = arith.constant 0 : index
    %c0_28 = arith.constant 0 : index
    %c0_29 = arith.constant 0 : index
    %42 = vector.load %arg7[%c0_27, %c0_28, %c0_29] : memref<8x64x8xf32, #tpu.memory_space<vmem>>, vector<8x64x8xf32>
    "tpu.trace_start"() <{level = 10 : i32, message = "hsd,hdk->hsk"}> : () -> ()
    %cst_30 = arith.constant dense<0.000000e+00> : vector<8x8x8xf32>
    %43 = tpu.matmul %31, %42, %cst_30 {dimension_numbers = #tpu.dot_dimension_numbers<[2], [1], [1], [2], [0, 0, 0, 1, 1, 2], [0], [0]>} : vector<8x8x64xf32>, vector<8x64x8xf32>, vector<8x8x8xf32> -> vector<8x8x8xf32>
    "tpu.trace_stop"() : () -> ()
    %c0_31 = arith.constant 0 : index
    %c0_32 = arith.constant 0 : index
    %c0_33 = arith.constant 0 : index
    %44 = vector.load %arg8[%c0_31, %c0_32, %c0_33] : memref<8x1x8xf32, #tpu.memory_space<vmem>>, vector<8x1x8xf32>
    %45 = vector.broadcast %44 : vector<8x1x8xf32> to vector<8x8x8xf32>
    %46 = arith.addf %43, %45 : vector<8x8x8xf32>
    "tpu.trace_start"() <{level = 10 : i32, message = "hsk,htk->hst"}> : () -> ()
    %cst_34 = arith.constant dense<0.000000e+00> : vector<8x8x8xf32>
    %47 = tpu.matmul %36, %41, %cst_34 {dimension_numbers = #tpu.dot_dimension_numbers<[2], [2], [1], [1], [0, 0, 0, 1, 1, 1], [0], [0]>} : vector<8x8x8xf32>, vector<8x8x8xf32>, vector<8x8x8xf32> -> vector<8x8x8xf32>
    "tpu.trace_stop"() : () -> ()
    %cst_35 = arith.constant 0.353553385 : f32
    %48 = vector.broadcast %cst_35 : f32 to vector<8x8x8xf32>
    %49 = arith.mulf %47, %48 : vector<8x8x8xf32>
    %cst_36 = arith.constant dense<0xFF800000> : vector<8x8xf32>
    %50 = vector.multi_reduction <maximumf>, %49, %cst_36 [2] : vector<8x8x8xf32> to vector<8x8xf32>
    %51 = vector.shape_cast %50 : vector<8x8xf32> to vector<8x8x1xf32>
    %52 = vector.broadcast %51 : vector<8x8x1xf32> to vector<8x8x8xf32>
    %53 = arith.subf %49, %52 : vector<8x8x8xf32>
    %54 = math.exp %53 : vector<8x8x8xf32>
    %cst_37 = arith.constant dense<0.000000e+00> : vector<8x8xf32>
    %55 = vector.multi_reduction <add>, %54, %cst_37 [2] : vector<8x8x8xf32> to vector<8x8xf32>
    %56 = vector.shape_cast %55 : vector<8x8xf32> to vector<8x8x1xf32>
    %57 = tpu.reciprocal %56 {approx = true} : vector<8x8x1xf32> -> vector<8x8x1xf32>
    %58 = vector.broadcast %57 : vector<8x8x1xf32> to vector<8x8x8xf32>
    %59 = arith.mulf %54, %58 : vector<8x8x8xf32>
    "tpu.trace_start"() <{level = 10 : i32, message = "hst,htk->hsk"}> : () -> ()
    %cst_38 = arith.constant dense<0.000000e+00> : vector<8x8x8xf32>
    %60 = tpu.matmul %59, %46, %cst_38 {dimension_numbers = #tpu.dot_dimension_numbers<[2], [1], [1], [2], [0, 0, 0, 1, 1, 2], [0], [0]>} : vector<8x8x8xf32>, vector<8x8x8xf32>, vector<8x8x8xf32> -> vector<8x8x8xf32>
    "tpu.trace_stop"() : () -> ()
    %c0_39 = arith.constant 0 : index
    %c0_40 = arith.constant 0 : index
    %c0_41 = arith.constant 0 : index
    %61 = vector.load %arg9[%c0_39, %c0_40, %c0_41] : memref<8x8x64xf32, #tpu.memory_space<vmem>>, vector<8x8x64xf32>
    "tpu.trace_start"() <{level = 10 : i32, message = "hsk,hkd->hsd"}> : () -> ()
    %cst_42 = arith.constant dense<0.000000e+00> : vector<8x8x64xf32>
    %62 = tpu.matmul %60, %61, %cst_42 {dimension_numbers = #tpu.dot_dimension_numbers<[2], [1], [1], [2], [0, 0, 0, 1, 1, 2], [0], [0]>} : vector<8x8x8xf32>, vector<8x8x64xf32>, vector<8x8x64xf32> -> vector<8x8x64xf32>
    "tpu.trace_stop"() : () -> ()
    %cst_43 = arith.constant dense<0.000000e+00> : vector<8x64xf32>
    %63 = vector.multi_reduction <add>, %62, %cst_43 [0] : vector<8x8x64xf32> to vector<8x64xf32>
    %64 = arith.addf %5, %63 : vector<8x64xf32>
    %c0_44 = arith.constant 0 : index
    %c0_45 = arith.constant 0 : index
    %65 = vector.load %arg10[%c0_44, %c0_45] : memref<1x64xf32, #tpu.memory_space<vmem>>, vector<1x64xf32>
    %66 = vector.broadcast %65 : vector<1x64xf32> to vector<8x64xf32>
    %67 = arith.addf %64, %66 : vector<8x64xf32>
    %c0_46 = arith.constant 0 : index
    %c0_47 = arith.constant 0 : index
    %68 = vector.load %arg17[%c0_46, %c0_47] : memref<1x64xf32, #tpu.memory_space<vmem>>, vector<1x64xf32>
    %c0_48 = arith.constant 0 : index
    %c0_49 = arith.constant 0 : index
    %69 = vector.load %arg18[%c0_48, %c0_49] : memref<1x64xf32, #tpu.memory_space<vmem>>, vector<1x64xf32>
    %cst_50 = arith.constant dense<0.000000e+00> : vector<8xf32>
    %70 = vector.multi_reduction <add>, %67, %cst_50 [1] : vector<8x64xf32> to vector<8xf32>
    %71 = vector.shape_cast %70 : vector<8xf32> to vector<8x1xf32>
    %cst_51 = arith.constant 6.400000e+01 : f32
    %72 = vector.broadcast %cst_51 : f32 to vector<8x1xf32>
    %73 = arith.divf %71, %72 : vector<8x1xf32>
    %74 = arith.mulf %67, %67 : vector<8x64xf32>
    %cst_52 = arith.constant dense<0.000000e+00> : vector<8xf32>
    %75 = vector.multi_reduction <add>, %74, %cst_52 [1] : vector<8x64xf32> to vector<8xf32>
    %76 = vector.shape_cast %75 : vector<8xf32> to vector<8x1xf32>
    %cst_53 = arith.constant 6.400000e+01 : f32
    %77 = vector.broadcast %cst_53 : f32 to vector<8x1xf32>
    %78 = arith.divf %76, %77 : vector<8x1xf32>
    %79 = arith.mulf %73, %73 : vector<8x1xf32>
    %80 = arith.subf %78, %79 : vector<8x1xf32>
    %81 = vector.broadcast %73 : vector<8x1xf32> to vector<8x64xf32>
    %82 = arith.subf %67, %81 : vector<8x64xf32>
    %cst_54 = arith.constant 9.99999974E-6 : f32
    %83 = vector.broadcast %cst_54 : f32 to vector<8x1xf32>
    %84 = arith.addf %80, %83 : vector<8x1xf32>
    %85 = math.rsqrt %84 : vector<8x1xf32>
    %86 = vector.broadcast %85 : vector<8x1xf32> to vector<8x64xf32>
    %87 = arith.mulf %82, %86 : vector<8x64xf32>
    %88 = vector.broadcast %68 : vector<1x64xf32> to vector<8x64xf32>
    %89 = arith.mulf %87, %88 : vector<8x64xf32>
    %90 = vector.broadcast %69 : vector<1x64xf32> to vector<8x64xf32>
    %91 = arith.addf %89, %90 : vector<8x64xf32>
    %c0_55 = arith.constant 0 : index
    %c0_56 = arith.constant 0 : index
    %92 = vector.load %arg11[%c0_55, %c0_56] : memref<64x128xf32, #tpu.memory_space<vmem>>, vector<64x128xf32>
    %cst_57 = arith.constant dense<0.000000e+00> : vector<8x128xf32>
    %93 = tpu.matmul %91, %92, %cst_57 {dimension_numbers = #tpu.dot_dimension_numbers<[1], [0], [0], [1], [0, 0, 1, 1], [], []>} : vector<8x64xf32>, vector<64x128xf32>, vector<8x128xf32> -> vector<8x128xf32>
    %c0_58 = arith.constant 0 : index
    %c0_59 = arith.constant 0 : index
    %94 = vector.load %arg12[%c0_58, %c0_59] : memref<1x128xf32, #tpu.memory_space<vmem>>, vector<1x128xf32>
    %95 = vector.broadcast %94 : vector<1x128xf32> to vector<8x128xf32>
    %96 = arith.addf %93, %95 : vector<8x128xf32>
    %cst_60 = arith.constant 0.000000e+00 : f32
    %97 = vector.broadcast %cst_60 : f32 to vector<8x128xf32>
    %98 = arith.maximumf %96, %97 : vector<8x128xf32>
    %c0_61 = arith.constant 0 : index
    %c0_62 = arith.constant 0 : index
    %99 = vector.load %arg13[%c0_61, %c0_62] : memref<128x64xf32, #tpu.memory_space<vmem>>, vector<128x64xf32>
    %cst_63 = arith.constant dense<0.000000e+00> : vector<8x64xf32>
    %100 = tpu.matmul %98, %99, %cst_63 {dimension_numbers = #tpu.dot_dimension_numbers<[1], [0], [0], [1], [0, 0, 1, 1], [], []>} : vector<8x128xf32>, vector<128x64xf32>, vector<8x64xf32> -> vector<8x64xf32>
    %101 = arith.addf %67, %100 : vector<8x64xf32>
    %c0_64 = arith.constant 0 : index
    %c0_65 = arith.constant 0 : index
    %102 = vector.load %arg14[%c0_64, %c0_65] : memref<1x64xf32, #tpu.memory_space<vmem>>, vector<1x64xf32>
    %103 = vector.broadcast %102 : vector<1x64xf32> to vector<8x64xf32>
    %104 = arith.addf %101, %103 : vector<8x64xf32>
    %c0_66 = arith.constant 0 : index
    %c0_67 = arith.constant 0 : index
    %105 = vector.load %arg15[%c0_66, %c0_67] : memref<1x64xf32, #tpu.memory_space<vmem>>, vector<1x64xf32>
    %c0_68 = arith.constant 0 : index
    %c0_69 = arith.constant 0 : index
    %106 = vector.load %arg16[%c0_68, %c0_69] : memref<1x64xf32, #tpu.memory_space<vmem>>, vector<1x64xf32>
    %cst_70 = arith.constant dense<0.000000e+00> : vector<8xf32>
    %107 = vector.multi_reduction <add>, %104, %cst_70 [1] : vector<8x64xf32> to vector<8xf32>
    %108 = vector.shape_cast %107 : vector<8xf32> to vector<8x1xf32>
    %cst_71 = arith.constant 6.400000e+01 : f32
    %109 = vector.broadcast %cst_71 : f32 to vector<8x1xf32>
    %110 = arith.divf %108, %109 : vector<8x1xf32>
    %111 = arith.mulf %104, %104 : vector<8x64xf32>
    %cst_72 = arith.constant dense<0.000000e+00> : vector<8xf32>
    %112 = vector.multi_reduction <add>, %111, %cst_72 [1] : vector<8x64xf32> to vector<8xf32>
    %113 = vector.shape_cast %112 : vector<8xf32> to vector<8x1xf32>
    %cst_73 = arith.constant 6.400000e+01 : f32
    %114 = vector.broadcast %cst_73 : f32 to vector<8x1xf32>
    %115 = arith.divf %113, %114 : vector<8x1xf32>
    %116 = arith.mulf %110, %110 : vector<8x1xf32>
    %117 = arith.subf %115, %116 : vector<8x1xf32>
    %118 = vector.broadcast %110 : vector<8x1xf32> to vector<8x64xf32>
    %119 = arith.subf %104, %118 : vector<8x64xf32>
    %cst_74 = arith.constant 9.99999974E-6 : f32
    %120 = vector.broadcast %cst_74 : f32 to vector<8x1xf32>
    %121 = arith.addf %117, %120 : vector<8x1xf32>
    %122 = math.rsqrt %121 : vector<8x1xf32>
    %123 = vector.broadcast %122 : vector<8x1xf32> to vector<8x64xf32>
    %124 = arith.mulf %119, %123 : vector<8x64xf32>
    %125 = vector.broadcast %105 : vector<1x64xf32> to vector<8x64xf32>
    %126 = arith.mulf %124, %125 : vector<8x64xf32>
    %127 = vector.broadcast %106 : vector<1x64xf32> to vector<8x64xf32>
    %128 = arith.addf %126, %127 : vector<8x64xf32>
    %129 = vector.shape_cast %128 : vector<8x64xf32> to vector<1x8x64xf32>
    %130 = vector.broadcast %129 : vector<1x8x64xf32> to vector<8x8x64xf32>
    %c0_75 = arith.constant 0 : index
    %c0_76 = arith.constant 0 : index
    %c0_77 = arith.constant 0 : index
    %131 = vector.load %arg3[%c0_75, %c0_76, %c0_77] : memref<8x64x8xf32, #tpu.memory_space<vmem>>, vector<8x64x8xf32>
    "tpu.trace_start"() <{level = 10 : i32, message = "hsd,hdk->hsk"}> : () -> ()
    %cst_78 = arith.constant dense<0.000000e+00> : vector<8x8x8xf32>
    %132 = tpu.matmul %130, %131, %cst_78 {dimension_numbers = #tpu.dot_dimension_numbers<[2], [1], [1], [2], [0, 0, 0, 1, 1, 2], [0], [0]>} : vector<8x8x64xf32>, vector<8x64x8xf32>, vector<8x8x8xf32> -> vector<8x8x8xf32>
    "tpu.trace_stop"() : () -> ()
    %c0_79 = arith.constant 0 : index
    %c0_80 = arith.constant 0 : index
    %c0_81 = arith.constant 0 : index
    %133 = vector.load %arg4[%c0_79, %c0_80, %c0_81] : memref<8x1x8xf32, #tpu.memory_space<vmem>>, vector<8x1x8xf32>
    %134 = vector.broadcast %133 : vector<8x1x8xf32> to vector<8x8x8xf32>
    %135 = arith.addf %132, %134 : vector<8x8x8xf32>
    %c0_82 = arith.constant 0 : index
    %c0_83 = arith.constant 0 : index
    %c0_84 = arith.constant 0 : index
    %136 = vector.load %arg5[%c0_82, %c0_83, %c0_84] : memref<8x64x8xf32, #tpu.memory_space<vmem>>, vector<8x64x8xf32>
    "tpu.trace_start"() <{level = 10 : i32, message = "hsd,hdk->hsk"}> : () -> ()
    %cst_85 = arith.constant dense<0.000000e+00> : vector<8x8x8xf32>
    %137 = tpu.matmul %130, %136, %cst_85 {dimension_numbers = #tpu.dot_dimension_numbers<[2], [1], [1], [2], [0, 0, 0, 1, 1, 2], [0], [0]>} : vector<8x8x64xf32>, vector<8x64x8xf32>, vector<8x8x8xf32> -> vector<8x8x8xf32>
    "tpu.trace_stop"() : () -> ()
    %c0_86 = arith.constant 0 : index
    %c0_87 = arith.constant 0 : index
    %c0_88 = arith.constant 0 : index
    %138 = vector.load %arg6[%c0_86, %c0_87, %c0_88] : memref<8x1x8xf32, #tpu.memory_space<vmem>>, vector<8x1x8xf32>
    %139 = vector.broadcast %138 : vector<8x1x8xf32> to vector<8x8x8xf32>
    %140 = arith.addf %137, %139 : vector<8x8x8xf32>
    %c0_89 = arith.constant 0 : index
    %c0_90 = arith.constant 0 : index
    %c0_91 = arith.constant 0 : index
    %141 = vector.load %arg7[%c0_89, %c0_90, %c0_91] : memref<8x64x8xf32, #tpu.memory_space<vmem>>, vector<8x64x8xf32>
    "tpu.trace_start"() <{level = 10 : i32, message = "hsd,hdk->hsk"}> : () -> ()
    %cst_92 = arith.constant dense<0.000000e+00> : vector<8x8x8xf32>
    %142 = tpu.matmul %130, %141, %cst_92 {dimension_numbers = #tpu.dot_dimension_numbers<[2], [1], [1], [2], [0, 0, 0, 1, 1, 2], [0], [0]>} : vector<8x8x64xf32>, vector<8x64x8xf32>, vector<8x8x8xf32> -> vector<8x8x8xf32>
    "tpu.trace_stop"() : () -> ()
    %c0_93 = arith.constant 0 : index
    %c0_94 = arith.constant 0 : index
    %c0_95 = arith.constant 0 : index
    %143 = vector.load %arg8[%c0_93, %c0_94, %c0_95] : memref<8x1x8xf32, #tpu.memory_space<vmem>>, vector<8x1x8xf32>
    %144 = vector.broadcast %143 : vector<8x1x8xf32> to vector<8x8x8xf32>
    %145 = arith.addf %142, %144 : vector<8x8x8xf32>
    "tpu.trace_start"() <{level = 10 : i32, message = "hsk,htk->hst"}> : () -> ()
    %cst_96 = arith.constant dense<0.000000e+00> : vector<8x8x8xf32>
    %146 = tpu.matmul %135, %140, %cst_96 {dimension_numbers = #tpu.dot_dimension_numbers<[2], [2], [1], [1], [0, 0, 0, 1, 1, 1], [0], [0]>} : vector<8x8x8xf32>, vector<8x8x8xf32>, vector<8x8x8xf32> -> vector<8x8x8xf32>
    "tpu.trace_stop"() : () -> ()
    %cst_97 = arith.constant 0.353553385 : f32
    %147 = vector.broadcast %cst_97 : f32 to vector<8x8x8xf32>
    %148 = arith.mulf %146, %147 : vector<8x8x8xf32>
    %cst_98 = arith.constant dense<0xFF800000> : vector<8x8xf32>
    %149 = vector.multi_reduction <maximumf>, %148, %cst_98 [2] : vector<8x8x8xf32> to vector<8x8xf32>
    %150 = vector.shape_cast %149 : vector<8x8xf32> to vector<8x8x1xf32>
    %151 = vector.broadcast %150 : vector<8x8x1xf32> to vector<8x8x8xf32>
    %152 = arith.subf %148, %151 : vector<8x8x8xf32>
    %153 = math.exp %152 : vector<8x8x8xf32>
    %cst_99 = arith.constant dense<0.000000e+00> : vector<8x8xf32>
    %154 = vector.multi_reduction <add>, %153, %cst_99 [2] : vector<8x8x8xf32> to vector<8x8xf32>
    %155 = vector.shape_cast %154 : vector<8x8xf32> to vector<8x8x1xf32>
    %156 = tpu.reciprocal %155 {approx = true} : vector<8x8x1xf32> -> vector<8x8x1xf32>
    %157 = vector.broadcast %156 : vector<8x8x1xf32> to vector<8x8x8xf32>
    %158 = arith.mulf %153, %157 : vector<8x8x8xf32>
    "tpu.trace_start"() <{level = 10 : i32, message = "hst,htk->hsk"}> : () -> ()
    %cst_100 = arith.constant dense<0.000000e+00> : vector<8x8x8xf32>
    %159 = tpu.matmul %158, %145, %cst_100 {dimension_numbers = #tpu.dot_dimension_numbers<[2], [1], [1], [2], [0, 0, 0, 1, 1, 2], [0], [0]>} : vector<8x8x8xf32>, vector<8x8x8xf32>, vector<8x8x8xf32> -> vector<8x8x8xf32>
    "tpu.trace_stop"() : () -> ()
    %c0_101 = arith.constant 0 : index
    %c0_102 = arith.constant 0 : index
    %c0_103 = arith.constant 0 : index
    %160 = vector.load %arg9[%c0_101, %c0_102, %c0_103] : memref<8x8x64xf32, #tpu.memory_space<vmem>>, vector<8x8x64xf32>
    "tpu.trace_start"() <{level = 10 : i32, message = "hsk,hkd->hsd"}> : () -> ()
    %cst_104 = arith.constant dense<0.000000e+00> : vector<8x8x64xf32>
    %161 = tpu.matmul %159, %160, %cst_104 {dimension_numbers = #tpu.dot_dimension_numbers<[2], [1], [1], [2], [0, 0, 0, 1, 1, 2], [0], [0]>} : vector<8x8x8xf32>, vector<8x8x64xf32>, vector<8x8x64xf32> -> vector<8x8x64xf32>
    "tpu.trace_stop"() : () -> ()
    %cst_105 = arith.constant dense<0.000000e+00> : vector<8x64xf32>
    %162 = vector.multi_reduction <add>, %161, %cst_105 [0] : vector<8x8x64xf32> to vector<8x64xf32>
    %163 = arith.addf %104, %162 : vector<8x64xf32>
    %c0_106 = arith.constant 0 : index
    %c0_107 = arith.constant 0 : index
    %164 = vector.load %arg10[%c0_106, %c0_107] : memref<1x64xf32, #tpu.memory_space<vmem>>, vector<1x64xf32>
    %165 = vector.broadcast %164 : vector<1x64xf32> to vector<8x64xf32>
    %166 = arith.addf %163, %165 : vector<8x64xf32>
    %c0_108 = arith.constant 0 : index
    %c0_109 = arith.constant 0 : index
    %167 = vector.load %arg17[%c0_108, %c0_109] : memref<1x64xf32, #tpu.memory_space<vmem>>, vector<1x64xf32>
    %c0_110 = arith.constant 0 : index
    %c0_111 = arith.constant 0 : index
    %168 = vector.load %arg18[%c0_110, %c0_111] : memref<1x64xf32, #tpu.memory_space<vmem>>, vector<1x64xf32>
    %cst_112 = arith.constant dense<0.000000e+00> : vector<8xf32>
    %169 = vector.multi_reduction <add>, %166, %cst_112 [1] : vector<8x64xf32> to vector<8xf32>
    %170 = vector.shape_cast %169 : vector<8xf32> to vector<8x1xf32>
    %cst_113 = arith.constant 6.400000e+01 : f32
    %171 = vector.broadcast %cst_113 : f32 to vector<8x1xf32>
    %172 = arith.divf %170, %171 : vector<8x1xf32>
    %173 = arith.mulf %166, %166 : vector<8x64xf32>
    %cst_114 = arith.constant dense<0.000000e+00> : vector<8xf32>
    %174 = vector.multi_reduction <add>, %173, %cst_114 [1] : vector<8x64xf32> to vector<8xf32>
    %175 = vector.shape_cast %174 : vector<8xf32> to vector<8x1xf32>
    %cst_115 = arith.constant 6.400000e+01 : f32
    %176 = vector.broadcast %cst_115 : f32 to vector<8x1xf32>
    %177 = arith.divf %175, %176 : vector<8x1xf32>
    %178 = arith.mulf %172, %172 : vector<8x1xf32>
    %179 = arith.subf %177, %178 : vector<8x1xf32>
    %180 = vector.broadcast %172 : vector<8x1xf32> to vector<8x64xf32>
    %181 = arith.subf %166, %180 : vector<8x64xf32>
    %cst_116 = arith.constant 9.99999974E-6 : f32
    %182 = vector.broadcast %cst_116 : f32 to vector<8x1xf32>
    %183 = arith.addf %179, %182 : vector<8x1xf32>
    %184 = math.rsqrt %183 : vector<8x1xf32>
    %185 = vector.broadcast %184 : vector<8x1xf32> to vector<8x64xf32>
    %186 = arith.mulf %181, %185 : vector<8x64xf32>
    %187 = vector.broadcast %167 : vector<1x64xf32> to vector<8x64xf32>
    %188 = arith.mulf %186, %187 : vector<8x64xf32>
    %189 = vector.broadcast %168 : vector<1x64xf32> to vector<8x64xf32>
    %190 = arith.addf %188, %189 : vector<8x64xf32>
    %c0_117 = arith.constant 0 : index
    %c0_118 = arith.constant 0 : index
    %191 = vector.load %arg11[%c0_117, %c0_118] : memref<64x128xf32, #tpu.memory_space<vmem>>, vector<64x128xf32>
    %cst_119 = arith.constant dense<0.000000e+00> : vector<8x128xf32>
    %192 = tpu.matmul %190, %191, %cst_119 {dimension_numbers = #tpu.dot_dimension_numbers<[1], [0], [0], [1], [0, 0, 1, 1], [], []>} : vector<8x64xf32>, vector<64x128xf32>, vector<8x128xf32> -> vector<8x128xf32>
    %c0_120 = arith.constant 0 : index
    %c0_121 = arith.constant 0 : index
    %193 = vector.load %arg12[%c0_120, %c0_121] : memref<1x128xf32, #tpu.memory_space<vmem>>, vector<1x128xf32>
    %194 = vector.broadcast %193 : vector<1x128xf32> to vector<8x128xf32>
    %195 = arith.addf %192, %194 : vector<8x128xf32>
    %cst_122 = arith.constant 0.000000e+00 : f32
    %196 = vector.broadcast %cst_122 : f32 to vector<8x128xf32>
    %197 = arith.maximumf %195, %196 : vector<8x128xf32>
    %c0_123 = arith.constant 0 : index
    %c0_124 = arith.constant 0 : index
    %198 = vector.load %arg13[%c0_123, %c0_124] : memref<128x64xf32, #tpu.memory_space<vmem>>, vector<128x64xf32>
    %cst_125 = arith.constant dense<0.000000e+00> : vector<8x64xf32>
    %199 = tpu.matmul %197, %198, %cst_125 {dimension_numbers = #tpu.dot_dimension_numbers<[1], [0], [0], [1], [0, 0, 1, 1], [], []>} : vector<8x128xf32>, vector<128x64xf32>, vector<8x64xf32> -> vector<8x64xf32>
    %200 = arith.addf %166, %199 : vector<8x64xf32>
    %c0_126 = arith.constant 0 : index
    %c0_127 = arith.constant 0 : index
    %201 = vector.load %arg14[%c0_126, %c0_127] : memref<1x64xf32, #tpu.memory_space<vmem>>, vector<1x64xf32>
    %202 = vector.broadcast %201 : vector<1x64xf32> to vector<8x64xf32>
    %203 = arith.addf %200, %202 : vector<8x64xf32>
    %c0_128 = arith.constant 0 : index
    %c0_129 = arith.constant 0 : index
    %204 = vector.load %arg19[%c0_128, %c0_129] : memref<1x64xf32, #tpu.memory_space<vmem>>, vector<1x64xf32>
    %c0_130 = arith.constant 0 : index
    %c0_131 = arith.constant 0 : index
    %205 = vector.load %arg20[%c0_130, %c0_131] : memref<1x64xf32, #tpu.memory_space<vmem>>, vector<1x64xf32>
    %cst_132 = arith.constant dense<0.000000e+00> : vector<8xf32>
    %206 = vector.multi_reduction <add>, %203, %cst_132 [1] : vector<8x64xf32> to vector<8xf32>
    %207 = vector.shape_cast %206 : vector<8xf32> to vector<8x1xf32>
    %cst_133 = arith.constant 6.400000e+01 : f32
    %208 = vector.broadcast %cst_133 : f32 to vector<8x1xf32>
    %209 = arith.divf %207, %208 : vector<8x1xf32>
    %210 = arith.mulf %203, %203 : vector<8x64xf32>
    %cst_134 = arith.constant dense<0.000000e+00> : vector<8xf32>
    %211 = vector.multi_reduction <add>, %210, %cst_134 [1] : vector<8x64xf32> to vector<8xf32>
    %212 = vector.shape_cast %211 : vector<8xf32> to vector<8x1xf32>
    %cst_135 = arith.constant 6.400000e+01 : f32
    %213 = vector.broadcast %cst_135 : f32 to vector<8x1xf32>
    %214 = arith.divf %212, %213 : vector<8x1xf32>
    %215 = arith.mulf %209, %209 : vector<8x1xf32>
    %216 = arith.subf %214, %215 : vector<8x1xf32>
    %217 = vector.broadcast %209 : vector<8x1xf32> to vector<8x64xf32>
    %218 = arith.subf %203, %217 : vector<8x64xf32>
    %cst_136 = arith.constant 9.99999974E-6 : f32
    %219 = vector.broadcast %cst_136 : f32 to vector<8x1xf32>
    %220 = arith.addf %216, %219 : vector<8x1xf32>
    %221 = math.rsqrt %220 : vector<8x1xf32>
    %222 = vector.broadcast %221 : vector<8x1xf32> to vector<8x64xf32>
    %223 = arith.mulf %218, %222 : vector<8x64xf32>
    %224 = vector.broadcast %204 : vector<1x64xf32> to vector<8x64xf32>
    %225 = arith.mulf %223, %224 : vector<8x64xf32>
    %226 = vector.broadcast %205 : vector<1x64xf32> to vector<8x64xf32>
    %227 = arith.addf %225, %226 : vector<8x64xf32>
    %c0_137 = arith.constant 0 : index
    %c0_138 = arith.constant 0 : index
    %c0_139 = arith.constant 0 : index
    %228 = vector.load %arg21[%c0_137, %c0_138, %c0_139] : memref<1x8x64xf32, #tpu.memory_space<vmem>>, vector<1x8x64xf32>
    %229 = vector.shape_cast %228 : vector<1x8x64xf32> to vector<8x64xf32>
    %230 = vector.shape_cast %227 : vector<8x64xf32> to vector<1x8x64xf32>
    tpu.vector_store %arg21[%c0_137, %c0_138, %c0_139], %230 {strides = array<i32>} : memref<1x8x64xf32, #tpu.memory_space<vmem>>, vector<1x8x64xf32>,
    return
  }
  func.func @transform_0(%arg0: i32) -> (i32, i32, i32) {
    %c0_i32 = arith.constant 0 : i32
    %c0_i32_0 = arith.constant 0 : i32
    %c0_i32_1 = arith.constant 0 : i32
    return %arg0, %c0_i32, %c0_i32_0 : i32, i32, i32
  }
  func.func @transform_1(%arg0: i32) -> (i32, i32) {
    %c0_i32 = arith.constant 0 : i32
    %c0_i32_0 = arith.constant 0 : i32
    %c0_i32_1 = arith.constant 0 : i32
    return %c0_i32, %c0_i32_0 : i32, i32
  }
  func.func @transform_2(%arg0: i32) -> (i32, i32, i32) {
    %c0_i32 = arith.constant 0 : i32
    %c0_i32_0 = arith.constant 0 : i32
    %c0_i32_1 = arith.constant 0 : i32
    %c0_i32_2 = arith.constant 0 : i32
    return %c0_i32, %c0_i32_0, %c0_i32_1 : i32, i32, i32
  }
  func.func @transform_3(%arg0: i32) -> (i32, i32, i32) {
    %c0_i32 = arith.constant 0 : i32
    %c0_i32_0 = arith.constant 0 : i32
    %c0_i32_1 = arith.constant 0 : i32
    %c0_i32_2 = arith.constant 0 : i32
    return %c0_i32, %c0_i32_0, %c0_i32_1 : i32, i32, i32
  }
  func.func @transform_4(%arg0: i32) -> (i32, i32, i32) {
    %c0_i32 = arith.constant 0 : i32
    %c0_i32_0 = arith.constant 0 : i32
    %c0_i32_1 = arith.constant 0 : i32
    %c0_i32_2 = arith.constant 0 : i32
    return %c0_i32, %c0_i32_0, %c0_i32_1 : i32, i32, i32
  }
  func.func @transform_5(%arg0: i32) -> (i32, i32, i32) {
    %c0_i32 = arith.constant 0 : i32
    %c0_i32_0 = arith.constant 0 : i32
    %c0_i32_1 = arith.constant 0 : i32
    %c0_i32_2 = arith.constant 0 : i32
    return %c0_i32, %c0_i32_0, %c0_i32_1 : i32, i32, i32
  }
  func.func @transform_6(%arg0: i32) -> (i32, i32, i32) {
    %c0_i32 = arith.constant 0 : i32
    %c0_i32_0 = arith.constant 0 : i32
    %c0_i32_1 = arith.constant 0 : i32
    %c0_i32_2 = arith.constant 0 : i32
    return %c0_i32, %c0_i32_0, %c0_i32_1 : i32, i32, i32
  }
  func.func @transform_7(%arg0: i32) -> (i32, i32, i32) {
    %c0_i32 = arith.constant 0 : i32
    %c0_i32_0 = arith.constant 0 : i32
    %c0_i32_1 = arith.constant 0 : i32
    %c0_i32_2 = arith.constant 0 : i32
    return %c0_i32, %c0_i32_0, %c0_i32_1 : i32, i32, i32
  }
  func.func @transform_8(%arg0: i32) -> (i32, i32, i32) {
    %c0_i32 = arith.constant 0 : i32
    %c0_i32_0 = arith.constant 0 : i32
    %c0_i32_1 = arith.constant 0 : i32
    %c0_i32_2 = arith.constant 0 : i32
    return %c0_i32, %c0_i32_0, %c0_i32_1 : i32, i32, i32
  }
  func.func @transform_9(%arg0: i32) -> (i32, i32) {
    %c0_i32 = arith.constant 0 : i32
    %c0_i32_0 = arith.constant 0 : i32
    %c0_i32_1 = arith.constant 0 : i32
    return %c0_i32, %c0_i32_0 : i32, i32
  }
  func.func @transform_10(%arg0: i32) -> (i32, i32) {
    %c0_i32 = arith.constant 0 : i32
    %c0_i32_0 = arith.constant 0 : i32
    %c0_i32_1 = arith.constant 0 : i32
    return %c0_i32, %c0_i32_0 : i32, i32
  }
  func.func @transform_11(%arg0: i32) -> (i32, i32) {
    %c0_i32 = arith.constant 0 : i32
    %c0_i32_0 = arith.constant 0 : i32
    %c0_i32_1 = arith.constant 0 : i32
    return %c0_i32, %c0_i32_0 : i32, i32
  }
  func.func @transform_12(%arg0: i32) -> (i32, i32) {
    %c0_i32 = arith.constant 0 : i32
    %c0_i32_0 = arith.constant 0 : i32
    %c0_i32_1 = arith.constant 0 : i32
    return %c0_i32, %c0_i32_0 : i32, i32
  }
  func.func @transform_13(%arg0: i32) -> (i32, i32) {
    %c0_i32 = arith.constant 0 : i32
    %c0_i32_0 = arith.constant 0 : i32
    %c0_i32_1 = arith.constant 0 : i32
    return %c0_i32, %c0_i32_0 : i32, i32
  }
  func.func @transform_14(%arg0: i32) -> (i32, i32) {
    %c0_i32 = arith.constant 0 : i32
    %c0_i32_0 = arith.constant 0 : i32
    %c0_i32_1 = arith.constant 0 : i32
    return %c0_i32, %c0_i32_0 : i32, i32
  }
  func.func @transform_15(%arg0: i32) -> (i32, i32) {
    %c0_i32 = arith.constant 0 : i32
    %c0_i32_0 = arith.constant 0 : i32
    %c0_i32_1 = arith.constant 0 : i32
    return %c0_i32, %c0_i32_0 : i32, i32
  }
  func.func @transform_16(%arg0: i32) -> (i32, i32) {
    %c0_i32 = arith.constant 0 : i32
    %c0_i32_0 = arith.constant 0 : i32
    %c0_i32_1 = arith.constant 0 : i32
    return %c0_i32, %c0_i32_0 : i32, i32
  }
  func.func @transform_17(%arg0: i32) -> (i32, i32) {
    %c0_i32 = arith.constant 0 : i32
    %c0_i32_0 = arith.constant 0 : i32
    %c0_i32_1 = arith.constant 0 : i32
    return %c0_i32, %c0_i32_0 : i32, i32
  }
  func.func @transform_18(%arg0: i32) -> (i32, i32) {
    %c0_i32 = arith.constant 0 : i32
    %c0_i32_0 = arith.constant 0 : i32
    %c0_i32_1 = arith.constant 0 : i32
    return %c0_i32, %c0_i32_0 : i32, i32
  }
  func.func @transform_19(%arg0: i32) -> (i32, i32) {
    %c0_i32 = arith.constant 0 : i32
    %c0_i32_0 = arith.constant 0 : i32
    %c0_i32_1 = arith.constant 0 : i32
    return %c0_i32, %c0_i32_0 : i32, i32
  }
  func.func @transform_20(%arg0: i32) -> (i32, i32, i32) {
    %c0_i32 = arith.constant 0 : i32
    %c0_i32_0 = arith.constant 0 : i32
    %c0_i32_1 = arith.constant 0 : i32
    return %arg0, %c0_i32, %c0_i32_0 : i32, i32, i32
  }
}

</mosaic_0001>

<bundles_post_ra>
// kernel: tpu_custom_call.1
= control target key start
LH: loop header
LB: loop body
LE: loop exit
PB: predicated region body
PF: predicated region fallthrough
CT: control target
= control target key end

     0   :  { %s14524_s0 = inlined_call_operand.vmem [shape: f32[2,8,64], index: 0, kind: input, shape index: {}]   ;;  %s14525_s1 = inlined_call_operand.vmem [shape: f32[8,64], index: 1, kind: input, shape index: {}]   ;;  %s14526_s2 = inlined_call_operand.vmem [shape: f32[8,64,8], index: 2, kind: input, shape index: {}]   ;;  %s14527_s3 = inlined_call_operand.vmem [shape: f32[8,1,8], index: 3, kind: input, shape index: {}]   ;;  %s14528_s4 = inlined_call_operand.vmem [shape: f32[8,64,8], index: 4, kind: input, shape index: {}]   ;;  %s14529_s5 = inlined_call_operand.vmem [shape: f32[8,1,8], index: 5, kind: input, shape index: {}]   ;;  %s14530_s6 = inlined_call_operand.vmem [shape: f32[8,64,8], index: 6, kind: input, shape index: {}]   ;;  %s14531_s7 = inlined_call_operand.vmem [shape: f32[8,1,8], index: 7, kind: input, shape index: {}]   ;;  %s14532_s8 = inlined_call_operand.vmem [shape: f32[8,8,64], index: 8, kind: input, shape index: {}]   ;;  %s14533_s9 = inlined_call_operand.vmem [shape: f32[1,64], index: 9, kind: input, shape index: {}]   ;;  %s14534_s10 = inlined_call_operand.vmem [shape: f32[64,128], index: 10, kind: input, shape index: {}]   ;;  %s14535_s11 = inlined_call_operand.vmem [shape: f32[1,128], index: 11, kind: input, shape index: {}]   ;;  %s14536_s12 = inlined_call_operand.vmem [shape: f32[128,64], index: 12, kind: input, shape index: {}]   ;;  %s14537_s13 = inlined_call_operand.vmem [shape: f32[1,64], index: 13, kind: input, shape index: {}]   ;;  %s14538_s14 = inlined_call_operand.vmem [shape: f32[1,64], index: 14, kind: input, shape index: {}]   ;;  %s14539_s15 = inlined_call_operand.vmem [shape: f32[1,64], index: 15, kind: input, shape index: {}]   ;;  %s14540_s16 = inlined_call_operand.vmem [shape: f32[1,64], index: 16, kind: input, shape index: {}]   ;;  %s14541_s17 = inlined_call_operand.vmem [shape: f32[1,64], index: 17, kind: input, shape index: {}]   ;;  %s14542_s18 = inlined_call_operand.vmem [shape: f32[1,64], index: 18, kind: input, shape index: {}]   ;;  %s14543_s19 = inlined_call_operand.vmem [shape: f32[1,64], index: 19, kind: input, shape index: {}]   ;;  %s14544_s20 = inlined_call_operand.hbm [shape: f32[2,8,64], index: 20, kind: output, shape index: {}]  }
   0x1   :  { %14557 = sst [smem:[#allocation11_spill]] %s14524_s0 }
   0x2   :  { %14558 = sst [smem:[#allocation12_spill]] %s14525_s1 }
   0x3   :  { %14559 = sst [smem:[#allocation13_spill]] %s14526_s2 }
   0x4   :  { %14560 = sst [smem:[#allocation14_spill]] %s14527_s3 }
   0x5   :  { %14561 = sst [smem:[#allocation15_spill]] %s14528_s4 }
   0x6   :  { %14562 = sst [smem:[#allocation16_spill]] %s14529_s5 }
   0x7   :  { %14563 = sst [smem:[#allocation17_spill]] %s14543_s19 }
   0x8   :  { %14564 = sst [smem:[#allocation18_spill]] %s14544_s20 }
   0x9   :  { %25 = vsyncpa [#allocation3], 0 }
   0xa   :  { %27 = vsyncpa [#allocation3 + $0x1], 0  ;;  %s12088_s1 = smov 0   ;;  %s12090_s22 = smov 0  }
   0xb   :  { %s12092_s23 = smov 0   ;;  %s12094_s24 = smov 0  }
   0xc LB: > { %14565 = sst [smem:[#allocation5_spill]] %s11965_s1  ;;  %s12109_s2 = sadd.s32 4294967295, %s11977_s24   ;;  %s11977_s24 = sphi %s12094_s24, %s14584_s24   ;;  %s11973_s23 = sphi %s12092_s23, %s14586_s23   ;;  %s11969_s22 = sphi %s12090_s22, %s14588_s22   ;;  %s11965_s1 = sphi %s12088_s1, %s14587_s1  }
   0xd   : > { %14566 = sst [smem:[#allocation6_spill]] %s11973_s23  ;;  %s9123_s25 = sadd.s32 4294967294, %s11977_s24  }
   0xe   : > { %14567 = sst [smem:[#allocation7_spill]] %s11977_s24  ;;  %s12113_s3 = sadd.s32 1, %s11977_s24  }
   0xf   : > { %14568 = sst [smem:[#allocation8_spill]] %s12113_s3  ;;  %s465_s26 = sadd.s32 1, %s11973_s23 }
  0x10   : > { %s462_s27 = ssub.s32 %s11977_s24, %s12113_s3  ;;  %p475_p0 = scmp.ne.s32.totalorder %s11973_s23, %s11969_s22 }
  0x11   : > { %p463_p1 = scmp.eq.s32.totalorder %s462_s27, 0  ;;  %p476_p2 = scmp.eq.s32.totalorder %s12109_s2, 1 }
  0x12   : > { %p481_p3 = scmp.ne.s32.totalorder %s11969_s22, %s11965_s1  ;;  %p482_p4 = scmp.eq.s32.totalorder %s9123_s25, 1 }
  0x13   : > { %s12124_s28 = scalar_select %p463_p1, %s11973_s23, %s465_s26  }
  0x14   : > { %p12126_p5 = por %p476_p2, %p475_p0  ;;  %p12130_p6 = por %p482_p4, %p481_p3 }
  0x15   : > { %14569 = sst [smem:[#allocation9_spill]] %s12124_s28  ;;  %p9126_p7 = scmp.ge.s32.totalorder %s11977_s24, 1 }
  0x16   : > { %s14571_s29 = scalar_select %p12130_p6, 1, 0 }
  0x17   : > { %p564_p8 = scmp.lt.s32.totalorder %s11977_s24, 3 }
  0x18   : > { %14572 = sst [smem:[#allocation10_spill]] %s14571_s29 }
  0x19   : > { %p565_p9 = pnand %p9126_p7, %p564_p8 }
  0x1a   : > { %p621_p10 = scmp.lt.s32.totalorder (!%p565_p9), %s12109_s2, 1  ;;  %s14573_s26 = sld [smem:[#allocation11_spill]] (!%p565_p9)  ;;  %vm631_vm0 = vcmask (!%p565_p9), 523264   ;;  %v11979_v12 = vmov (!%p565_p9), 0.0|0.0   ;;  %vm11980_vm1 = vmmov (!%p565_p9), 0   ;;  %v11981_v32 = vmov (!%p565_p9), 0.0  }
  0x1b   : > { %568 = sbr.rel (%p565_p9) target bundleno = 4358 (0x1106), region = 100  ;;  %s14574_s3 = sld [smem:[#allocation12_spill]] (!%p565_p9)  ;;  %11151 = vmatprep.subr.bf16.mxu0 (!%p565_p9), %v11979_v12  ;;  %11163 = vmatprep.subr.bf16.mxu1 (!%p565_p9), %v11979_v12  ;;  %v9129_v42 = vld [vmem:[%s14538_s14] ss:$0 sm:$0xff] (!%p565_p9)  ;;  %vm2705_vm2 = vcmask (!%p565_p9), 64512  }
  0x1c   : > { %s14575_s21 = sld [smem:[#allocation13_spill]] (!%p565_p9)  ;;  %9907 = vmatprep.mubr.msk.f32.mxu0 (!%p565_p9), %vm11980_vm1, %v11981_v32  ;;  %9926 = vmatprep.mubr.msk.f32.mxu1 (!%p565_p9), %vm11980_vm1, %v11981_v32  ;;  %v9130_v48 = vld [vmem:[%s14539_s15] ss:$0 sm:$0xff] (!%p565_p9)  ;;  %s14577_s5 = sld [smem:[#allocation16_spill]] (!%p565_p9) }
  0x1d   : > { %s618_s25 = sand.u32 (!%p565_p9), 1, %s11969_s22  }
  0x1e   : > { %s9127_s20 = sshll.u32 (!%p565_p9), %s618_s25, 3  ;;  %s9051_s1 = scalar_lea.sflag (!%p565_p9), [#allocation3], %s618_s25 }
  0x21   : > { %v627_v1 = vld [vmem:[%s14574_s3] sm:$0xff] (!%p565_p9)  ;;  %s14576_s3 = sld [smem:[#allocation15_spill]] (!%p565_p9) }
  0x22   : > { %s622_s30 = scalar_select %p621_p10, %s12109_s2, 1  ;;  %v662_v7 = vld [vmem:[%s14575_s21] sm:$0xff]  ;;  %v663_v8 = vld [vmem:[%s14575_s21 + $0x8] sm:$0xff]  ;;  %v664_v14 = vld [vmem:[%s14575_s21 + $0x10] sm:$0xff] }
  0x23   : > { %v670_v9 = vld [vmem:[%s14575_s21 + $0x40] sm:$0xff]  ;;  %v11152_v10 = vpack.c.bf16 %v663_v8, %v662_v7  ;;  %v671_v11 = vld [vmem:[%s14575_s21 + $0x48] sm:$0xff]  ;;  %v665_v15 = vld [vmem:[%s14575_s21 + $0x18] sm:$0xff] }
  0x24   : > { %s9128_s0 = sshll.u32 %s622_s30, 3  ;;  %v11164_v13 = vpack.c.bf16 %v671_v11, %v670_v9  ;;  %v672_v16 = vld [vmem:[%s14575_s21 + $0x50] sm:$0xff]  ;;  %v11155_v17 = vpack.c.bf16 %v665_v15, %v664_v14  ;;  %v673_v18 = vld [vmem:[%s14575_s21 + $0x58] sm:$0xff]  ;;  %v666_v20 = vld [vmem:[%s14575_s21 + $0x20] sm:$0xff]  ;;  %s620_s30 = scalar_lea.vmem [#allocation2], %s9127_s20 }
  0x25   : > { %s624_s27 = scalar_lea.vmem %s14573_s26, %s9128_s0  ;;  %11153 = vmatpush3.bf16.msra.mxu0 %v11152_v10  ;;  %v11167_v19 = vpack.c.bf16 %v673_v18, %v672_v16  ;;  %v667_v21 = vld [vmem:[%s14575_s21 + $0x28] sm:$0xff]  ;;  %v674_v22 = vld [vmem:[%s14575_s21 + $0x60] sm:$0xff]  ;;  %v668_v26 = vld [vmem:[%s14575_s21 + $0x30] sm:$0xff]  ;;  %s14578_s0 = sld [smem:[#allocation14_spill]] }
  0x26   : > { %v625_v0 = vld [vmem:[%s624_s27] sm:$0xff]  ;;  %11165 = vmatpush3.bf16.msra.mxu1 %v11164_v13  ;;  %11154 = vmatprep.subr.bf16.mxu0 %v11979_v12  ;;  %v11158_v23 = vpack.c.bf16 %v667_v21, %v666_v20  ;;  %v675_v24 = vld [vmem:[%s14575_s21 + $0x68] sm:$0xff]  ;;  %v669_v27 = vld [vmem:[%s14575_s21 + $0x38] sm:$0xff]  ;;  %s14579_s26 = sld [smem:[#allocation17_spill]]  ;;  %s9308_s27 = sshll.u32 %s12109_s2, 7 }
  0x27   : > { %v626_v2 = vmul.f32 8.0, %v625_v0  ;;  %11166 = vmatprep.subr.bf16.mxu1 %v11979_v12  ;;  %v11170_v25 = vpack.c.bf16 %v675_v24, %v674_v22  ;;  %v676_v28 = vld [vmem:[%s14575_s21 + $0x70] sm:$0xff]  ;;  %v11161_v29 = vpack.c.bf16 %v669_v27, %v668_v26  ;;  %v677_v30 = vld [vmem:[%s14575_s21 + $0x78] sm:$0xff]  ;;  %v678_v43 = vld [vmem:[%s14575_s21 + $0x80] sm:$0xff]  ;;  %s9064_s23 = sshll.u32 %s620_s30, 4  ;;  %s11982_s2 = smov [#allocation2]   ;;  %s14483_s23 = int_to_ptr.vmem [resolvable:$true] %s9064_s23 }
  0x28   : > { %v11173_v31 = vpack.c.bf16 %v677_v30, %v676_v28  ;;  %v679_v45 = vld [vmem:[%s14575_s21 + $0x88] sm:$0xff]  ;;  %v686_v46 = vld [vmem:[%s14575_s21 + $0xc0] sm:$0xff]  ;;  %v680_v52 = vld [vmem:[%s14575_s21 + $0x90] sm:$0xff]  ;;  %s11915_s19 = scalar_lea.vmem %s14483_s23, 128  ;;  %s11919_s20 = sshll.u32 %s11982_s2, 4  ;;  %s11920_s20 = int_to_ptr.vmem [resolvable:$false] %s11919_s20 }
  0x29   : > { %v12144_v3 = vadd.f32 %v627_v1, %v626_v2  ;;  %11156 = vmatpush3.bf16.msra.mxu0 %v11155_v17  ;;  %v687_v47 = vld [vmem:[%s14575_s21 + $0xc8] sm:$0xff]  ;;  %v11176_v50 = vpack.c.bf16 %v679_v45, %v678_v43  ;;  %v681_v54 = vld [vmem:[%s14575_s21 + $0x98] sm:$0xff]  ;;  %v688_v55 = vld [vmem:[%s14575_s21 + $0xd0] sm:$0xff]  ;;  %p11916_p11 = scmp.ne.s32.totalorder %s14483_s23, %s11915_s19  ;;  %s11921_s29 = scalar_lea.vmem %s11920_s20, 256 }
  0x2a   : > { %11168 = vmatpush3.bf16.msra.mxu1 %v11167_v19  ;;  %11157 = vmatprep.subr.bf16.mxu0 %v11979_v12  ;;  %v11188_v51 = vpack.c.bf16 %v687_v47, %v686_v46  ;;  %v689_v56 = vld [vmem:[%s14575_s21 + $0xd8] sm:$0xff]  ;;  %v11179_v57 = vpack.c.bf16 %v681_v54, %v680_v52  ;;  %v682_v59 = vld [vmem:[%s14575_s21 + $0xa0] sm:$0xff]  ;;  %v683_v60 = vld [vmem:[%s14575_s21 + $0xa8] sm:$0xff]  ;;  %p11922_p0 = scmp.lt.s32.totalorder %s14483_s23, %s11920_s20  ;;  %p11923_p1 = scmp.lt.s32.totalorder %s11921_s29, %s11915_s19 }
  0x2b   : > { %v632_v4 = vsel %vm631_vm0, %v12144_v3, 0.0  ;;  %v637_v5 = vmul.f32 %v12144_v3, %v12144_v3  ;;  %11169 = vmatprep.subr.bf16.mxu1 %v11979_v12  ;;  %v11191_v58 = vpack.c.bf16 %v689_v56, %v688_v55  ;;  %v690_v61 = vld [vmem:[%s14575_s21 + $0xe0] sm:$0xff]  ;;  %v691_v62 = vld [vmem:[%s14575_s21 + $0xe8] sm:$0xff]  ;;  %v11182_v63 = vpack.c.bf16 %v683_v60, %v682_v59  ;;  %v684_v1 = vld [vmem:[%s14575_s21 + $0xb0] sm:$0xff]  ;;  %p11917_p12 = pnand %p11916_p11, %p12126_p5 }
  0x2c   : > { %633 = vadd.xlane.f32.xlu0 %v632_v4  ;;  %v11194_v0 = vpack.c.bf16 %v691_v62, %v690_v61  ;;  %v685_v2 = vld [vmem:[%s14575_s21 + $0xb8] sm:$0xff]  ;;  %v692_v4 = vld [vmem:[%s14575_s21 + $0xf0] sm:$0xff]  ;;  %v694_v8 = vld [vmem:[%s14575_s21 + $0x100] sm:$0xff]  ;;  %p11924_p2 = por %p11923_p1, %p11922_p0 }
  0x2d   : > { %v638_v6 = vsel %vm631_vm0, %v637_v5, 0.0  ;;  %11159 = vmatpush3.bf16.msra.mxu0 %v11158_v23  ;;  %v693_v5 = vld [vmem:[%s14575_s21 + $0xf8] sm:$0xff]  ;;  %v695_v9 = vld [vmem:[%s14575_s21 + $0x108] sm:$0xff]  ;;  %v702_v10 = vld [vmem:[%s14575_s21 + $0x140] sm:$0xff]  ;;  %p11918_p13 = pneg %p11917_p12 }
  0x2e   : > { %11171 = vmatpush3.bf16.msra.mxu1 %v11170_v25  ;;  %11160 = vmatprep.subr.bf16.mxu0 %v11979_v12  ;;  %v11197_v7 = vpack.c.bf16 %v693_v5, %v692_v4  ;;  %v703_v11 = vld [vmem:[%s14575_s21 + $0x148] sm:$0xff]  ;;  %v11200_v13 = vpack.c.bf16 %v695_v9, %v694_v8  ;;  %v696_v15 = vld [vmem:[%s14575_s21 + $0x110] sm:$0xff]  ;;  %v697_v16 = vld [vmem:[%s14575_s21 + $0x118] sm:$0xff] }
  0x2f   : > { %11172 = vmatprep.subr.bf16.mxu1 %v11979_v12  ;;  %v11212_v14 = vpack.c.bf16 %v703_v11, %v702_v10  ;;  %v704_v17 = vld [vmem:[%s14575_s21 + $0x150] sm:$0xff]  ;;  %v705_v18 = vld [vmem:[%s14575_s21 + $0x158] sm:$0xff]  ;;  %v11203_v19 = vpack.c.bf16 %v697_v16, %v696_v15  ;;  %v698_v21 = vld [vmem:[%s14575_s21 + $0x120] sm:$0xff]  ;;  %p11925_p3 = pnand %p11924_p2, %p11918_p13 }
  0x30   : > { %639 = vadd.xlane.f32.xlu0 %v638_v6  ;;  %v11185_v6 = vpack.c.bf16 %v685_v2, %v684_v1  ;;  %v11215_v20 = vpack.c.bf16 %v705_v18, %v704_v17  ;;  %v699_v22 = vld [vmem:[%s14575_s21 + $0x128] sm:$0xff]  ;;  %v706_v23 = vld [vmem:[%s14575_s21 + $0x160] sm:$0xff]  ;;  %v700_v27 = vld [vmem:[%s14575_s21 + $0x130] sm:$0xff] }
  0x31   : > { %11162 = vmatpush3.bf16.msra.mxu0 %v11161_v29  ;;  %v707_v24 = vld [vmem:[%s14575_s21 + $0x168] sm:$0xff]  ;;  %v11206_v25 = vpack.c.bf16 %v699_v22, %v698_v21  ;;  %v701_v28 = vld [vmem:[%s14575_s21 + $0x138] sm:$0xff]  ;;  %v708_v29 = vld [vmem:[%s14575_s21 + $0x170] sm:$0xff] }
  0x32   : > { %11174 = vmatpush3.bf16.msra.mxu1 %v11173_v31  ;;  %11175 = vmatprep.subr.bf16.mxu0 %v11979_v12  ;;  %v11218_v26 = vpack.c.bf16 %v707_v24, %v706_v23  ;;  %v709_v30 = vld [vmem:[%s14575_s21 + $0x178] sm:$0xff]  ;;  %v11209_v31 = vpack.c.bf16 %v701_v28, %v700_v27  ;;  %v714_v46 = vld [vmem:[%s14575_s21 + $0x1a0] sm:$0xff]  ;;  %v715_v47 = vld [vmem:[%s14575_s21 + $0x1a8] sm:$0xff] }
  0x33   : > { %11187 = vmatprep.subr.bf16.mxu1 %v11979_v12  ;;  %v721_v43 = vld [vmem:[%s14575_s21 + $0x1d8] sm:$0xff]  ;;  %v716_v52 = vld [vmem:[%s14575_s21 + $0x1b0] sm:$0xff]  ;;  %v1345_v59 = vld [vmem:[%s14576_s3] sm:$0xff] }
  0x34   : > { %v717_v54 = vld [vmem:[%s14575_s21 + $0x1b8] sm:$0xff]  ;;  %v724_v55 = vld [vmem:[%s14575_s21 + $0x1f0] sm:$0xff]  ;;  %v1346_v60 = vld [vmem:[%s14576_s3 + $0x8] sm:$0xff] }
  0x35   : > { %v725_v56 = vld [vmem:[%s14575_s21 + $0x1f8] sm:$0xff]  ;;  %v1353_v61 = vld [vmem:[%s14576_s3 + $0x40] sm:$0xff]  ;;  %v1354_v62 = vld [vmem:[%s14576_s3 + $0x48] sm:$0xff] }
  0x36   : > { %v1347_v1 = vld [vmem:[%s14576_s3 + $0x10] sm:$0xff]  ;;  %v1348_v2 = vld [vmem:[%s14576_s3 + $0x18] sm:$0xff]  ;;  %v1349_v8 = vld [vmem:[%s14576_s3 + $0x20] sm:$0xff] }
  0x37   : > { %v1355_v4 = vld [vmem:[%s14576_s3 + $0x50] sm:$0xff]  ;;  %v1356_v5 = vld [vmem:[%s14576_s3 + $0x58] sm:$0xff]  ;;  %v1350_v9 = vld [vmem:[%s14576_s3 + $0x28] sm:$0xff] }
  0x38   : > { %v1357_v10 = vld [vmem:[%s14576_s3 + $0x60] sm:$0xff]  ;;  %v1358_v11 = vld [vmem:[%s14576_s3 + $0x68] sm:$0xff]  ;;  %v1351_v15 = vld [vmem:[%s14576_s3 + $0x30] sm:$0xff] }
  0x39   : > { %v1352_v16 = vld [vmem:[%s14576_s3 + $0x38] sm:$0xff]  ;;  %v1359_v17 = vld [vmem:[%s14576_s3 + $0x70] sm:$0xff]  ;;  %v1361_v21 = vld [vmem:[%s14576_s3 + $0x80] sm:$0xff] }
  0x3a   : > { %v1360_v18 = vld [vmem:[%s14576_s3 + $0x78] sm:$0xff]  ;;  %v1362_v22 = vld [vmem:[%s14576_s3 + $0x88] sm:$0xff]  ;;  %v1369_v23 = vld [vmem:[%s14576_s3 + $0xc0] sm:$0xff] }
  0x3b   : > { %v1370_v24 = vld [vmem:[%s14576_s3 + $0xc8] sm:$0xff]  ;;  %v1363_v27 = vld [vmem:[%s14576_s3 + $0x90] sm:$0xff]  ;;  %v1364_v28 = vld [vmem:[%s14576_s3 + $0x98] sm:$0xff] }
  0xb9   : > { %v634_v33 = vpop.xlane.xlu0 %633 }
  0xba   : > { %v636_v34 = vmul.f32 0.015625, %v634_v33  ;;  %v11221_v33 = vpack.c.bf16 %v709_v30, %v708_v29  ;;  %v1371_v29 = vld [vmem:[%s14576_s3 + $0xd0] sm:$0xff]  ;;  %v1372_v30 = vld [vmem:[%s14576_s3 + $0xd8] sm:$0xff] }
  0xbc   : > { %v642_v36 = vmul.f32 %v636_v34, %v636_v34  ;;  %v644_v40 = vsub.f32 %v12144_v3, %v636_v34  ;;  %v710_v34 = vld [vmem:[%s14575_s21 + $0x180] sm:$0xff] }
  0xbd   : > { %v640_v35 = vpop.xlane.xlu0 %639 }
  0xbe   : > { %v641_v37 = vmul.f32 0.015625, %v640_v35  ;;  %v711_v35 = vld [vmem:[%s14575_s21 + $0x188] sm:$0xff] }
  0xc0   : > { %v643_v38 = vsub.f32 %v641_v37, %v642_v36  ;;  %v718_v36 = vld [vmem:[%s14575_s21 + $0x1c0] sm:$0xff]  ;;  %v719_v37 = vld [vmem:[%s14575_s21 + $0x1c8] sm:$0xff] }
  0xc2   : > { %v645_v39 = vadd.f32 1e-05, %v643_v38  ;;  %v11224_v38 = vpack.c.bf16 %v711_v35, %v710_v34  ;;  %v1365_v34 = vld [vmem:[%s14576_s3 + $0xa0] sm:$0xff]  ;;  %v1366_v35 = vld [vmem:[%s14576_s3 + $0xa8] sm:$0xff] }
  0xc4   : > { %11841 = vrsqrt.f32 %v645_v39  ;;  %v11236_v39 = vpack.c.bf16 %v719_v37, %v718_v36  ;;  %v1373_v36 = vld [vmem:[%s14576_s3 + $0xe0] sm:$0xff]  ;;  %v1374_v37 = vld [vmem:[%s14576_s3 + $0xe8] sm:$0xff] }
  0xce   : > { %v11842_v41 = vpop.eup %11841 }
  0xcf   : > { %v647_v44 = vmul.f32 %v11842_v41, %v644_v40  ;;  %v712_v40 = vld [vmem:[%s14575_s21 + $0x190] sm:$0xff]  ;;  %v713_v41 = vld [vmem:[%s14575_s21 + $0x198] sm:$0xff] }
  0xd1   : > { %v654_v49 = vmul.f32 %v9129_v42, %v647_v44  ;;  %v720_v42 = vld [vmem:[%s14575_s21 + $0x1d0] sm:$0xff]  ;;  %v11227_v44 = vpack.c.bf16 %v713_v41, %v712_v40  ;;  %v1368_v41 = vld [vmem:[%s14576_s3 + $0xb8] sm:$0xff] }
  0xd2   : > { %v11239_v45 = vpack.c.bf16 %v721_v43, %v720_v42  ;;  %v1367_v40 = vld [vmem:[%s14576_s3 + $0xb0] sm:$0xff]  ;;  %v1376_v43 = vld [vmem:[%s14576_s3 + $0xf8] sm:$0xff] }
  0xd3   : > { %v12235_v53 = vadd.f32 %v9130_v48, %v654_v49  ;;  %v722_v48 = vld [vmem:[%s14575_s21 + $0x1e0] sm:$0xff]  ;;  %v723_v49 = vld [vmem:[%s14575_s21 + $0x1e8] sm:$0xff]  ;;  %v1375_v42 = vld [vmem:[%s14576_s3 + $0xf0] sm:$0xff] }
  0xd5   : > { %9908 = vmatmul.mubr.msk.f32.vlgmr.msra.gmra.mrb[0].mxu0 %vm631_vm0, %v12235_v53  ;;  %9927 = vmatmul.mubr.msk.f32.vlgmr.msra.gmra.mrb[0].mxu1 %vm631_vm0, %v12235_v53 }
  0xd6   : > { %11177 = vmatpush3.bf16.msra.mxu0 %v11176_v50  ;;  %11189 = vmatpush3.bf16.msra.mxu1 %v11188_v51  ;;  %v11230_v50 = vpack.c.bf16 %v715_v47, %v714_v46  ;;  %v11242_v51 = vpack.c.bf16 %v723_v49, %v722_v48  ;;  %v1377_v46 = vld [vmem:[%s14576_s3 + $0x100] sm:$0xff]  ;;  %v1378_v47 = vld [vmem:[%s14576_s3 + $0x108] sm:$0xff] }
  0xd7   : > { %11178 = vmatprep.subr.bf16.mxu0 %v11979_v12  ;;  %11190 = vmatprep.subr.bf16.mxu1 %v11979_v12  ;;  %v1385_v48 = vld [vmem:[%s14576_s3 + $0x140] sm:$0xff]  ;;  %v1386_v49 = vld [vmem:[%s14576_s3 + $0x148] sm:$0xff] }
  0xd8   : > { %9945 = vmatprep.mubr.msk.f32.mxu0 %vm11980_vm1, %v11981_v32  ;;  %9964 = vmatprep.mubr.msk.f32.mxu1 %vm11980_vm1, %v11981_v32 }
  0xda   : > { %11180 = vmatpush3.bf16.msra.mxu0 %v11179_v57  ;;  %11192 = vmatpush3.bf16.msra.mxu1 %v11191_v58  ;;  %v11233_v57 = vpack.c.bf16 %v717_v54, %v716_v52  ;;  %v11245_v58 = vpack.c.bf16 %v725_v56, %v724_v55  ;;  %v1379_v52 = vld [vmem:[%s14576_s3 + $0x110] sm:$0xff]  ;;  %v1380_v54 = vld [vmem:[%s14576_s3 + $0x118] sm:$0xff] }
  0xdb   : > { %11181 = vmatprep.subr.bf16.mxu0 %v11979_v12  ;;  %11193 = vmatprep.subr.bf16.mxu1 %v11979_v12  ;;  %v1387_v55 = vld [vmem:[%s14576_s3 + $0x150] sm:$0xff]  ;;  %v1388_v56 = vld [vmem:[%s14576_s3 + $0x158] sm:$0xff] }
  0xde   : > { %11183 = vmatpush3.bf16.msra.mxu0 %v11182_v63  ;;  %11195 = vmatpush3.bf16.msra.mxu1 %v11194_v0  ;;  %v11248_v63 = vpack.c.bf16 %v1346_v60, %v1345_v59  ;;  %v11260_v0 = vpack.c.bf16 %v1354_v62, %v1353_v61  ;;  %v1381_v59 = vld [vmem:[%s14576_s3 + $0x120] sm:$0xff]  ;;  %v1382_v60 = vld [vmem:[%s14576_s3 + $0x128] sm:$0xff] }
  0xdf   : > { %11184 = vmatprep.subr.bf16.mxu0 %v11979_v12  ;;  %11196 = vmatprep.subr.bf16.mxu1 %v11979_v12  ;;  %v1389_v61 = vld [vmem:[%s14576_s3 + $0x160] sm:$0xff]  ;;  %v1390_v62 = vld [vmem:[%s14576_s3 + $0x168] sm:$0xff] }
  0xe2   : > { %11186 = vmatpush3.bf16.msra.mxu0 %v11185_v6  ;;  %11198 = vmatpush3.bf16.msra.mxu1 %v11197_v7  ;;  %v11251_v6 = vpack.c.bf16 %v1348_v2, %v1347_v1  ;;  %v11263_v7 = vpack.c.bf16 %v1356_v5, %v1355_v4  ;;  %v1383_v1 = vld [vmem:[%s14576_s3 + $0x130] sm:$0xff]  ;;  %v1384_v2 = vld [vmem:[%s14576_s3 + $0x138] sm:$0xff] }
  0xe3   : > { %11199 = vmatprep.subr.bf16.mxu0 %v11979_v12  ;;  %11211 = vmatprep.subr.bf16.mxu1 %v11979_v12  ;;  %v1391_v4 = vld [vmem:[%s14576_s3 + $0x170] sm:$0xff]  ;;  %v1392_v5 = vld [vmem:[%s14576_s3 + $0x178] sm:$0xff] }
  0xe5   : > { %9946 = vmatmul.mubr.msk.f32.vlgmr.msra.gmra.mrb[2].mxu0 %vm631_vm0, %v12235_v53  ;;  %9965 = vmatmul.mubr.msk.f32.vlgmr.msra.gmra.mrb[2].mxu1 %vm631_vm0, %v12235_v53 }
  0xe6   : > { %11201 = vmatpush3.bf16.msra.mxu0 %v11200_v13  ;;  %11213 = vmatpush3.bf16.msra.mxu1 %v11212_v14  ;;  %v11254_v13 = vpack.c.bf16 %v1350_v9, %v1349_v8  ;;  %v11266_v14 = vpack.c.bf16 %v1358_v11, %v1357_v10  ;;  %v1393_v8 = vld [vmem:[%s14576_s3 + $0x180] sm:$0xff]  ;;  %v1394_v9 = vld [vmem:[%s14576_s3 + $0x188] sm:$0xff] }
  0xe7   : > { %11202 = vmatprep.subr.bf16.mxu0 %v11979_v12  ;;  %11214 = vmatprep.subr.bf16.mxu1 %v11979_v12  ;;  %v1401_v10 = vld [vmem:[%s14576_s3 + $0x1c0] sm:$0xff]  ;;  %v1402_v11 = vld [vmem:[%s14576_s3 + $0x1c8] sm:$0xff] }
  0xe8   : > { %9983 = vmatprep.mubr.msk.f32.mxu0 %vm11980_vm1, %v11981_v32  ;;  %10002 = vmatprep.mubr.msk.f32.mxu1 %vm11980_vm1, %v11981_v32 }
  0xea   : > { %11204 = vmatpush3.bf16.msra.mxu0 %v11203_v19  ;;  %11216 = vmatpush3.bf16.msra.mxu1 %v11215_v20  ;;  %v11257_v19 = vpack.c.bf16 %v1352_v16, %v1351_v15  ;;  %v11269_v20 = vpack.c.bf16 %v1360_v18, %v1359_v17  ;;  %v1395_v15 = vld [vmem:[%s14576_s3 + $0x190] sm:$0xff]  ;;  %v1396_v16 = vld [vmem:[%s14576_s3 + $0x198] sm:$0xff] }
  0xeb   : > { %11205 = vmatprep.subr.bf16.mxu0 %v11979_v12  ;;  %11217 = vmatprep.subr.bf16.mxu1 %v11979_v12  ;;  %v1403_v17 = vld [vmem:[%s14576_s3 + $0x1d0] sm:$0xff]  ;;  %v1404_v18 = vld [vmem:[%s14576_s3 + $0x1d8] sm:$0xff] }
  0xee   : > { %11207 = vmatpush3.bf16.msra.mxu0 %v11206_v25  ;;  %11219 = vmatpush3.bf16.msra.mxu1 %v11218_v26  ;;  %v11272_v25 = vpack.c.bf16 %v1362_v22, %v1361_v21  ;;  %v11284_v26 = vpack.c.bf16 %v1370_v24, %v1369_v23  ;;  %v1397_v21 = vld [vmem:[%s14576_s3 + $0x1a0] sm:$0xff]  ;;  %v1398_v22 = vld [vmem:[%s14576_s3 + $0x1a8] sm:$0xff] }
  0xef   : > { %11208 = vmatprep.subr.bf16.mxu0 %v11979_v12  ;;  %11220 = vmatprep.subr.bf16.mxu1 %v11979_v12  ;;  %v1405_v23 = vld [vmem:[%s14576_s3 + $0x1e0] sm:$0xff]  ;;  %v1406_v24 = vld [vmem:[%s14576_s3 + $0x1e8] sm:$0xff] }
  0xf2   : > { %11210 = vmatpush3.bf16.msra.mxu0 %v11209_v31  ;;  %11222 = vmatpush3.bf16.msra.mxu1 %v11221_v33  ;;  %v11275_v31 = vpack.c.bf16 %v1364_v28, %v1363_v27  ;;  %v11287_v33 = vpack.c.bf16 %v1372_v30, %v1371_v29  ;;  %v1399_v27 = vld [vmem:[%s14576_s3 + $0x1b0] sm:$0xff]  ;;  %v1400_v28 = vld [vmem:[%s14576_s3 + $0x1b8] sm:$0xff] }
  0xf3   : > { %11223 = vmatprep.subr.bf16.mxu0 %v11979_v12  ;;  %11235 = vmatprep.subr.bf16.mxu1 %v11979_v12  ;;  %v1407_v29 = vld [vmem:[%s14576_s3 + $0x1f0] sm:$0xff]  ;;  %v1408_v30 = vld [vmem:[%s14576_s3 + $0x1f8] sm:$0xff] }
  0xf5   : > { %9984 = vmatmul.mubr.msk.f32.vlgmr.msra.gmra.mrb[4].mxu0 %vm631_vm0, %v12235_v53  ;;  %10003 = vmatmul.mubr.msk.f32.vlgmr.msra.gmra.mrb[4].mxu1 %vm631_vm0, %v12235_v53 }
  0xf6   : > { %11225 = vmatpush3.bf16.msra.mxu0 %v11224_v38  ;;  %11237 = vmatpush3.bf16.msra.mxu1 %v11236_v39  ;;  %v11278_v38 = vpack.c.bf16 %v1366_v35, %v1365_v34  ;;  %v11290_v39 = vpack.c.bf16 %v1374_v37, %v1373_v36  ;;  %v2025_v34 = vld [vmem:[%s14530_s6] sm:$0xff]  ;;  %v2026_v35 = vld [vmem:[%s14530_s6 + $0x8] sm:$0xff] }
  0xf7   : > { %11226 = vmatprep.subr.bf16.mxu0 %v11979_v12  ;;  %11238 = vmatprep.subr.bf16.mxu1 %v11979_v12  ;;  %v2033_v36 = vld [vmem:[%s14530_s6 + $0x40] sm:$0xff]  ;;  %v2034_v37 = vld [vmem:[%s14530_s6 + $0x48] sm:$0xff] }
  0xf8   : > { %10021 = vmatprep.mubr.msk.f32.mxu0 %vm11980_vm1, %v11981_v32  ;;  %10040 = vmatprep.mubr.msk.f32.mxu1 %vm11980_vm1, %v11981_v32 }
  0xfa   : > { %11228 = vmatpush3.bf16.msra.mxu0 %v11227_v44  ;;  %11240 = vmatpush3.bf16.msra.mxu1 %v11239_v45  ;;  %v11281_v44 = vpack.c.bf16 %v1368_v41, %v1367_v40  ;;  %v11293_v45 = vpack.c.bf16 %v1376_v43, %v1375_v42  ;;  %v2027_v40 = vld [vmem:[%s14530_s6 + $0x10] sm:$0xff]  ;;  %v2028_v41 = vld [vmem:[%s14530_s6 + $0x18] sm:$0xff] }
  0xfb   : > { %11229 = vmatprep.subr.bf16.mxu0 %v11979_v12  ;;  %11241 = vmatprep.subr.bf16.mxu1 %v11979_v12  ;;  %v2035_v42 = vld [vmem:[%s14530_s6 + $0x50] sm:$0xff]  ;;  %v2036_v43 = vld [vmem:[%s14530_s6 + $0x58] sm:$0xff] }
  0xfe   : > { %11231 = vmatpush3.bf16.msra.mxu0 %v11230_v50  ;;  %11243 = vmatpush3.bf16.msra.mxu1 %v11242_v51  ;;  %v11296_v50 = vpack.c.bf16 %v1378_v47, %v1377_v46  ;;  %v11308_v51 = vpack.c.bf16 %v1386_v49, %v1385_v48  ;;  %v2029_v46 = vld [vmem:[%s14530_s6 + $0x20] sm:$0xff]  ;;  %v2030_v47 = vld [vmem:[%s14530_s6 + $0x28] sm:$0xff] }
  0xff   : > { %11232 = vmatprep.subr.bf16.mxu0 %v11979_v12  ;;  %11244 = vmatprep.subr.bf16.mxu1 %v11979_v12  ;;  %v2037_v48 = vld [vmem:[%s14530_s6 + $0x60] sm:$0xff]  ;;  %v2038_v49 = vld [vmem:[%s14530_s6 + $0x68] sm:$0xff] }
 0x102   : > { %11234 = vmatpush3.bf16.msra.mxu0 %v11233_v57  ;;  %11246 = vmatpush3.bf16.msra.mxu1 %v11245_v58  ;;  %v11299_v57 = vpack.c.bf16 %v1380_v54, %v1379_v52  ;;  %v11311_v58 = vpack.c.bf16 %v1388_v56, %v1387_v55  ;;  %v2031_v52 = vld [vmem:[%s14530_s6 + $0x30] sm:$0xff]  ;;  %v2032_v54 = vld [vmem:[%s14530_s6 + $0x38] sm:$0xff] }
 0x103   : > { %11247 = vmatprep.subr.bf16.mxu0 %v11979_v12  ;;  %11259 = vmatprep.subr.bf16.mxu1 %v11979_v12  ;;  %v2039_v55 = vld [vmem:[%s14530_s6 + $0x70] sm:$0xff]  ;;  %v2040_v56 = vld [vmem:[%s14530_s6 + $0x78] sm:$0xff] }
 0x105   : > { %10022 = vmatmul.mubr.msk.f32.vlgmr.msra.gmra.mrb[6].mxu0 %vm631_vm0, %v12235_v53  ;;  %10041 = vmatmul.mubr.msk.f32.vlgmr.msra.gmra.mrb[6].mxu1 %vm631_vm0, %v12235_v53 }
 0x106   : > { %11249 = vmatpush3.bf16.msra.mxu0 %v11248_v63  ;;  %11261 = vmatpush3.bf16.msra.mxu1 %v11260_v0  ;;  %v11302_v63 = vpack.c.bf16 %v1382_v60, %v1381_v59  ;;  %v11314_v0 = vpack.c.bf16 %v1390_v62, %v1389_v61  ;;  %v2041_v59 = vld [vmem:[%s14530_s6 + $0x80] sm:$0xff]  ;;  %v2042_v60 = vld [vmem:[%s14530_s6 + $0x88] sm:$0xff] }
 0x107   : > { %11250 = vmatprep.subr.bf16.mxu0 %v11979_v12  ;;  %11262 = vmatprep.subr.bf16.mxu1 %v11979_v12  ;;  %v2049_v61 = vld [vmem:[%s14530_s6 + $0xc0] sm:$0xff]  ;;  %v2050_v62 = vld [vmem:[%s14530_s6 + $0xc8] sm:$0xff] }
 0x108   : > { %10059 = vmatprep.mubr.msk.f32.mxu0 %vm11980_vm1, %v11981_v32  ;;  %10078 = vmatprep.mubr.msk.f32.mxu1 %vm11980_vm1, %v11981_v32 }
 0x10a   : > { %11252 = vmatpush3.bf16.msra.mxu0 %v11251_v6  ;;  %11264 = vmatpush3.bf16.msra.mxu1 %v11263_v7  ;;  %v11305_v6 = vpack.c.bf16 %v1384_v2, %v1383_v1  ;;  %v11317_v7 = vpack.c.bf16 %v1392_v5, %v1391_v4  ;;  %v2043_v1 = vld [vmem:[%s14530_s6 + $0x90] sm:$0xff]  ;;  %v2044_v2 = vld [vmem:[%s14530_s6 + $0x98] sm:$0xff] }
 0x10b   : > { %11253 = vmatprep.subr.bf16.mxu0 %v11979_v12  ;;  %11265 = vmatprep.subr.bf16.mxu1 %v11979_v12  ;;  %v2051_v4 = vld [vmem:[%s14530_s6 + $0xd0] sm:$0xff]  ;;  %v2052_v5 = vld [vmem:[%s14530_s6 + $0xd8] sm:$0xff] }
 0x10e   : > { %11255 = vmatpush3.bf16.msra.mxu0 %v11254_v13  ;;  %11267 = vmatpush3.bf16.msra.mxu1 %v11266_v14  ;;  %v11320_v13 = vpack.c.bf16 %v1394_v9, %v1393_v8  ;;  %v11332_v14 = vpack.c.bf16 %v1402_v11, %v1401_v10  ;;  %v2045_v8 = vld [vmem:[%s14530_s6 + $0xa0] sm:$0xff]  ;;  %v2046_v9 = vld [vmem:[%s14530_s6 + $0xa8] sm:$0xff] }
 0x10f   : > { %11256 = vmatprep.subr.bf16.mxu0 %v11979_v12  ;;  %11268 = vmatprep.subr.bf16.mxu1 %v11979_v12  ;;  %v2053_v10 = vld [vmem:[%s14530_s6 + $0xe0] sm:$0xff]  ;;  %v2054_v11 = vld [vmem:[%s14530_s6 + $0xe8] sm:$0xff] }
 0x112   : > { %11258 = vmatpush3.bf16.msra.mxu0 %v11257_v19  ;;  %11270 = vmatpush3.bf16.msra.mxu1 %v11269_v20  ;;  %v11323_v19 = vpack.c.bf16 %v1396_v16, %v1395_v15  ;;  %v11335_v20 = vpack.c.bf16 %v1404_v18, %v1403_v17  ;;  %v2047_v15 = vld [vmem:[%s14530_s6 + $0xb0] sm:$0xff]  ;;  %v2048_v16 = vld [vmem:[%s14530_s6 + $0xb8] sm:$0xff] }
 0x113   : > { %11271 = vmatprep.subr.bf16.mxu0 %v11979_v12  ;;  %11283 = vmatprep.subr.bf16.mxu1 %v11979_v12  ;;  %v2055_v17 = vld [vmem:[%s14530_s6 + $0xf0] sm:$0xff]  ;;  %v2056_v18 = vld [vmem:[%s14530_s6 + $0xf8] sm:$0xff] }
 0x115   : > { %10060 = vmatmul.mubr.msk.f32.vlgmr.msra.gmra.mrb[8].mxu0 %vm631_vm0, %v12235_v53  ;;  %10079 = vmatmul.mubr.msk.f32.vlgmr.msra.gmra.mrb[8].mxu1 %vm631_vm0, %v12235_v53 }
 0x116   : > { %11273 = vmatpush3.bf16.msra.mxu0 %v11272_v25  ;;  %11285 = vmatpush3.bf16.msra.mxu1 %v11284_v26  ;;  %v11326_v25 = vpack.c.bf16 %v1398_v22, %v1397_v21  ;;  %v11338_v26 = vpack.c.bf16 %v1406_v24, %v1405_v23  ;;  %v2057_v21 = vld [vmem:[%s14530_s6 + $0x100] sm:$0xff]  ;;  %v2058_v22 = vld [vmem:[%s14530_s6 + $0x108] sm:$0xff] }
 0x117   : > { %11274 = vmatprep.subr.bf16.mxu0 %v11979_v12  ;;  %11286 = vmatprep.subr.bf16.mxu1 %v11979_v12  ;;  %v2065_v23 = vld [vmem:[%s14530_s6 + $0x140] sm:$0xff]  ;;  %v2066_v24 = vld [vmem:[%s14530_s6 + $0x148] sm:$0xff] }
 0x118   : > { %10097 = vmatprep.mubr.msk.f32.mxu0 %vm11980_vm1, %v11981_v32  ;;  %10116 = vmatprep.mubr.msk.f32.mxu1 %vm11980_vm1, %v11981_v32 }
 0x11a   : > { %11276 = vmatpush3.bf16.msra.mxu0 %v11275_v31  ;;  %11288 = vmatpush3.bf16.msra.mxu1 %v11287_v33  ;;  %v11329_v31 = vpack.c.bf16 %v1400_v28, %v1399_v27  ;;  %v11341_v33 = vpack.c.bf16 %v1408_v30, %v1407_v29  ;;  %v2059_v27 = vld [vmem:[%s14530_s6 + $0x110] sm:$0xff]  ;;  %v2060_v28 = vld [vmem:[%s14530_s6 + $0x118] sm:$0xff] }
 0x11b   : > { %11277 = vmatprep.subr.bf16.mxu0 %v11979_v12  ;;  %11289 = vmatprep.subr.bf16.mxu1 %v11979_v12  ;;  %v2067_v29 = vld [vmem:[%s14530_s6 + $0x150] sm:$0xff]  ;;  %v2068_v30 = vld [vmem:[%s14530_s6 + $0x158] sm:$0xff] }
 0x11e   : > { %11279 = vmatpush3.bf16.msra.mxu0 %v11278_v38  ;;  %11291 = vmatpush3.bf16.msra.mxu1 %v11290_v39  ;;  %v11344_v38 = vpack.c.bf16 %v2026_v35, %v2025_v34  ;;  %v11356_v39 = vpack.c.bf16 %v2034_v37, %v2033_v36  ;;  %v2061_v34 = vld [vmem:[%s14530_s6 + $0x120] sm:$0xff]  ;;  %v2062_v35 = vld [vmem:[%s14530_s6 + $0x128] sm:$0xff] }
 0x11f   : > { %11280 = vmatprep.subr.bf16.mxu0 %v11979_v12  ;;  %11292 = vmatprep.subr.bf16.mxu1 %v11979_v12  ;;  %v2069_v36 = vld [vmem:[%s14530_s6 + $0x160] sm:$0xff]  ;;  %v2070_v37 = vld [vmem:[%s14530_s6 + $0x168] sm:$0xff] }
 0x122   : > { %11282 = vmatpush3.bf16.msra.mxu0 %v11281_v44  ;;  %11294 = vmatpush3.bf16.msra.mxu1 %v11293_v45  ;;  %v11347_v44 = vpack.c.bf16 %v2028_v41, %v2027_v40  ;;  %v11359_v45 = vpack.c.bf16 %v2036_v43, %v2035_v42  ;;  %v2063_v40 = vld [vmem:[%s14530_s6 + $0x130] sm:$0xff]  ;;  %v2064_v41 = vld [vmem:[%s14530_s6 + $0x138] sm:$0xff] }
 0x123   : > { %11295 = vmatprep.subr.bf16.mxu0 %v11979_v12  ;;  %11307 = vmatprep.subr.bf16.mxu1 %v11979_v12  ;;  %v2071_v42 = vld [vmem:[%s14530_s6 + $0x170] sm:$0xff]  ;;  %v2072_v43 = vld [vmem:[%s14530_s6 + $0x178] sm:$0xff] }
 0x125   : > { %10098 = vmatmul.mubr.msk.f32.vlgmr.msra.gmra.mrb[10].mxu0 %vm631_vm0, %v12235_v53  ;;  %10117 = vmatmul.mubr.msk.f32.vlgmr.msra.gmra.mrb[10].mxu1 %vm631_vm0, %v12235_v53 }
 0x126   : > { %11297 = vmatpush3.bf16.msra.mxu0 %v11296_v50  ;;  %11309 = vmatpush3.bf16.msra.mxu1 %v11308_v51  ;;  %v11350_v50 = vpack.c.bf16 %v2030_v47, %v2029_v46  ;;  %v11362_v51 = vpack.c.bf16 %v2038_v49, %v2037_v48  ;;  %v2073_v46 = vld [vmem:[%s14530_s6 + $0x180] sm:$0xff]  ;;  %v2074_v47 = vld [vmem:[%s14530_s6 + $0x188] sm:$0xff] }
 0x127   : > { %11298 = vmatprep.subr.bf16.mxu0 %v11979_v12  ;;  %11310 = vmatprep.subr.bf16.mxu1 %v11979_v12  ;;  %v2081_v48 = vld [vmem:[%s14530_s6 + $0x1c0] sm:$0xff]  ;;  %v2082_v49 = vld [vmem:[%s14530_s6 + $0x1c8] sm:$0xff] }
 0x128   : > { %10135 = vmatprep.mubr.msk.f32.mxu0 %vm11980_vm1, %v11981_v32  ;;  %10154 = vmatprep.mubr.msk.f32.mxu1 %vm11980_vm1, %v11981_v32 }
 0x12a   : > { %11300 = vmatpush3.bf16.msra.mxu0 %v11299_v57  ;;  %11312 = vmatpush3.bf16.msra.mxu1 %v11311_v58  ;;  %v11353_v57 = vpack.c.bf16 %v2032_v54, %v2031_v52  ;;  %v11365_v58 = vpack.c.bf16 %v2040_v56, %v2039_v55  ;;  %v2075_v52 = vld [vmem:[%s14530_s6 + $0x190] sm:$0xff]  ;;  %v2076_v54 = vld [vmem:[%s14530_s6 + $0x198] sm:$0xff] }
 0x12b   : > { %11301 = vmatprep.subr.bf16.mxu0 %v11979_v12  ;;  %11313 = vmatprep.subr.bf16.mxu1 %v11979_v12  ;;  %v2083_v55 = vld [vmem:[%s14530_s6 + $0x1d0] sm:$0xff]  ;;  %v2084_v56 = vld [vmem:[%s14530_s6 + $0x1d8] sm:$0xff] }
 0x12e   : > { %11303 = vmatpush3.bf16.msra.mxu0 %v11302_v63  ;;  %11315 = vmatpush3.bf16.msra.mxu1 %v11314_v0  ;;  %v11368_v63 = vpack.c.bf16 %v2042_v60, %v2041_v59  ;;  %v11380_v0 = vpack.c.bf16 %v2050_v62, %v2049_v61  ;;  %v2077_v59 = vld [vmem:[%s14530_s6 + $0x1a0] sm:$0xff]  ;;  %v2078_v60 = vld [vmem:[%s14530_s6 + $0x1a8] sm:$0xff] }
 0x12f   : > { %11304 = vmatprep.subr.bf16.mxu0 %v11979_v12  ;;  %11316 = vmatprep.subr.bf16.mxu1 %v11979_v12  ;;  %v2085_v61 = vld [vmem:[%s14530_s6 + $0x1e0] sm:$0xff]  ;;  %v2086_v62 = vld [vmem:[%s14530_s6 + $0x1e8] sm:$0xff] }
 0x132   : > { %11306 = vmatpush3.bf16.msra.mxu0 %v11305_v6  ;;  %11318 = vmatpush3.bf16.msra.mxu1 %v11317_v7  ;;  %v11371_v6 = vpack.c.bf16 %v2044_v2, %v2043_v1  ;;  %v11383_v7 = vpack.c.bf16 %v2052_v5, %v2051_v4  ;;  %v2079_v1 = vld [vmem:[%s14530_s6 + $0x1b0] sm:$0xff]  ;;  %v2080_v2 = vld [vmem:[%s14530_s6 + $0x1b8] sm:$0xff] }
 0x133   : > { %11319 = vmatprep.subr.bf16.mxu0 %v11979_v12  ;;  %11331 = vmatprep.subr.bf16.mxu1 %v11979_v12  ;;  %v2087_v4 = vld [vmem:[%s14530_s6 + $0x1f0] sm:$0xff]  ;;  %v2088_v5 = vld [vmem:[%s14530_s6 + $0x1f8] sm:$0xff] }
 0x135   : > { %10136 = vmatmul.mubr.msk.f32.vlgmr.msra.gmra.mrb[12].mxu0 %vm631_vm0, %v12235_v53  ;;  %10155 = vmatmul.mubr.msk.f32.vlgmr.msra.gmra.mrb[12].mxu1 %vm631_vm0, %v12235_v53 }
 0x136   : > { %11321 = vmatpush3.bf16.msra.mxu0 %v11320_v13  ;;  %11333 = vmatpush3.bf16.msra.mxu1 %v11332_v14  ;;  %v11374_v13 = vpack.c.bf16 %v2046_v9, %v2045_v8  ;;  %v11386_v14 = vpack.c.bf16 %v2054_v11, %v2053_v10 }
 0x137   : > { %11322 = vmatprep.subr.bf16.mxu0 %v11979_v12  ;;  %11334 = vmatprep.subr.bf16.mxu1 %v11979_v12 }
 0x138   : > { %10173 = vmatprep.mubr.msk.f32.mxu0 %vm11980_vm1, %v11981_v32  ;;  %10192 = vmatprep.mubr.msk.f32.mxu1 %vm11980_vm1, %v11981_v32 }
 0x13a   : > { %11324 = vmatpush3.bf16.msra.mxu0 %v11323_v19  ;;  %11336 = vmatpush3.bf16.msra.mxu1 %v11335_v20  ;;  %v11377_v19 = vpack.c.bf16 %v2048_v16, %v2047_v15  ;;  %v11389_v20 = vpack.c.bf16 %v2056_v18, %v2055_v17 }
 0x13b   : > { %11325 = vmatprep.subr.bf16.mxu0 %v11979_v12  ;;  %11337 = vmatprep.subr.bf16.mxu1 %v11979_v12 }
 0x13e   : > { %11327 = vmatpush3.bf16.msra.mxu0 %v11326_v25  ;;  %11339 = vmatpush3.bf16.msra.mxu1 %v11338_v26  ;;  %v11392_v25 = vpack.c.bf16 %v2058_v22, %v2057_v21  ;;  %v11404_v26 = vpack.c.bf16 %v2066_v24, %v2065_v23  ;;  %v9147_v24 = vld [vmem:[%s14577_s5] ss:$0 sm:$0xff] }
 0x13f   : > { %11328 = vmatprep.subr.bf16.mxu0 %v11979_v12  ;;  %11340 = vmatprep.subr.bf16.mxu1 %v11979_v12 }
 0x142   : > { %11330 = vmatpush3.bf16.msra.mxu0 %v11329_v31  ;;  %11342 = vmatpush3.bf16.msra.mxu1 %v11341_v33  ;;  %v11395_v31 = vpack.c.bf16 %v2060_v28, %v2059_v27  ;;  %v11407_v33 = vpack.c.bf16 %v2068_v30, %v2067_v29  ;;  %v9131_v27 = vld [vmem:[%s14578_s0] ss:$0 sm:$0xff] }
 0x143   : > { %11343 = vmatprep.subr.bf16.mxu0 %v11979_v12  ;;  %11355 = vmatprep.subr.bf16.mxu1 %v11979_v12 }
 0x145   : > { %10174 = vmatmul.mubr.msk.f32.vlgmr.msra.gmra.mrb[14].mxu0 %vm631_vm0, %v12235_v53  ;;  %10193 = vmatmul.mubr.msk.f32.vlgmr.msra.gmra.mrb[14].mxu1 %vm631_vm0, %v12235_v53 }
 0x146   : > { %11345 = vmatpush3.bf16.msra.mxu0 %v11344_v38  ;;  %11357 = vmatpush3.bf16.msra.mxu1 %v11356_v39  ;;  %v11398_v38 = vpack.c.bf16 %v2062_v35, %v2061_v34  ;;  %v11410_v39 = vpack.c.bf16 %v2070_v37, %v2069_v36  ;;  %v9132_v34 = vld [vmem:[%s14578_s0 + $0x1] ss:$0 sm:$0xff]  ;;  %v9149_v37 = vld [vmem:[%s14577_s5 + $0x2] ss:$0 sm:$0xff] }
 0x147   : > { %11346 = vmatprep.subr.bf16.mxu0 %v11979_v12  ;;  %11358 = vmatprep.subr.bf16.mxu1 %v11979_v12 }
 0x148   : > { %10211 = vmatprep.mubr.msk.f32.mxu0 %vm11980_vm1, %v11981_v32  ;;  %10230 = vmatprep.mubr.msk.f32.mxu1 %vm11980_vm1, %v11981_v32 }
 0x14a   : > { %11348 = vmatpush3.bf16.msra.mxu0 %v11347_v44  ;;  %11360 = vmatpush3.bf16.msra.mxu1 %v11359_v45  ;;  %v11401_v44 = vpack.c.bf16 %v2064_v41, %v2063_v40  ;;  %v11413_v45 = vpack.c.bf16 %v2072_v43, %v2071_v42  ;;  %v9133_v40 = vld [vmem:[%s14578_s0 + $0x2] ss:$0 sm:$0xff] }
 0x14b   : > { %11349 = vmatprep.subr.bf16.mxu0 %v11979_v12  ;;  %11361 = vmatprep.subr.bf16.mxu1 %v11979_v12 }
 0x14e   : > { %11351 = vmatpush3.bf16.msra.mxu0 %v11350_v50  ;;  %11363 = vmatpush3.bf16.msra.mxu1 %v11362_v51  ;;  %v11416_v50 = vpack.c.bf16 %v2074_v47, %v2073_v46  ;;  %v11428_v51 = vpack.c.bf16 %v2082_v49, %v2081_v48  ;;  %v9134_v46 = vld [vmem:[%s14578_s0 + $0x3] ss:$0 sm:$0xff]  ;;  %v9151_v49 = vld [vmem:[%s14577_s5 + $0x4] ss:$0 sm:$0xff] }
 0x14f   : > { %11352 = vmatprep.subr.bf16.mxu0 %v11979_v12  ;;  %11364 = vmatprep.subr.bf16.mxu1 %v11979_v12 }
 0x152   : > { %11354 = vmatpush3.bf16.msra.mxu0 %v11353_v57  ;;  %11366 = vmatpush3.bf16.msra.mxu1 %v11365_v58  ;;  %v11419_v57 = vpack.c.bf16 %v2076_v54, %v2075_v52  ;;  %v11431_v58 = vpack.c.bf16 %v2084_v56, %v2083_v55  ;;  %v9135_v54 = vld [vmem:[%s14578_s0 + $0x4] ss:$0 sm:$0xff]  ;;  %v9136_v55 = vld [vmem:[%s14578_s0 + $0x5] ss:$0 sm:$0xff] }
 0x153   : > { %11367 = vmatprep.subr.bf16.mxu0 %v11979_v12  ;;  %11379 = vmatprep.subr.bf16.mxu1 %v11979_v12 }
 0x155   : > { %10212 = vmatmul.mubr.msk.f32.vlgmr.msra.gmra.mrb[16].mxu0 %vm631_vm0, %v12235_v53  ;;  %10231 = vmatmul.mubr.msk.f32.vlgmr.msra.gmra.mrb[16].mxu1 %vm631_vm0, %v12235_v53 }
 0x156   : > { %11369 = vmatpush3.bf16.msra.mxu0 %v11368_v63  ;;  %11381 = vmatpush3.bf16.msra.mxu1 %v11380_v0  ;;  %v11422_v63 = vpack.c.bf16 %v2078_v60, %v2077_v59  ;;  %v11434_v0 = vpack.c.bf16 %v2086_v62, %v2085_v61  ;;  %v9153_v62 = vld [vmem:[%s14577_s5 + $0x6] ss:$0 sm:$0xff] }
 0x157   : > { %11370 = vmatprep.subr.bf16.mxu0 %v11979_v12  ;;  %11382 = vmatprep.subr.bf16.mxu1 %v11979_v12 }
 0x158   : > { %10249 = vmatprep.mubr.msk.f32.mxu0 %vm11980_vm1, %v11981_v32  ;;  %10268 = vmatprep.mubr.msk.f32.mxu1 %vm11980_vm1, %v11981_v32 }
 0x15a   : > { %11372 = vmatpush3.bf16.msra.mxu0 %v11371_v6  ;;  %11384 = vmatpush3.bf16.msra.mxu1 %v11383_v7  ;;  %v11425_v6 = vpack.c.bf16 %v2080_v2, %v2079_v1  ;;  %v11437_v7 = vpack.c.bf16 %v2088_v5, %v2087_v4  ;;  %v9137_v2 = vld [vmem:[%s14578_s0 + $0x6] ss:$0 sm:$0xff]  ;;  %v9138_v4 = vld [vmem:[%s14578_s0 + $0x7] ss:$0 sm:$0xff] }
 0x15b   : > { %11373 = vmatprep.subr.bf16.mxu0 %v11979_v12  ;;  %11385 = vmatprep.subr.bf16.mxu1 %v11979_v12 }
 0x15e   : > { %11375 = vmatpush3.bf16.msra.mxu0 %v11374_v13  ;;  %11387 = vmatpush3.bf16.msra.mxu1 %v11386_v14 }
 0x15f   : > { %11376 = vmatprep.subr.bf16.mxu0 %v11979_v12  ;;  %11388 = vmatprep.subr.bf16.mxu1 %v11979_v12 }
 0x162   : > { %11378 = vmatpush3.bf16.msra.mxu0 %v11377_v19  ;;  %11390 = vmatpush3.bf16.msra.mxu1 %v11389_v20 }
 0x163   : > { %11391 = vmatprep.subr.bf16.mxu0 %v11979_v12  ;;  %11403 = vmatprep.subr.bf16.mxu1 %v11979_v12 }
 0x165   : > { %10250 = vmatmul.mubr.msk.f32.vlgmr.msra.gmra.mrb[18].mxu0 %vm631_vm0, %v12235_v53  ;;  %10269 = vmatmul.mubr.msk.f32.vlgmr.msra.gmra.mrb[18].mxu1 %vm631_vm0, %v12235_v53 }
 0x166   : > { %11393 = vmatpush3.bf16.msra.mxu0 %v11392_v25  ;;  %11405 = vmatpush3.bf16.msra.mxu1 %v11404_v26 }
 0x167   : > { %11394 = vmatprep.subr.bf16.mxu0 %v11979_v12  ;;  %11406 = vmatprep.subr.bf16.mxu1 %v11979_v12 }
 0x168   : > { %10287 = vmatprep.mubr.msk.f32.mxu0 %vm11980_vm1, %v11981_v32  ;;  %10306 = vmatprep.mubr.msk.f32.mxu1 %vm11980_vm1, %v11981_v32 }
 0x16a   : > { %11396 = vmatpush3.bf16.msra.mxu0 %v11395_v31  ;;  %11408 = vmatpush3.bf16.msra.mxu1 %v11407_v33  ;;  %v9148_v31 = vld [vmem:[%s14577_s5 + $0x1] ss:$0 sm:$0xff] }
 0x16b   : > { %11397 = vmatprep.subr.bf16.mxu0 %v11979_v12  ;;  %11409 = vmatprep.subr.bf16.mxu1 %v11979_v12 }
 0x16e   : > { %11399 = vmatpush3.bf16.msra.mxu0 %v11398_v38  ;;  %11411 = vmatpush3.bf16.msra.mxu1 %v11410_v39 }
 0x16f   : > { %11400 = vmatprep.subr.bf16.mxu0 %v11979_v12  ;;  %11412 = vmatprep.subr.bf16.mxu1 %v11979_v12 }
 0x172   : > { %11402 = vmatpush3.bf16.msra.mxu0 %v11401_v44  ;;  %11414 = vmatpush3.bf16.msra.mxu1 %v11413_v45  ;;  %v9150_v44 = vld [vmem:[%s14577_s5 + $0x3] ss:$0 sm:$0xff] }
 0x173   : > { %11415 = vmatprep.subr.bf16.mxu0 %v11979_v12  ;;  %11427 = vmatprep.subr.bf16.mxu1 %v11979_v12 }
 0x175   : > { %10288 = vmatmul.mubr.msk.f32.vlgmr.msra.gmra.mrb[20].mxu0 %vm631_vm0, %v12235_v53  ;;  %10307 = vmatmul.mubr.msk.f32.vlgmr.msra.gmra.mrb[20].mxu1 %vm631_vm0, %v12235_v53 }
 0x176   : > { %11417 = vmatpush3.bf16.msra.mxu0 %v11416_v50  ;;  %11429 = vmatpush3.bf16.msra.mxu1 %v11428_v51  ;;  %v9152_v50 = vld [vmem:[%s14577_s5 + $0x5] ss:$0 sm:$0xff] }
 0x177   : > { %11418 = vmatprep.subr.bf16.mxu0 %v11979_v12  ;;  %11430 = vmatprep.subr.bf16.mxu1 %v11979_v12 }
 0x178   : > { %10325 = vmatprep.mubr.msk.f32.mxu0 %vm11980_vm1, %v11981_v32  ;;  %10344 = vmatprep.mubr.msk.f32.mxu1 %vm11980_vm1, %v11981_v32 }
 0x17a   : > { %11420 = vmatpush3.bf16.msra.mxu0 %v11419_v57  ;;  %11432 = vmatpush3.bf16.msra.mxu1 %v11431_v58 }
 0x17b   : > { %11421 = vmatprep.subr.bf16.mxu0 %v11979_v12  ;;  %11433 = vmatprep.subr.bf16.mxu1 %v11979_v12 }
 0x17e   : > { %11423 = vmatpush3.bf16.msra.mxu0 %v11422_v63  ;;  %11435 = vmatpush3.bf16.msra.mxu1 %v11434_v0  ;;  %v9154_v63 = vld [vmem:[%s14577_s5 + $0x7] ss:$0 sm:$0xff] }
 0x17f   : > { %11424 = vmatprep.subr.bf16.mxu0 %v11979_v12  ;;  %11436 = vmatprep.subr.bf16.mxu1 %v11979_v12 }
 0x182   : > { %11426 = vmatpush3.bf16.msra.mxu0 %v11425_v6  ;;  %11438 = vmatpush3.bf16.msra.mxu1 %v11437_v7 }
 0x183   : > { %10347 = vmatprep.subr.mxu0 %v11981_v32  ;;  %10372 = vmatprep.subr.mxu1 %v11981_v32 }
 0x185   : > { %10326 = vmatmul.mubr.msk.f32.vlgmr.msra.gmra.mrb[22].mxu0 %vm631_vm0, %v12235_v53  ;;  %10345 = vmatmul.mubr.msk.f32.vlgmr.msra.gmra.mrb[22].mxu1 %vm631_vm0, %v12235_v53 }
 0x186   : > { %10349 = vmatprep.mubr.msk.f32.mxu0 %vm11980_vm1, %v11981_v32  ;;  %10374 = vmatprep.mubr.msk.f32.mxu1 %vm11980_vm1, %v11981_v32 }
 0x1a8   : > { %v851_v8 = vpop.f32.mrb[0].mxu0  ;;  %v921_v9 = vpop.f32.mrb[0].mxu1 }
 0x1a9   : > { %v9909_v10 = vpop.f32.mrb[1].mxu0  ;;  %v9928_v11 = vpop.f32.mrb[1].mxu1  ;;  %v852_v33 = vadd.f32 %v9131_v27, %v851_v8  ;;  %v922_v36 = vadd.f32 %v9132_v34, %v921_v9 }
 0x1aa   : > { %v9163_v11 = vld [vmem:[%s14531_s7] ss:$0 sm:$0xff] }
 0x1b8   : > { %v991_v13 = vpop.f32.mrb[2].mxu0  ;;  %v1061_v14 = vpop.f32.mrb[2].mxu1 }
 0x1b9   : > { %v9947_v15 = vpop.f32.mrb[3].mxu0  ;;  %v9966_v16 = vpop.f32.mrb[3].mxu1  ;;  %v992_v45 = vadd.f32 %v9133_v40, %v991_v13  ;;  %v1062_v48 = vadd.f32 %v9134_v46, %v1061_v14  ;;  %v9164_v13 = vld [vmem:[%s14531_s7 + $0x1] ss:$0 sm:$0xff] }
 0x1c8   : > { %v1131_v17 = vpop.f32.mrb[4].mxu0  ;;  %v1201_v18 = vpop.f32.mrb[4].mxu1 }
 0x1c9   : > { %v9985_v19 = vpop.f32.mrb[5].mxu0  ;;  %v10004_v20 = vpop.f32.mrb[5].mxu1  ;;  %v1132_v60 = vadd.f32 %v9135_v54, %v1131_v17  ;;  %v1202_v61 = vadd.f32 %v9136_v55, %v1201_v18 }
 0x1d8   : > { %v12934_v21 = vpop.f32.mrb[6].mxu0  ;;  %v12936_v53 = vpop.f32.mrb[6].mxu1 }
 0x1d9   : > { %v10023_v22 = vpop.f32.mrb[7].mxu0  ;;  %v10042_v23 = vpop.f32.mrb[7].mxu1  ;;  %v1272_v9 = vadd.f32 %v9137_v2, %v12934_v21  ;;  %v1342_v10 = vadd.f32 %v9138_v4, %v12936_v53 }
 0x1e8   : > { %v1531_v25 = vpop.f32.mrb[8].mxu0  ;;  %v1601_v26 = vpop.f32.mrb[8].mxu1 }
 0x1e9   : > { %v1532_v28 = vadd.f32 %v9147_v24, %v1531_v25  ;;  %v10061_v29 = vpop.f32.mrb[9].mxu0  ;;  %v10080_v30 = vpop.f32.mrb[9].mxu1  ;;  %v1602_v35 = vadd.f32 %v9148_v31, %v1601_v26 }
 0x1eb   : > { %10348 = vmatpush3.xpose.msk.msra.mxu0 %vm2705_vm2, %v1532_v28 }
 0x1ec   : > { %10352 = vmatprep.subr.mxu0 %v11981_v32 }
 0x1ee   : > { %10350 = vmatmul.mubr.msk.f32.vlgmr.msra.gmra.mrb[24].mxu0 %vm2705_vm2, %v852_v33 }
 0x1ef   : > { %10353 = vmatpush3.xpose.msk.msra.mxu0 %vm2705_vm2, %v1602_v35  ;;  %10354 = vmatprep.mubr.msk.f32.mxu0 %vm11980_vm1, %v11981_v32 }
 0x1f0   : > { %10357 = vmatprep.subr.mxu0 %v11981_v32 }
 0x1f2   : > { %10355 = vmatmul.mubr.msk.f32.vlgmr.msra.gmra.mrb[26].mxu0 %vm2705_vm2, %v922_v36 }
 0x1f3   : > { %10359 = vmatprep.mubr.msk.f32.mxu0 %vm11980_vm1, %v11981_v32 }
 0x1f8   : > { %v1671_v38 = vpop.f32.mrb[10].mxu0  ;;  %v1741_v39 = vpop.f32.mrb[10].mxu1 }
 0x1f9   : > { %v1672_v41 = vadd.f32 %v9149_v37, %v1671_v38  ;;  %v10099_v42 = vpop.f32.mrb[11].mxu0  ;;  %v10118_v43 = vpop.f32.mrb[11].mxu1  ;;  %v1742_v47 = vadd.f32 %v9150_v44, %v1741_v39 }
 0x1fb   : > { %10358 = vmatpush3.xpose.msk.msra.mxu0 %vm2705_vm2, %v1672_v41 }
 0x1fc   : > { %10362 = vmatprep.subr.mxu0 %v11981_v32 }
 0x1fe   : > { %10360 = vmatmul.mubr.msk.f32.vlgmr.msra.gmra.mrb[28].mxu0 %vm2705_vm2, %v992_v45 }
 0x1ff   : > { %10363 = vmatpush3.xpose.msk.msra.mxu0 %vm2705_vm2, %v1742_v47  ;;  %10364 = vmatprep.mubr.msk.f32.mxu0 %vm11980_vm1, %v11981_v32 }
 0x200   : > { %10367 = vmatprep.subr.mxu0 %v11981_v32 }
 0x202   : > { %10365 = vmatmul.mubr.msk.f32.vlgmr.msra.gmra.mrb[30].mxu0 %vm2705_vm2, %v1062_v48 }
 0x203   : > { %10369 = vmatprep.mubr.msk.f32.mxu0 %vm11980_vm1, %v11981_v32 }
 0x208   : > { %v1811_v51 = vpop.f32.mrb[12].mxu0  ;;  %v1881_v52 = vpop.f32.mrb[12].mxu1 }
 0x209   : > { %v1812_v56 = vadd.f32 %v9151_v49, %v1811_v51  ;;  %v1882_v57 = vadd.f32 %v9152_v50, %v1881_v52  ;;  %v10137_v58 = vpop.f32.mrb[13].mxu0  ;;  %v10156_v59 = vpop.f32.mrb[13].mxu1 }
 0x20b   : > { %10368 = vmatpush3.xpose.msk.msra.mxu0 %vm2705_vm2, %v1812_v56  ;;  %10373 = vmatpush3.xpose.msk.msra.mxu1 %vm2705_vm2, %v1882_v57 }
 0x20c   : > { %10377 = vmatprep.subr.mxu0 %v11981_v32  ;;  %10382 = vmatprep.subr.mxu1 %v11981_v32 }
 0x20e   : > { %10370 = vmatmul.mubr.msk.f32.vlgmr.msra.gmra.mrb[32].mxu0 %vm2705_vm2, %v1132_v60  ;;  %10375 = vmatmul.mubr.msk.f32.vlgmr.msra.gmra.mrb[24].mxu1 %vm2705_vm2, %v1202_v61 }
 0x20f   : > { %10379 = vmatprep.mubr.msk.f32.mxu0 %vm11980_vm1, %v11981_v32  ;;  %10384 = vmatprep.mubr.msk.f32.mxu1 %vm11980_vm1, %v11981_v32 }
 0x218   : > { %v1951_v0 = vpop.f32.mrb[14].mxu0  ;;  %v2021_v1 = vpop.f32.mrb[14].mxu1 }
 0x219   : > { %v1952_v5 = vadd.f32 %v9153_v62, %v1951_v0  ;;  %v2022_v6 = vadd.f32 %v9154_v63, %v2021_v1  ;;  %v10175_v7 = vpop.f32.mrb[15].mxu0  ;;  %v10194_v8 = vpop.f32.mrb[15].mxu1 }
 0x21b   : > { %10378 = vmatpush3.xpose.msk.msra.mxu0 %vm2705_vm2, %v1952_v5  ;;  %10383 = vmatpush3.xpose.msk.msra.mxu1 %vm2705_vm2, %v2022_v6 }
 0x21c   : > { %10387 = vmatprep.subr.mxu0 %v11981_v32  ;;  %10392 = vmatprep.subr.mxu1 %v11981_v32 }
 0x21e   : > { %10380 = vmatmul.mubr.msk.f32.vlgmr.msra.gmra.mrb[34].mxu0 %vm2705_vm2, %v1272_v9  ;;  %10385 = vmatmul.mubr.msk.f32.vlgmr.msra.gmra.mrb[26].mxu1 %vm2705_vm2, %v1342_v10 }
 0x21f   : > { %10389 = vmatprep.mubr.msk.f32.mxu0 %vm11980_vm1, %v11981_v32  ;;  %10394 = vmatprep.mubr.msk.f32.mxu1 %vm11980_vm1, %v11981_v32 }
 0x228   : > { %v2211_v14 = vpop.f32.mrb[16].mxu0  ;;  %v2281_v15 = vpop.f32.mrb[16].mxu1 }
 0x229   : > { %v2212_v16 = vadd.f32 %v9163_v11, %v2211_v14  ;;  %v2282_v17 = vadd.f32 %v9164_v13, %v2281_v15  ;;  %v10213_v18 = vpop.f32.mrb[17].mxu0  ;;  %v10232_v19 = vpop.f32.mrb[17].mxu1 }
 0x22b   : > { %10388 = vmatpush3.msra.mxu0 %v2212_v16  ;;  %10393 = vmatpush3.msra.mxu1 %v2282_v17 }
 0x22c   : > { %10397 = vmatprep.subr.mxu0 %v11981_v32  ;;  %10402 = vmatprep.subr.mxu1 %v11981_v32 }
 0x238   : > { %v13036_v20 = vpop.f32.mrb[18].mxu0  ;;  %v13038_v21 = vpop.f32.mrb[18].mxu1 }
 0x239   : > { %v10251_v53 = vpop.f32.mrb[19].mxu0  ;;  %v10270_v22 = vpop.f32.mrb[19].mxu1 }
 0x248   : > { %v13040_v23 = vpop.f32.mrb[20].mxu0  ;;  %v13042_v24 = vpop.f32.mrb[20].mxu1 }
 0x249   : > { %v10289_v25 = vpop.f32.mrb[21].mxu0  ;;  %v10308_v26 = vpop.f32.mrb[21].mxu1 }
 0x258   : > { %v13044_v27 = vpop.f32.mrb[22].mxu0  ;;  %v13046_v28 = vpop.f32.mrb[22].mxu1 }
 0x259   : > { %v10327_v29 = vpop.f32.mrb[23].mxu0  ;;  %v10346_v30 = vpop.f32.mrb[23].mxu1 }
 0x2c1   : > { %v2778_v31 = vpop.f32.mrb[24].mxu0 }
 0x2c2   : > { %v3314_v33 = vmul.f32 0.35355338, %v2778_v31  ;;  %v10351_v34 = vpop.f32.mrb[25].mxu0 }
 0x2c4   : > { %v3322_v35 = vsel %vm2705_vm2, %v3314_v33, -inf }
 0x2c5   : > { %3323 = vmax.xlane.f32.xlu1 %v3322_v35  ;;  %v2854_v36 = vpop.f32.mrb[26].mxu0 }
 0x2c6   : > { %v3315_v37 = vmul.f32 0.35355338, %v2854_v36  ;;  %v10356_v38 = vpop.f32.mrb[27].mxu0 }
 0x2c8   : > { %v3325_v39 = vsel %vm2705_vm2, %v3315_v37, -inf }
 0x2c9   : > { %3326 = vmax.xlane.f32.xlu1 %v3325_v39 }
 0x2d1   : > { %v2930_v40 = vpop.f32.mrb[28].mxu0 }
 0x2d2   : > { %v3316_v41 = vmul.f32 0.35355338, %v2930_v40  ;;  %v10361_v42 = vpop.f32.mrb[29].mxu0 }
 0x2d4   : > { %v3328_v43 = vsel %vm2705_vm2, %v3316_v41, -inf }
 0x2d5   : > { %3329 = vmax.xlane.f32.xlu0 %v3328_v43  ;;  %v3006_v44 = vpop.f32.mrb[30].mxu0 }
 0x2d6   : > { %v3317_v45 = vmul.f32 0.35355338, %v3006_v44  ;;  %v10366_v46 = vpop.f32.mrb[31].mxu0 }
 0x2d8   : > { %v3331_v47 = vsel %vm2705_vm2, %v3317_v45, -inf }
 0x2d9   : > { %3332 = vmax.xlane.f32.xlu1 %v3331_v47 }
 0x2e1   : > { %v3082_v48 = vpop.f32.mrb[32].mxu0  ;;  %v3158_v49 = vpop.f32.mrb[24].mxu1 }
 0x2e2   : > { %v3318_v50 = vmul.f32 0.35355338, %v3082_v48  ;;  %v3319_v51 = vmul.f32 0.35355338, %v3158_v49  ;;  %v10371_v52 = vpop.f32.mrb[33].mxu0  ;;  %v10376_v54 = vpop.f32.mrb[25].mxu1 }
 0x2e4   : > { %v3337_v55 = vsel %vm2705_vm2, %v3319_v51, -inf  ;;  %v3334_v56 = vsel %vm2705_vm2, %v3318_v50, -inf }
 0x2e5   : > { %3338 = vmax.xlane.f32.xlu1 %v3337_v55  ;;  %3335 = vmax.xlane.f32.xlu0 %v3334_v56  ;;  %v9166_v56 = vld [vmem:[%s14531_s7 + $0x3] ss:$0 sm:$0xff] }
 0x2f1   : > { %v3234_v57 = vpop.f32.mrb[34].mxu0  ;;  %v3310_v58 = vpop.f32.mrb[26].mxu1 }
 0x2f2   : > { %v3320_v59 = vmul.f32 0.35355338, %v3234_v57  ;;  %v3321_v60 = vmul.f32 0.35355338, %v3310_v58  ;;  %v10381_v61 = vpop.f32.mrb[35].mxu0  ;;  %v10386_v62 = vpop.f32.mrb[27].mxu1 }
 0x2f3   : > { %v9167_v61 = vld [vmem:[%s14531_s7 + $0x4] ss:$0 sm:$0xff] }
 0x2f4   : > { %v3343_v63 = vsel %vm2705_vm2, %v3321_v60, -inf  ;;  %v3340_v0 = vsel %vm2705_vm2, %v3320_v59, -inf }
 0x2f5   : > { %3344 = vmax.xlane.f32.xlu1 %v3343_v63  ;;  %3341 = vmax.xlane.f32.xlu0 %v3340_v0  ;;  %v2492_v0 = vadd.f32 %v9167_v61, %v13040_v23  ;;  %v9170_v23 = vld [vmem:[%s14531_s7 + $0x7] ss:$0 sm:$0xff] }
 0x352   : > { %v3324_v1 = vpop.xlane.xlu1 %3323 }
 0x353   : > { %v3346_v2 = vsub.f32 %v3314_v33, %v3324_v1 }
 0x355   : > { %v3354_v4 = vmul.f32 1.442695, %v3346_v2 }
 0x356   : > { %v3327_v5 = vpop.xlane.xlu1 %3326 }
 0x357   : > { %11843 = vpow2.f32 %v3354_v4  ;;  %v3347_v6 = vsub.f32 %v3315_v37, %v3327_v5 }
 0x359   : > { %v3356_v7 = vmul.f32 1.442695, %v3347_v6 }
 0x35b   : > { %11845 = vpow2.f32 %v3356_v7 }
 0x361   : > { %v11844_v8 = vpop.eup %11843 }
 0x362   : > { %v3330_v9 = vpop.xlane.xlu0 %3329  ;;  %v3370_v10 = vsel %vm2705_vm2, %v11844_v8, 0.0 }
 0x363   : > { %v3348_v11 = vsub.f32 %v3316_v41, %v3330_v9  ;;  %3371 = vadd.xlane.f32.xlu0 %v3370_v10  ;;  %v2702_v10 = vadd.f32 %v9170_v23, %v13046_v28 }
 0x365   : > { %v11846_v13 = vpop.eup %11845  ;;  %v3358_v14 = vmul.f32 1.442695, %v3348_v11 }
 0x366   : > { %v3333_v15 = vpop.xlane.xlu1 %3332  ;;  %v3373_v16 = vsel %vm2705_vm2, %v11846_v13, 0.0 }
 0x367   : > { %11847 = vpow2.f32 %v3358_v14  ;;  %v3349_v17 = vsub.f32 %v3317_v45, %v3333_v15  ;;  %3374 = vadd.xlane.f32.xlu1 %v3373_v16 }
 0x369   : > { %v3360_v18 = vmul.f32 1.442695, %v3349_v17 }
 0x36b   : > { %11849 = vpow2.f32 %v3360_v18  ;;  %v3994_v18 = vld [vmem:[%s14532_s8] sm:$0xff] }
 0x371   : > { %v11848_v19 = vpop.eup %11847 }
 0x372   : > { %v3339_v53 = vpop.xlane.xlu1 %3338  ;;  %v3336_v22 = vpop.xlane.xlu0 %3335  ;;  %v3376_v25 = vsel %vm2705_vm2, %v11848_v19, 0.0 }
 0x373   : > { %v3351_v26 = vsub.f32 %v3319_v51, %v3339_v53  ;;  %v3350_v29 = vsub.f32 %v3318_v50, %v3336_v22  ;;  %3377 = vadd.xlane.f32.xlu0 %v3376_v25  ;;  %v9165_v51 = vld [vmem:[%s14531_s7 + $0x2] ss:$0 sm:$0xff]  ;;  %v3996_v53 = vld [vmem:[%s14532_s8 + $0x10] sm:$0xff] }
 0x374   : > { %v2352_v55 = vadd.f32 %v9165_v51, %v13036_v20 }
 0x375   : > { %v11850_v30 = vpop.eup %11849  ;;  %v3364_v31 = vmul.f32 1.442695, %v3351_v26  ;;  %v3362_v33 = vmul.f32 1.442695, %v3350_v29  ;;  %v3997_v26 = vld [vmem:[%s14532_s8 + $0x18] sm:$0xff] }
 0x376   : > { %v3379_v34 = vsel %vm2705_vm2, %v11850_v30, 0.0 }
 0x377   : > { %11851 = vpow2.f32 %v3364_v31  ;;  %3380 = vadd.xlane.f32.xlu1 %v3379_v34  ;;  %v3998_v31 = vld [vmem:[%s14532_s8 + $0x20] sm:$0xff] }
 0x378   : > { %11853 = vpow2.f32 %v3362_v33 }
 0x381   : > { %v13060_v35 = vpop.eup %11851 }
 0x382   : > { %v13062_v36 = vpop.eup %11853  ;;  %v3345_v37 = vpop.xlane.xlu1 %3344  ;;  %v3385_v39 = vsel %vm2705_vm2, %v13060_v35, 0.0 }
 0x383   : > { %v3342_v38 = vpop.xlane.xlu0 %3341  ;;  %v3353_v40 = vsub.f32 %v3321_v60, %v3345_v37  ;;  %3386 = vadd.xlane.f32.xlu1 %v3385_v39  ;;  %v3382_v42 = vsel %vm2705_vm2, %v13062_v36, 0.0  ;;  %v2422_v60 = vadd.f32 %v9166_v56, %v13038_v21  ;;  %v9168_v21 = vld [vmem:[%s14531_s7 + $0x5] ss:$0 sm:$0xff] }
 0x384   : > { %v3352_v41 = vsub.f32 %v3320_v59, %v3342_v38  ;;  %3383 = vadd.xlane.f32.xlu0 %v3382_v42  ;;  %v2562_v5 = vadd.f32 %v9168_v21, %v13042_v24  ;;  %v9169_v24 = vld [vmem:[%s14531_s7 + $0x6] ss:$0 sm:$0xff]  ;;  %v4001_v38 = vld [vmem:[%s14532_s8 + $0x38] sm:$0xff] }
 0x385   : > { %v3368_v43 = vmul.f32 1.442695, %v3353_v40  ;;  %v4000_v40 = vld [vmem:[%s14532_s8 + $0x30] sm:$0xff] }
 0x386   : > { %v3366_v44 = vmul.f32 1.442695, %v3352_v41 }
 0x387   : > { %11855 = vpow2.f32 %v3368_v43 }
 0x388   : > { %11857 = vpow2.f32 %v3366_v44 }
 0x391   : > { %v13068_v45 = vpop.eup %11855 }
 0x392   : > { %v13070_v46 = vpop.eup %11857  ;;  %v3391_v47 = vsel %vm2705_vm2, %v13068_v45, 0.0 }
 0x393   : > { %3392 = vadd.xlane.f32.xlu1 %v3391_v47  ;;  %v3388_v48 = vsel %vm2705_vm2, %v13070_v46, 0.0 }
 0x394   : > { %3389 = vadd.xlane.f32.xlu0 %v3388_v48 }
 0x3f0   : > { %v3372_v49 = vpop.xlane.xlu0 %3371 }
 0x3f1   : > { %11859 = vrcp.f32 %v3372_v49 }
 0x3f4   : > { %v3375_v50 = vpop.xlane.xlu1 %3374 }
 0x3f5   : > { %11861 = vrcp.f32 %v3375_v50 }
 0x3fb   : > { %v11860_v52 = vpop.eup %11859 }
 0x3fc   : > { %v3402_v54 = vmul.f32 %v11860_v52, %v11844_v8 }
 0x3fe   : > { %10390 = vmatmul.mubr.msk.f32.vlgmr.msra.gmra.mrb[36].mxu0 %vm2705_vm2, %v3402_v54 }
 0x3ff   : > { %v11862_v57 = vpop.eup %11861  ;;  %10398 = vmatpush3.msra.mxu0 %v2352_v55  ;;  %10399 = vmatprep.mubr.msk.f32.mxu0 %vm11980_vm1, %v11981_v32 }
 0x400   : > { %v3403_v58 = vmul.f32 %v11862_v57, %v11846_v13  ;;  %v3378_v59 = vpop.xlane.xlu0 %3377  ;;  %10407 = vmatprep.subr.mxu0 %v11981_v32  ;;  %v2632_v13 = vadd.f32 %v9169_v24, %v13044_v27 }
 0x401   : > { %11863 = vrcp.f32 %v3378_v59 }
 0x402   : > { %10395 = vmatmul.mubr.msk.f32.vlgmr.msra.gmra.mrb[28].mxu1 %vm2705_vm2, %v3403_v58 }
 0x403   : > { %10403 = vmatpush3.msra.mxu1 %v2422_v60  ;;  %10404 = vmatprep.mubr.msk.f32.mxu1 %vm11980_vm1, %v11981_v32 }
 0x404   : > { %v3381_v20 = vpop.xlane.xlu1 %3380  ;;  %10412 = vmatprep.subr.mxu1 %v11981_v32 }
 0x405   : > { %11865 = vrcp.f32 %v3381_v20 }
 0x40b   : > { %v11864_v62 = vpop.eup %11863 }
 0x40c   : > { %v3404_v63 = vmul.f32 %v11864_v62, %v11848_v19  ;;  %v3995_v19 = vld [vmem:[%s14532_s8 + $0x8] sm:$0xff] }
 0x40e   : > { %10400 = vmatmul.mubr.msk.f32.vlgmr.msra.gmra.mrb[38].mxu0 %vm2705_vm2, %v3404_v63 }
 0x40f   : > { %v11866_v1 = vpop.eup %11865  ;;  %10408 = vmatpush3.msra.mxu0 %v2492_v0  ;;  %10409 = vmatprep.mubr.msk.f32.mxu0 %vm11980_vm1, %v11981_v32 }
 0x410   : > { %v3405_v2 = vmul.f32 %v11866_v1, %v11850_v30  ;;  %v3387_v4 = vpop.xlane.xlu1 %3386  ;;  %10417 = vmatprep.subr.mxu0 %v11981_v32 }
 0x411   : > { %11867 = vrcp.f32 %v3387_v4  ;;  %v3384_v6 = vpop.xlane.xlu0 %3383 }
 0x412   : > { %11869 = vrcp.f32 %v3384_v6  ;;  %10405 = vmatmul.mubr.msk.f32.vlgmr.msra.gmra.mrb[30].mxu1 %vm2705_vm2, %v3405_v2 }
 0x413   : > { %10413 = vmatpush3.msra.mxu1 %v2562_v5  ;;  %10414 = vmatprep.mubr.msk.f32.mxu1 %vm11980_vm1, %v11981_v32 }
 0x414   : > { %10422 = vmatprep.subr.mxu1 %v11981_v32 }
 0x41b   : > { %v11868_v7 = vpop.eup %11867 }
 0x41c   : > { %v11870_v8 = vpop.eup %11869  ;;  %v3407_v9 = vmul.f32 %v11868_v7, %v13060_v35  ;;  %v3999_v35 = vld [vmem:[%s14532_s8 + $0x28] sm:$0xff] }
 0x41d   : > { %v3406_v11 = vmul.f32 %v11870_v8, %v13062_v36 }
 0x41e   : > { %10415 = vmatmul.mubr.msk.f32.vlgmr.msra.gmra.mrb[32].mxu1 %vm2705_vm2, %v3407_v9 }
 0x41f   : > { %10410 = vmatmul.mubr.msk.f32.vlgmr.msra.gmra.mrb[40].mxu0 %vm2705_vm2, %v3406_v11  ;;  %10423 = vmatpush3.msra.mxu1 %v2702_v10 }
 0x420   : > { %10418 = vmatpush3.msra.mxu0 %v2632_v13  ;;  %v3393_v14 = vpop.xlane.xlu1 %3392  ;;  %10419 = vmatprep.mubr.msk.f32.mxu0 %vm11980_vm1, %v11981_v32 }
 0x421   : > { %11871 = vrcp.f32 %v3393_v14  ;;  %v3390_v15 = vpop.xlane.xlu0 %3389  ;;  %10424 = vmatprep.mubr.msk.f32.mxu1 %vm11980_vm1, %v11981_v32  ;;  %10427 = vmatprep.subr.mxu0 %v11981_v32  ;;  %v9211_v14 = vld [vmem:[%s14533_s9] ss:$0 sm:$0xff] }
 0x422   : > { %11873 = vrcp.f32 %v3390_v15  ;;  %10432 = vmatprep.subr.mxu1 %v11981_v32 }
 0x42b   : > { %v11872_v27 = vpop.eup %11871 }
 0x42c   : > { %v11874_v28 = vpop.eup %11873  ;;  %v3409_v16 = vmul.f32 %v11872_v27, %v13068_v45 }
 0x42d   : > { %v3408_v17 = vmul.f32 %v11874_v28, %v13070_v46 }
 0x42e   : > { %10425 = vmatmul.mubr.msk.f32.vlgmr.msra.gmra.mrb[34].mxu1 %vm2705_vm2, %v3409_v16 }
 0x42f   : > { %10420 = vmatmul.mubr.msk.f32.vlgmr.msra.gmra.mrb[42].mxu0 %vm2705_vm2, %v3408_v17  ;;  %10434 = vmatprep.mubr.msk.f32.mxu1 %vm11980_vm1, %v11981_v32 }
 0x430   : > { %10429 = vmatprep.mubr.msk.f32.mxu0 %vm11980_vm1, %v11981_v32  ;;  %10428 = vmatpush3.msra.mxu0 %v3994_v18  ;;  %v4641_v18 = vld [vmem:[%s14534_s10] sm:$0xff] }
 0x431   : > { %10437 = vmatprep.subr.mxu0 %v11981_v32  ;;  %10433 = vmatpush3.msra.mxu1 %v3995_v19 }
 0x432   : > { %10442 = vmatprep.subr.mxu1 %v11981_v32 }
 0x4d1   : > { %v3479_v22 = vpop.f32.mrb[36].mxu0 }
 0x4d2   : > { %v10391_v25 = vpop.f32.mrb[37].mxu0  ;;  %10430 = vmatmul.mubr.msk.f32.vlgmr.msra.gmra.mrb[44].mxu0 %vm2705_vm2, %v3479_v22  ;;  %v4644_v22 = vld [vmem:[%s14534_s10 + $0x18] sm:$0xff] }
 0x4d3   : > { %10438 = vmatpush3.msra.mxu0 %v3996_v53  ;;  %10439 = vmatprep.mubr.msk.f32.mxu0 %vm11980_vm1, %v11981_v32  ;;  %v4643_v53 = vld [vmem:[%s14534_s10 + $0x10] sm:$0xff] }
 0x4d4   : > { %10447 = vmatprep.subr.mxu0 %v11981_v32  ;;  %v11443_v25 = vpack.c.bf16 %v4644_v22, %v4643_v53  ;;  %v4872_v53 = vld [vmem:[%s14575_s21 + $0x80] sm:$0xff] }
 0x4d5   : > { %v3552_v29 = vpop.f32.mrb[28].mxu1 }
 0x4d6   : > { %v10396_v30 = vpop.f32.mrb[29].mxu1  ;;  %10435 = vmatmul.mubr.msk.f32.vlgmr.msra.gmra.mrb[36].mxu1 %vm2705_vm2, %v3552_v29  ;;  %v4646_v29 = vld [vmem:[%s14534_s10 + $0x28] sm:$0xff] }
 0x4d7   : > { %10443 = vmatpush3.msra.mxu1 %v3997_v26  ;;  %10444 = vmatprep.mubr.msk.f32.mxu1 %vm11980_vm1, %v11981_v32  ;;  %v4645_v26 = vld [vmem:[%s14534_s10 + $0x20] sm:$0xff] }
 0x4d8   : > { %10452 = vmatprep.subr.mxu1 %v11981_v32  ;;  %v11446_v30 = vpack.c.bf16 %v4646_v29, %v4645_v26  ;;  %v4858_v29 = vld [vmem:[%s14575_s21 + $0x10] sm:$0xff] }
 0x4e1   : > { %v3625_v33 = vpop.f32.mrb[38].mxu0 }
 0x4e2   : > { %v10401_v34 = vpop.f32.mrb[39].mxu0  ;;  %10440 = vmatmul.mubr.msk.f32.vlgmr.msra.gmra.mrb[46].mxu0 %vm2705_vm2, %v3625_v33  ;;  %v4648_v33 = vld [vmem:[%s14534_s10 + $0x38] sm:$0xff] }
 0x4e3   : > { %10448 = vmatpush3.msra.mxu0 %v3998_v31  ;;  %10449 = vmatprep.mubr.msk.f32.mxu0 %vm11980_vm1, %v11981_v32  ;;  %v4647_v31 = vld [vmem:[%s14534_s10 + $0x30] sm:$0xff] }
 0x4e4   : > { %10457 = vmatprep.subr.mxu0 %v11981_v32  ;;  %v11449_v34 = vpack.c.bf16 %v4648_v33, %v4647_v31  ;;  %v4874_v31 = vld [vmem:[%s14575_s21 + $0x90] sm:$0xff] }
 0x4e5   : > { %v3698_v36 = vpop.f32.mrb[30].mxu1 }
 0x4e6   : > { %v10406_v37 = vpop.f32.mrb[31].mxu1  ;;  %10445 = vmatmul.mubr.msk.f32.vlgmr.msra.gmra.mrb[38].mxu1 %vm2705_vm2, %v3698_v36  ;;  %v4731_v36 = vld [vmem:[%s14536_s12 + $0x8] sm:$0xff] }
 0x4e7   : > { %10453 = vmatpush3.msra.mxu1 %v3999_v35  ;;  %10454 = vmatprep.mubr.msk.f32.mxu1 %vm11980_vm1, %v11981_v32  ;;  %v4730_v35 = vld [vmem:[%s14536_s12] sm:$0xff]  ;;  %v4732_v37 = vld [vmem:[%s14536_s12 + $0x10] sm:$0xff] }
 0x4e8   : > { %10462 = vmatprep.subr.mxu1 %v11981_v32 }
 0x4f1   : > { %v3844_v39 = vpop.f32.mrb[32].mxu1 }
 0x4f2   : > { %v3771_v41 = vpop.f32.mrb[40].mxu0  ;;  %v10416_v42 = vpop.f32.mrb[33].mxu1  ;;  %10455 = vmatmul.mubr.msk.f32.vlgmr.msra.gmra.mrb[40].mxu1 %vm2705_vm2, %v3844_v39  ;;  %v4733_v39 = vld [vmem:[%s14536_s12 + $0x18] sm:$0xff] }
 0x4f3   : > { %v10411_v43 = vpop.f32.mrb[41].mxu0  ;;  %10450 = vmatmul.mubr.msk.f32.vlgmr.msra.gmra.mrb[48].mxu0 %vm2705_vm2, %v3771_v41  ;;  %10463 = vmatpush3.msra.mxu1 %v4001_v38  ;;  %v11452_v38 = vpack.c.bf16 %v4731_v36, %v4730_v35  ;;  %v4734_v41 = vld [vmem:[%s14536_s12 + $0x20] sm:$0xff]  ;;  %v4735_v42 = vld [vmem:[%s14536_s12 + $0x28] sm:$0xff] }
 0x4f4   : > { %10458 = vmatpush3.msra.mxu0 %v4000_v40  ;;  %10459 = vmatprep.mubr.msk.f32.mxu0 %vm11980_vm1, %v11981_v32  ;;  %v11455_v40 = vpack.c.bf16 %v4733_v39, %v4732_v37  ;;  %v11458_v43 = vpack.c.bf16 %v4735_v42, %v4734_v41  ;;  %v4860_v36 = vld [vmem:[%s14575_s21 + $0x20] sm:$0xff]  ;;  %v4861_v37 = vld [vmem:[%s14575_s21 + $0x28] sm:$0xff]  ;;  %v4862_v42 = vld [vmem:[%s14575_s21 + $0x30] sm:$0xff] }
 0x4f5   : > { %10464 = vmatprep.mubr.msk.f32.mxu1 %vm11980_vm1, %v11981_v32  ;;  %11439 = vmatprep.subr.bf16.mxu0 %v11979_v12  ;;  %v11482_v39 = vpack.c.bf16 %v4861_v37, %v4860_v36  ;;  %v4884_v37 = vld [vmem:[%s14575_s21 + $0xe0] sm:$0xff] }
 0x4f6   : > { %11451 = vmatprep.subr.bf16.mxu1 %v11979_v12 }
 0x501   : > { %v3990_v44 = vpop.f32.mrb[34].mxu1 }
 0x502   : > { %v3917_v45 = vpop.f32.mrb[42].mxu0  ;;  %v10426_v46 = vpop.f32.mrb[35].mxu1  ;;  %10465 = vmatmul.mubr.msk.f32.vlgmr.msra.gmra.mrb[42].mxu1 %vm2705_vm2, %v3990_v44  ;;  %v4736_v44 = vld [vmem:[%s14536_s12 + $0x30] sm:$0xff] }
 0x503   : > { %v10421_v47 = vpop.f32.mrb[43].mxu0  ;;  %10460 = vmatmul.mubr.msk.f32.vlgmr.msra.gmra.mrb[50].mxu0 %vm2705_vm2, %v3917_v45  ;;  %10518 = vmatprep.mubr.msk.f32.mxu1 %vm11980_vm1, %v11981_v32  ;;  %v4737_v45 = vld [vmem:[%s14536_s12 + $0x38] sm:$0xff] }
 0x504   : > { %10483 = vmatprep.mubr.msk.f32.mxu0 %vm11980_vm1, %v11981_v32  ;;  %11453 = vmatpush3.bf16.msra.mxu1 %v11452_v38  ;;  %v11461_v46 = vpack.c.bf16 %v4737_v45, %v4736_v44  ;;  %v4738_v47 = vld [vmem:[%s14536_s12 + $0x40] sm:$0xff]  ;;  %v4878_v44 = vld [vmem:[%s14575_s21 + $0xb0] sm:$0xff] }
 0x505   : > { %11454 = vmatprep.subr.bf16.mxu1 %v11979_v12  ;;  %v4876_v38 = vld [vmem:[%s14575_s21 + $0xa0] sm:$0xff] }
 0x508   : > { %11456 = vmatpush3.bf16.msra.mxu1 %v11455_v40  ;;  %v4877_v40 = vld [vmem:[%s14575_s21 + $0xa8] sm:$0xff] }
 0x509   : > { %11457 = vmatprep.subr.bf16.mxu1 %v11979_v12  ;;  %v11506_v41 = vpack.c.bf16 %v4877_v40, %v4876_v38  ;;  %v4885_v38 = vld [vmem:[%s14575_s21 + $0xe8] sm:$0xff] }
 0x50a   : > { %v4909_v40 = vld [vmem:[%s14575_s21 + $0x1a8] sm:$0xff] }
 0x50c   : > { %11459 = vmatpush3.bf16.msra.mxu1 %v11458_v43  ;;  %v4863_v43 = vld [vmem:[%s14575_s21 + $0x38] sm:$0xff] }
 0x50d   : > { %11460 = vmatprep.subr.bf16.mxu1 %v11979_v12  ;;  %v11485_v45 = vpack.c.bf16 %v4863_v43, %v4862_v42  ;;  %v4886_v43 = vld [vmem:[%s14575_s21 + $0xf0] sm:$0xff] }
 0x510   : > { %11462 = vmatpush3.bf16.msra.mxu1 %v11461_v46  ;;  %v4879_v46 = vld [vmem:[%s14575_s21 + $0xb8] sm:$0xff] }
 0x511   : > { %11463 = vmatprep.subr.bf16.mxu1 %v11979_v12 }
 0x5a5   : > { %v4071_v48 = vpop.f32.mrb[44].mxu0 }
 0x5a6   : > { %v10431_v49 = vpop.f32.mrb[45].mxu0  ;;  %v4586_v51 = vsel %vm631_vm0, %v4071_v48, 0.0  ;;  %v4739_v48 = vld [vmem:[%s14536_s12 + $0x48] sm:$0xff] }
 0x5a7   : > { %v11464_v49 = vpack.c.bf16 %v4739_v48, %v4738_v47  ;;  %v11509_v47 = vpack.c.bf16 %v4879_v46, %v4878_v44  ;;  %v4887_v44 = vld [vmem:[%s14575_s21 + $0xf8] sm:$0xff] }
 0x5a8   : > { %v4911_v46 = vld [vmem:[%s14575_s21 + $0x1b8] sm:$0xff] }
 0x5a9   : > { %v4144_v50 = vpop.f32.mrb[36].mxu1  ;;  %11465 = vmatpush3.bf16.msra.mxu1 %v11464_v49 }
 0x5aa   : > { %v4587_v52 = vsel %vm631_vm0, %v4144_v50, 0.0  ;;  %v10436_v54 = vpop.f32.mrb[37].mxu1  ;;  %v4740_v50 = vld [vmem:[%s14536_s12 + $0x50] sm:$0xff]  ;;  %11466 = vmatprep.subr.bf16.mxu1 %v11979_v12 }
 0x5ab   : > { %v4588_v55 = vadd.f32 %v4587_v52, %v4586_v51  ;;  %v4741_v51 = vld [vmem:[%s14536_s12 + $0x58] sm:$0xff]  ;;  %v4742_v54 = vld [vmem:[%s14536_s12 + $0x60] sm:$0xff] }
 0x5ac   : > { %v11467_v52 = vpack.c.bf16 %v4741_v51, %v4740_v50 }
 0x5ae   : > { %11468 = vmatpush3.bf16.msra.mxu1 %v11467_v52 }
 0x5af   : > { %11469 = vmatprep.subr.bf16.mxu1 %v11979_v12 }
 0x5b5   : > { %v4217_v56 = vpop.f32.mrb[46].mxu0 }
 0x5b6   : > { %v4589_v57 = vsel %vm631_vm0, %v4217_v56, 0.0  ;;  %v10441_v58 = vpop.f32.mrb[47].mxu0 }
 0x5b7   : > { %v4590_v59 = vadd.f32 %v4589_v57, %v4588_v55  ;;  %v4743_v55 = vld [vmem:[%s14536_s12 + $0x68] sm:$0xff] }
 0x5b8   : > { %v11470_v56 = vpack.c.bf16 %v4743_v55, %v4742_v54 }
 0x5b9   : > { %v4290_v60 = vpop.f32.mrb[38].mxu1 }
 0x5ba   : > { %v4591_v20 = vsel %vm631_vm0, %v4290_v60, 0.0  ;;  %v10446_v61 = vpop.f32.mrb[39].mxu1  ;;  %11471 = vmatpush3.bf16.msra.mxu1 %v11470_v56 }
 0x5bb   : > { %v4592_v62 = vadd.f32 %v4591_v20, %v4590_v59  ;;  %11472 = vmatprep.subr.bf16.mxu1 %v11979_v12 }
 0x5c5   : > { %v4436_v63 = vpop.f32.mrb[40].mxu1 }
 0x5c6   : > { %v4363_v0 = vpop.f32.mrb[48].mxu0  ;;  %v10456_v21 = vpop.f32.mrb[41].mxu1  ;;  %v4595_v5 = vsel %vm631_vm0, %v4436_v63, 0.0 }
 0x5c7   : > { %v4593_v1 = vsel %vm631_vm0, %v4363_v0, 0.0  ;;  %v10451_v2 = vpop.f32.mrb[49].mxu0  ;;  %v9212_v21 = vld [vmem:[%s14540_s16] ss:$0 sm:$0xff] }
 0x5c8   : > { %v4594_v4 = vadd.f32 %v4593_v1, %v4592_v62  ;;  %v9213_v2 = vld [vmem:[%s14541_s17] ss:$0 sm:$0xff] }
 0x5ca   : > { %v4596_v6 = vadd.f32 %v4595_v5, %v4594_v4 }
 0x5d5   : > { %v4582_v23 = vpop.f32.mrb[42].mxu1 }
 0x5d6   : > { %v4509_v7 = vpop.f32.mrb[50].mxu0  ;;  %v10466_v24 = vpop.f32.mrb[43].mxu1  ;;  %v4599_v11 = vsel %vm631_vm0, %v4582_v23, 0.0  ;;  %v4745_v23 = vld [vmem:[%s14536_s12 + $0x78] sm:$0xff] }
 0x5d7   : > { %v4597_v8 = vsel %vm631_vm0, %v4509_v7, 0.0  ;;  %v10461_v9 = vpop.f32.mrb[51].mxu0  ;;  %v9214_v24 = vld [vmem:[%s14535_s11] ss:$0 sm:$0xff] }
 0x5d8   : > { %v4598_v10 = vadd.f32 %v4597_v8, %v4596_v6  ;;  %v4744_v6 = vld [vmem:[%s14536_s12 + $0x70] sm:$0xff] }
 0x5d9   : > { %v11473_v7 = vpack.c.bf16 %v4745_v23, %v4744_v6  ;;  %v4890_v6 = vld [vmem:[%s14575_s21 + $0x110] sm:$0xff]  ;;  %v4891_v23 = vld [vmem:[%s14575_s21 + $0x118] sm:$0xff] }
 0x5da   : > { %v4600_v13 = vadd.f32 %v4599_v11, %v4598_v10 }
 0x5db   : > { %11474 = vmatpush3.bf16.msra.mxu1 %v11473_v7 }
 0x5dc   : > { %v4601_v15 = vadd.f32 %v4600_v13, %v12144_v3  ;;  %v4642_v3 = vld [vmem:[%s14534_s10 + $0x8] sm:$0xff]  ;;  %11499 = vmatprep.subr.bf16.mxu1 %v11979_v12 }
 0x5dd   : > { %v11440_v19 = vpack.c.bf16 %v4642_v3, %v4641_v18 }
 0x5de   : > { %v13202_v27 = vadd.f32 %v9211_v14, %v4601_v15  ;;  %v9216_v14 = vld [vmem:[%s14537_s13] ss:$0 sm:$0xff] }
 0x5df   : > { %11441 = vmatpush3.bf16.msra.mxu0 %v11440_v19  ;;  %v4856_v19 = vld [vmem:[%s14575_s21] sm:$0xff] }
 0x5e0   : > { %v4612_v28 = vsel %vm631_vm0, %v13202_v27, 0.0  ;;  %v4616_v16 = vmul.f32 %v13202_v27, %v13202_v27  ;;  %11442 = vmatprep.subr.bf16.mxu0 %v11979_v12 }
 0x5e1   : > { %4613 = vadd.xlane.f32.xlu0 %v4612_v28 }
 0x5e2   : > { %v4617_v17 = vsel %vm631_vm0, %v4616_v16, 0.0 }
 0x5e3   : > { %4618 = vadd.xlane.f32.xlu1 %v4617_v17  ;;  %11444 = vmatpush3.bf16.msra.mxu0 %v11443_v25  ;;  %v4873_v25 = vld [vmem:[%s14575_s21 + $0x88] sm:$0xff] }
 0x5e4   : > { %11445 = vmatprep.subr.bf16.mxu0 %v11979_v12  ;;  %v11500_v26 = vpack.c.bf16 %v4873_v25, %v4872_v53  ;;  %v4881_v53 = vld [vmem:[%s14575_s21 + $0xc8] sm:$0xff] }
 0x5e5   : > { %v4905_v25 = vld [vmem:[%s14575_s21 + $0x188] sm:$0xff] }
 0x5e7   : > { %11447 = vmatpush3.bf16.msra.mxu0 %v11446_v30  ;;  %v4859_v30 = vld [vmem:[%s14575_s21 + $0x18] sm:$0xff] }
 0x5e8   : > { %11448 = vmatprep.subr.bf16.mxu0 %v11979_v12  ;;  %v11479_v33 = vpack.c.bf16 %v4859_v30, %v4858_v29  ;;  %v4882_v30 = vld [vmem:[%s14575_s21 + $0xd0] sm:$0xff] }
 0x5eb   : > { %11450 = vmatpush3.bf16.msra.mxu0 %v11449_v34  ;;  %v4875_v34 = vld [vmem:[%s14575_s21 + $0x98] sm:$0xff] }
 0x5ec   : > { %11475 = vmatprep.subr.bf16.mxu0 %v11979_v12  ;;  %v11503_v35 = vpack.c.bf16 %v4875_v34, %v4874_v31  ;;  %v4883_v31 = vld [vmem:[%s14575_s21 + $0xd8] sm:$0xff] }
 0x5ed   : > { %v4907_v34 = vld [vmem:[%s14575_s21 + $0x198] sm:$0xff] }
 0x66e   : > { %v4614_v57 = vpop.xlane.xlu0 %4613 }
 0x66f   : > { %v4615_v58 = vmul.f32 0.015625, %v4614_v57 }
 0x670   : > { %v4619_v59 = vpop.xlane.xlu1 %4618 }
 0x671   : > { %v4621_v60 = vmul.f32 %v4615_v58, %v4615_v58  ;;  %v4620_v20 = vmul.f32 0.015625, %v4619_v59  ;;  %v4623_v63 = vsub.f32 %v13202_v27, %v4615_v58  ;;  %v9217_v58 = vld [vmem:[%s14538_s14] ss:$0 sm:$0xff] }
 0x672   : > { %v4864_v59 = vld [vmem:[%s14575_s21 + $0x40] sm:$0xff] }
 0x673   : > { %v4622_v61 = vsub.f32 %v4620_v20, %v4621_v60  ;;  %v4865_v20 = vld [vmem:[%s14575_s21 + $0x48] sm:$0xff] }
 0x675   : > { %v4624_v62 = vadd.f32 1e-05, %v4622_v61  ;;  %v4888_v61 = vld [vmem:[%s14575_s21 + $0x100] sm:$0xff] }
 0x677   : > { %11875 = vrsqrt.f32 %v4624_v62  ;;  %v4889_v62 = vld [vmem:[%s14575_s21 + $0x108] sm:$0xff] }
 0x681   : > { %v11876_v0 = vpop.eup %11875 }
 0x682   : > { %v4626_v1 = vmul.f32 %v11876_v0, %v4623_v63  ;;  %v9218_v63 = vld [vmem:[%s14539_s15] ss:$0 sm:$0xff] }
 0x684   : > { %v4633_v4 = vmul.f32 %v9212_v21, %v4626_v1  ;;  %v11488_v21 = vpack.c.bf16 %v4865_v20, %v4864_v59  ;;  %v11524_v1 = vpack.c.bf16 %v4889_v62, %v4888_v61  ;;  %v5542_v59 = vld [vmem:[%s14576_s3 + $0x18] sm:$0xff]  ;;  %v4900_v61 = vld [vmem:[%s14575_s21 + $0x160] sm:$0xff]  ;;  %v4901_v62 = vld [vmem:[%s14575_s21 + $0x168] sm:$0xff] }
 0x686   : > { %v4640_v5 = vadd.f32 %v9213_v2, %v4633_v4  ;;  %v4866_v2 = vld [vmem:[%s14575_s21 + $0x50] sm:$0xff] }
 0x688   : > { %10484 = vmatmul.mubr.msk.f32.vlgmr.msra.gmra.mrb[52].mxu0 %vm631_vm0, %v4640_v5  ;;  %v4867_v5 = vld [vmem:[%s14575_s21 + $0x58] sm:$0xff] }
 0x689   : > { %10537 = vmatprep.mubr.msk.f32.mxu0 %vm11980_vm1, %v11981_v32  ;;  %v11491_v7 = vpack.c.bf16 %v4867_v5, %v4866_v2  ;;  %v4902_v2 = vld [vmem:[%s14575_s21 + $0x170] sm:$0xff]  ;;  %v4903_v5 = vld [vmem:[%s14575_s21 + $0x178] sm:$0xff] }
 0x75b   : > { %v4725_v8 = vpop.f32.mrb[52].mxu0 }
 0x75c   : > { %v4726_v9 = vadd.f32 %v9214_v24, %v4725_v8  ;;  %v10485_v10 = vpop.f32.mrb[53].mxu0  ;;  %v11527_v24 = vpack.c.bf16 %v4891_v23, %v4890_v6  ;;  %v4868_v8 = vld [vmem:[%s14575_s21 + $0x60] sm:$0xff]  ;;  %v5545_v6 = vld [vmem:[%s14576_s3 + $0x30] sm:$0xff]  ;;  %v5546_v23 = vld [vmem:[%s14576_s3 + $0x38] sm:$0xff] }
 0x75d   : > { %v4892_v10 = vld [vmem:[%s14575_s21 + $0x120] sm:$0xff] }
 0x75e   : > { %v4729_v11 = vmax.f32 %v4726_v9, 0.0  ;;  %v4869_v9 = vld [vmem:[%s14575_s21 + $0x68] sm:$0xff] }
 0x760   : > { %10519 = vmatmul.mubr.f32.vlgmr.msra.gmra.mrb[44].mxu1 %v4729_v11  ;;  %v4893_v11 = vld [vmem:[%s14575_s21 + $0x128] sm:$0xff] }
 0x761   : > { %10575 = vmatprep.mubr.msk.f32.mxu1 %vm11980_vm1, %v11981_v32  ;;  %11501 = vmatpush3.bf16.msra.mxu1 %v11500_v26 }
 0x762   : > { %11502 = vmatprep.subr.bf16.mxu1 %v11979_v12 }
 0x765   : > { %11504 = vmatpush3.bf16.msra.mxu1 %v11503_v35  ;;  %v11515_v35 = vpack.c.bf16 %v4883_v31, %v4882_v30  ;;  %v4918_v30 = vld [vmem:[%s14575_s21 + $0x1f0] sm:$0xff]  ;;  %v4919_v31 = vld [vmem:[%s14575_s21 + $0x1f8] sm:$0xff] }
 0x766   : > { %11505 = vmatprep.subr.bf16.mxu1 %v11979_v12 }
 0x769   : > { %11507 = vmatpush3.bf16.msra.mxu1 %v11506_v41  ;;  %v11518_v41 = vpack.c.bf16 %v4885_v38, %v4884_v37  ;;  %v5547_v37 = vld [vmem:[%s14576_s3 + $0x40] sm:$0xff]  ;;  %v5548_v38 = vld [vmem:[%s14576_s3 + $0x48] sm:$0xff] }
 0x76a   : > { %11508 = vmatprep.subr.bf16.mxu1 %v11979_v12 }
 0x76d   : > { %11510 = vmatpush3.bf16.msra.mxu1 %v11509_v47  ;;  %v11521_v47 = vpack.c.bf16 %v4887_v44, %v4886_v43  ;;  %v5549_v43 = vld [vmem:[%s14576_s3 + $0x50] sm:$0xff]  ;;  %v5550_v44 = vld [vmem:[%s14576_s3 + $0x58] sm:$0xff] }
 0x76e   : > { %11523 = vmatprep.subr.bf16.mxu1 %v11979_v12 }
 0x833   : > { %v4812_v13 = vpop.f32.mrb[44].mxu1 }
 0x834   : > { %v4816_v15 = vadd.f32 %v4812_v13, %v13202_v27  ;;  %v10520_v28 = vpop.f32.mrb[45].mxu1  ;;  %v4857_v27 = vld [vmem:[%s14575_s21 + $0x8] sm:$0xff]  ;;  %v11494_v13 = vpack.c.bf16 %v4869_v9, %v4868_v8  ;;  %v4912_v8 = vld [vmem:[%s14575_s21 + $0x1c0] sm:$0xff] }
 0x835   : > { %v11476_v22 = vpack.c.bf16 %v4857_v27, %v4856_v19  ;;  %v4871_v28 = vld [vmem:[%s14575_s21 + $0x78] sm:$0xff]  ;;  %v4880_v27 = vld [vmem:[%s14575_s21 + $0xc0] sm:$0xff]  ;;  %v4913_v9 = vld [vmem:[%s14575_s21 + $0x1c8] sm:$0xff] }
 0x836   : > { %v13312_v16 = vadd.f32 %v9216_v14, %v4816_v15  ;;  %v11530_v14 = vpack.c.bf16 %v4893_v11, %v4892_v10  ;;  %v4870_v15 = vld [vmem:[%s14575_s21 + $0x70] sm:$0xff]  ;;  %v11512_v26 = vpack.c.bf16 %v4881_v53, %v4880_v27  ;;  %v5555_v10 = vld [vmem:[%s14576_s3 + $0x80] sm:$0xff]  ;;  %v5556_v11 = vld [vmem:[%s14576_s3 + $0x88] sm:$0xff] }
 0x837   : > { %11477 = vmatpush3.bf16.msra.mxu0 %v11476_v22  ;;  %v4904_v22 = vld [vmem:[%s14575_s21 + $0x180] sm:$0xff]  ;;  %v4917_v53 = vld [vmem:[%s14575_s21 + $0x1e8] sm:$0xff] }
 0x838   : > { %v4827_v17 = vsel %vm631_vm0, %v13312_v16, 0.0  ;;  %v4831_v18 = vmul.f32 %v13312_v16, %v13312_v16  ;;  %11478 = vmatprep.subr.bf16.mxu0 %v11979_v12  ;;  %v11548_v29 = vpack.c.bf16 %v4905_v25, %v4904_v22  ;;  %v4916_v27 = vld [vmem:[%s14575_s21 + $0x1e0] sm:$0xff]  ;;  %v5560_v25 = vld [vmem:[%s14576_s3 + $0xa8] sm:$0xff] }
 0x839   : > { %4828 = vadd.xlane.f32.xlu0 %v4827_v17  ;;  %v4894_v17 = vld [vmem:[%s14575_s21 + $0x130] sm:$0xff]  ;;  %v5559_v22 = vld [vmem:[%s14576_s3 + $0xa0] sm:$0xff] }
 0x83a   : > { %v4832_v3 = vsel %vm631_vm0, %v4831_v18, 0.0  ;;  %v4895_v18 = vld [vmem:[%s14575_s21 + $0x138] sm:$0xff] }
 0x83b   : > { %4833 = vadd.xlane.f32.xlu1 %v4832_v3  ;;  %11480 = vmatpush3.bf16.msra.mxu0 %v11479_v33  ;;  %v11497_v3 = vpack.c.bf16 %v4871_v28, %v4870_v15  ;;  %v11533_v19 = vpack.c.bf16 %v4895_v18, %v4894_v17  ;;  %v4906_v33 = vld [vmem:[%s14575_s21 + $0x190] sm:$0xff]  ;;  %v4915_v28 = vld [vmem:[%s14575_s21 + $0x1d8] sm:$0xff] }
 0x83c   : > { %11481 = vmatprep.subr.bf16.mxu0 %v11979_v12  ;;  %v11551_v36 = vpack.c.bf16 %v4907_v34, %v4906_v33  ;;  %v4914_v15 = vld [vmem:[%s14575_s21 + $0x1d0] sm:$0xff]  ;;  %v5558_v18 = vld [vmem:[%s14576_s3 + $0x98] sm:$0xff] }
 0x83d   : > { %v5557_v17 = vld [vmem:[%s14576_s3 + $0x90] sm:$0xff]  ;;  %v5562_v34 = vld [vmem:[%s14576_s3 + $0xb8] sm:$0xff] }
 0x83e   : > { %v5561_v33 = vld [vmem:[%s14576_s3 + $0xb0] sm:$0xff] }
 0x83f   : > { %11483 = vmatpush3.bf16.msra.mxu0 %v11482_v39  ;;  %v4908_v39 = vld [vmem:[%s14575_s21 + $0x1a0] sm:$0xff] }
 0x840   : > { %11484 = vmatprep.subr.bf16.mxu0 %v11979_v12  ;;  %v11554_v42 = vpack.c.bf16 %v4909_v40, %v4908_v39  ;;  %v5571_v39 = vld [vmem:[%s14576_s3 + $0x100] sm:$0xff]  ;;  %v5572_v40 = vld [vmem:[%s14576_s3 + $0x108] sm:$0xff] }
 0x843   : > { %11486 = vmatpush3.bf16.msra.mxu0 %v11485_v45  ;;  %v4910_v45 = vld [vmem:[%s14575_s21 + $0x1b0] sm:$0xff] }
 0x844   : > { %11487 = vmatprep.subr.bf16.mxu0 %v11979_v12 }
 0x8c6   : > { %v4829_v48 = vpop.xlane.xlu0 %4828 }
 0x8c7   : > { %v4830_v49 = vmul.f32 0.015625, %v4829_v48  ;;  %v11557_v48 = vpack.c.bf16 %v4911_v46, %v4910_v45  ;;  %v5573_v45 = vld [vmem:[%s14576_s3 + $0x110] sm:$0xff]  ;;  %v5574_v46 = vld [vmem:[%s14576_s3 + $0x118] sm:$0xff] }
 0x8c8   : > { %v4834_v50 = vpop.xlane.xlu1 %4833 }
 0x8c9   : > { %v4836_v51 = vmul.f32 %v4830_v49, %v4830_v49  ;;  %v4835_v52 = vmul.f32 0.015625, %v4834_v50  ;;  %v4838_v56 = vsub.f32 %v13312_v16, %v4830_v49  ;;  %v4896_v49 = vld [vmem:[%s14575_s21 + $0x140] sm:$0xff]  ;;  %v4897_v50 = vld [vmem:[%s14575_s21 + $0x148] sm:$0xff] }
 0x8cb   : > { %v4837_v54 = vsub.f32 %v4835_v52, %v4836_v51  ;;  %v5539_v51 = vld [vmem:[%s14576_s3] sm:$0xff]  ;;  %v5540_v52 = vld [vmem:[%s14576_s3 + $0x8] sm:$0xff] }
 0x8cd   : > { %v4839_v55 = vadd.f32 1e-05, %v4837_v54  ;;  %v11536_v54 = vpack.c.bf16 %v4897_v50, %v4896_v49  ;;  %v5551_v49 = vld [vmem:[%s14576_s3 + $0x60] sm:$0xff]  ;;  %v5552_v50 = vld [vmem:[%s14576_s3 + $0x68] sm:$0xff] }
 0x8cf   : > { %11877 = vrsqrt.f32 %v4839_v55  ;;  %v11572_v55 = vpack.c.bf16 %v5540_v52, %v5539_v51  ;;  %v5575_v51 = vld [vmem:[%s14576_s3 + $0x120] sm:$0xff]  ;;  %v5576_v52 = vld [vmem:[%s14576_s3 + $0x128] sm:$0xff] }
 0x8d9   : > { %v11878_v57 = vpop.eup %11877 }
 0x8da   : > { %v4841_v60 = vmul.f32 %v11878_v57, %v4838_v56  ;;  %v4898_v56 = vld [vmem:[%s14575_s21 + $0x150] sm:$0xff]  ;;  %v4899_v57 = vld [vmem:[%s14575_s21 + $0x158] sm:$0xff] }
 0x8dc   : > { %v4848_v0 = vmul.f32 %v9217_v58, %v4841_v60  ;;  %v5541_v58 = vld [vmem:[%s14576_s3 + $0x10] sm:$0xff]  ;;  %v11539_v60 = vpack.c.bf16 %v4899_v57, %v4898_v56  ;;  %v5554_v57 = vld [vmem:[%s14576_s3 + $0x78] sm:$0xff] }
 0x8dd   : > { %v11575_v20 = vpack.c.bf16 %v5542_v59, %v5541_v58  ;;  %v5553_v56 = vld [vmem:[%s14576_s3 + $0x70] sm:$0xff]  ;;  %v5578_v59 = vld [vmem:[%s14576_s3 + $0x138] sm:$0xff] }
 0x8de   : > { %v13397_v4 = vadd.f32 %v9218_v63, %v4848_v0  ;;  %v5543_v63 = vld [vmem:[%s14576_s3 + $0x20] sm:$0xff]  ;;  %v5544_v0 = vld [vmem:[%s14576_s3 + $0x28] sm:$0xff]  ;;  %v5577_v58 = vld [vmem:[%s14576_s3 + $0x130] sm:$0xff] }
 0x8e0   : > { %10538 = vmatmul.mubr.msk.f32.vlgmr.msra.gmra.mrb[54].mxu0 %vm631_vm0, %v13397_v4  ;;  %10576 = vmatmul.mubr.msk.f32.vlgmr.msra.gmra.mrb[46].mxu1 %vm631_vm0, %v13397_v4 }
 0x8e1   : > { %11489 = vmatpush3.bf16.msra.mxu0 %v11488_v21  ;;  %11525 = vmatpush3.bf16.msra.mxu1 %v11524_v1  ;;  %v11542_v21 = vpack.c.bf16 %v4901_v62, %v4900_v61  ;;  %v11578_v1 = vpack.c.bf16 %v5544_v0, %v5543_v63  ;;  %v5563_v61 = vld [vmem:[%s14576_s3 + $0xc0] sm:$0xff]  ;;  %v5564_v62 = vld [vmem:[%s14576_s3 + $0xc8] sm:$0xff] }
 0x8e2   : > { %11490 = vmatprep.subr.bf16.mxu0 %v11979_v12  ;;  %11526 = vmatprep.subr.bf16.mxu1 %v11979_v12  ;;  %v5587_v63 = vld [vmem:[%s14576_s3 + $0x180] sm:$0xff]  ;;  %v5588_v0 = vld [vmem:[%s14576_s3 + $0x188] sm:$0xff] }
 0x8e3   : > { %10556 = vmatprep.mubr.msk.f32.mxu0 %vm11980_vm1, %v11981_v32  ;;  %10613 = vmatprep.mubr.msk.f32.mxu1 %vm11980_vm1, %v11981_v32 }
 0x8e5   : > { %11492 = vmatpush3.bf16.msra.mxu0 %v11491_v7  ;;  %11528 = vmatpush3.bf16.msra.mxu1 %v11527_v24  ;;  %v11545_v7 = vpack.c.bf16 %v4903_v5, %v4902_v2  ;;  %v11581_v24 = vpack.c.bf16 %v5546_v23, %v5545_v6  ;;  %v5565_v2 = vld [vmem:[%s14576_s3 + $0xd0] sm:$0xff]  ;;  %v5566_v5 = vld [vmem:[%s14576_s3 + $0xd8] sm:$0xff] }
 0x8e6   : > { %11493 = vmatprep.subr.bf16.mxu0 %v11979_v12  ;;  %11529 = vmatprep.subr.bf16.mxu1 %v11979_v12  ;;  %v5589_v6 = vld [vmem:[%s14576_s3 + $0x190] sm:$0xff]  ;;  %v5590_v23 = vld [vmem:[%s14576_s3 + $0x198] sm:$0xff] }
 0x8e9   : > { %11495 = vmatpush3.bf16.msra.mxu0 %v11494_v13  ;;  %11531 = vmatpush3.bf16.msra.mxu1 %v11530_v14  ;;  %v11560_v13 = vpack.c.bf16 %v4913_v9, %v4912_v8  ;;  %v11596_v14 = vpack.c.bf16 %v5556_v11, %v5555_v10  ;;  %v5567_v8 = vld [vmem:[%s14576_s3 + $0xe0] sm:$0xff]  ;;  %v5568_v9 = vld [vmem:[%s14576_s3 + $0xe8] sm:$0xff] }
 0x8ea   : > { %11496 = vmatprep.subr.bf16.mxu0 %v11979_v12  ;;  %11532 = vmatprep.subr.bf16.mxu1 %v11979_v12  ;;  %v5591_v10 = vld [vmem:[%s14576_s3 + $0x1a0] sm:$0xff]  ;;  %v5592_v11 = vld [vmem:[%s14576_s3 + $0x1a8] sm:$0xff] }
 0x8ed   : > { %11498 = vmatpush3.bf16.msra.mxu0 %v11497_v3  ;;  %11534 = vmatpush3.bf16.msra.mxu1 %v11533_v19  ;;  %v11563_v3 = vpack.c.bf16 %v4915_v28, %v4914_v15  ;;  %v11599_v19 = vpack.c.bf16 %v5558_v18, %v5557_v17  ;;  %v5569_v15 = vld [vmem:[%s14576_s3 + $0xf0] sm:$0xff]  ;;  %v5570_v28 = vld [vmem:[%s14576_s3 + $0xf8] sm:$0xff] }
 0x8ee   : > { %11511 = vmatprep.subr.bf16.mxu0 %v11979_v12  ;;  %11547 = vmatprep.subr.bf16.mxu1 %v11979_v12  ;;  %v5593_v17 = vld [vmem:[%s14576_s3 + $0x1b0] sm:$0xff]  ;;  %v5594_v18 = vld [vmem:[%s14576_s3 + $0x1b8] sm:$0xff] }
 0x8f0   : > { %10557 = vmatmul.mubr.msk.f32.vlgmr.msra.gmra.mrb[56].mxu0 %vm631_vm0, %v13397_v4  ;;  %10614 = vmatmul.mubr.msk.f32.vlgmr.msra.gmra.mrb[48].mxu1 %vm631_vm0, %v13397_v4 }
 0x8f1   : > { %11513 = vmatpush3.bf16.msra.mxu0 %v11512_v26  ;;  %11549 = vmatpush3.bf16.msra.mxu1 %v11548_v29  ;;  %v11566_v26 = vpack.c.bf16 %v4917_v53, %v4916_v27  ;;  %v11602_v29 = vpack.c.bf16 %v5560_v25, %v5559_v22  ;;  %v5579_v27 = vld [vmem:[%s14576_s3 + $0x140] sm:$0xff]  ;;  %v5580_v53 = vld [vmem:[%s14576_s3 + $0x148] sm:$0xff] }
 0x8f2   : > { %11514 = vmatprep.subr.bf16.mxu0 %v11979_v12  ;;  %11550 = vmatprep.subr.bf16.mxu1 %v11979_v12  ;;  %v6219_v22 = vld [vmem:[%s14530_s6] sm:$0xff]  ;;  %v6220_v25 = vld [vmem:[%s14530_s6 + $0x8] sm:$0xff] }
 0x8f3   : > { %10594 = vmatprep.mubr.msk.f32.mxu0 %vm11980_vm1, %v11981_v32  ;;  %10651 = vmatprep.mubr.msk.f32.mxu1 %vm11980_vm1, %v11981_v32 }
 0x8f5   : > { %11516 = vmatpush3.bf16.msra.mxu0 %v11515_v35  ;;  %11552 = vmatpush3.bf16.msra.mxu1 %v11551_v36  ;;  %v11569_v35 = vpack.c.bf16 %v4919_v31, %v4918_v30  ;;  %v11605_v36 = vpack.c.bf16 %v5562_v34, %v5561_v33  ;;  %v5581_v30 = vld [vmem:[%s14576_s3 + $0x150] sm:$0xff]  ;;  %v5582_v31 = vld [vmem:[%s14576_s3 + $0x158] sm:$0xff] }
 0x8f6   : > { %11517 = vmatprep.subr.bf16.mxu0 %v11979_v12  ;;  %11553 = vmatprep.subr.bf16.mxu1 %v11979_v12  ;;  %v6221_v33 = vld [vmem:[%s14530_s6 + $0x10] sm:$0xff]  ;;  %v6222_v34 = vld [vmem:[%s14530_s6 + $0x18] sm:$0xff] }
 0x8f9   : > { %11519 = vmatpush3.bf16.msra.mxu0 %v11518_v41  ;;  %11555 = vmatpush3.bf16.msra.mxu1 %v11554_v42  ;;  %v11584_v41 = vpack.c.bf16 %v5548_v38, %v5547_v37  ;;  %v11620_v42 = vpack.c.bf16 %v5572_v40, %v5571_v39  ;;  %v5583_v37 = vld [vmem:[%s14576_s3 + $0x160] sm:$0xff]  ;;  %v5584_v38 = vld [vmem:[%s14576_s3 + $0x168] sm:$0xff] }
 0x8fa   : > { %11520 = vmatprep.subr.bf16.mxu0 %v11979_v12  ;;  %11556 = vmatprep.subr.bf16.mxu1 %v11979_v12  ;;  %v6223_v39 = vld [vmem:[%s14530_s6 + $0x20] sm:$0xff]  ;;  %v6224_v40 = vld [vmem:[%s14530_s6 + $0x28] sm:$0xff] }
 0x8fd   : > { %11522 = vmatpush3.bf16.msra.mxu0 %v11521_v47  ;;  %11558 = vmatpush3.bf16.msra.mxu1 %v11557_v48  ;;  %v11587_v47 = vpack.c.bf16 %v5550_v44, %v5549_v43  ;;  %v11623_v48 = vpack.c.bf16 %v5574_v46, %v5573_v45  ;;  %v5585_v43 = vld [vmem:[%s14576_s3 + $0x170] sm:$0xff]  ;;  %v5586_v44 = vld [vmem:[%s14576_s3 + $0x178] sm:$0xff] }
 0x8fe   : > { %11535 = vmatprep.subr.bf16.mxu0 %v11979_v12  ;;  %11571 = vmatprep.subr.bf16.mxu1 %v11979_v12  ;;  %v6225_v45 = vld [vmem:[%s14530_s6 + $0x30] sm:$0xff]  ;;  %v6226_v46 = vld [vmem:[%s14530_s6 + $0x38] sm:$0xff] }
 0x900   : > { %10595 = vmatmul.mubr.msk.f32.vlgmr.msra.gmra.mrb[58].mxu0 %vm631_vm0, %v13397_v4  ;;  %10652 = vmatmul.mubr.msk.f32.vlgmr.msra.gmra.mrb[50].mxu1 %vm631_vm0, %v13397_v4 }
 0x901   : > { %11537 = vmatpush3.bf16.msra.mxu0 %v11536_v54  ;;  %11573 = vmatpush3.bf16.msra.mxu1 %v11572_v55  ;;  %v11590_v54 = vpack.c.bf16 %v5552_v50, %v5551_v49  ;;  %v11626_v55 = vpack.c.bf16 %v5576_v52, %v5575_v51  ;;  %v5595_v49 = vld [vmem:[%s14576_s3 + $0x1c0] sm:$0xff]  ;;  %v5596_v50 = vld [vmem:[%s14576_s3 + $0x1c8] sm:$0xff] }
 0x902   : > { %11538 = vmatprep.subr.bf16.mxu0 %v11979_v12  ;;  %11574 = vmatprep.subr.bf16.mxu1 %v11979_v12  ;;  %v6235_v51 = vld [vmem:[%s14530_s6 + $0x80] sm:$0xff]  ;;  %v6236_v52 = vld [vmem:[%s14530_s6 + $0x88] sm:$0xff] }
 0x903   : > { %10632 = vmatprep.mubr.msk.f32.mxu0 %vm11980_vm1, %v11981_v32  ;;  %10689 = vmatprep.mubr.msk.f32.mxu1 %vm11980_vm1, %v11981_v32 }
 0x905   : > { %11540 = vmatpush3.bf16.msra.mxu0 %v11539_v60  ;;  %11576 = vmatpush3.bf16.msra.mxu1 %v11575_v20  ;;  %v11593_v60 = vpack.c.bf16 %v5554_v57, %v5553_v56  ;;  %v11629_v20 = vpack.c.bf16 %v5578_v59, %v5577_v58  ;;  %v5597_v56 = vld [vmem:[%s14576_s3 + $0x1d0] sm:$0xff]  ;;  %v5598_v57 = vld [vmem:[%s14576_s3 + $0x1d8] sm:$0xff] }
 0x906   : > { %11541 = vmatprep.subr.bf16.mxu0 %v11979_v12  ;;  %11577 = vmatprep.subr.bf16.mxu1 %v11979_v12  ;;  %v6237_v58 = vld [vmem:[%s14530_s6 + $0x90] sm:$0xff]  ;;  %v6238_v59 = vld [vmem:[%s14530_s6 + $0x98] sm:$0xff] }
 0x909   : > { %11543 = vmatpush3.bf16.msra.mxu0 %v11542_v21  ;;  %11579 = vmatpush3.bf16.msra.mxu1 %v11578_v1  ;;  %v11608_v21 = vpack.c.bf16 %v5564_v62, %v5563_v61  ;;  %v11644_v1 = vpack.c.bf16 %v5588_v0, %v5587_v63  ;;  %v5599_v61 = vld [vmem:[%s14576_s3 + $0x1e0] sm:$0xff]  ;;  %v5600_v62 = vld [vmem:[%s14576_s3 + $0x1e8] sm:$0xff] }
 0x90a   : > { %11544 = vmatprep.subr.bf16.mxu0 %v11979_v12  ;;  %11580 = vmatprep.subr.bf16.mxu1 %v11979_v12  ;;  %v6239_v63 = vld [vmem:[%s14530_s6 + $0xa0] sm:$0xff]  ;;  %v6240_v0 = vld [vmem:[%s14530_s6 + $0xa8] sm:$0xff] }
 0x90d   : > { %11546 = vmatpush3.bf16.msra.mxu0 %v11545_v7  ;;  %11582 = vmatpush3.bf16.msra.mxu1 %v11581_v24  ;;  %v11611_v7 = vpack.c.bf16 %v5566_v5, %v5565_v2  ;;  %v11647_v24 = vpack.c.bf16 %v5590_v23, %v5589_v6  ;;  %v5601_v2 = vld [vmem:[%s14576_s3 + $0x1f0] sm:$0xff]  ;;  %v5602_v5 = vld [vmem:[%s14576_s3 + $0x1f8] sm:$0xff]  ;;  %s14580_s3 = sld [smem:[#allocation18_spill]] }
 0x90e   : > { %11559 = vmatprep.subr.bf16.mxu0 %v11979_v12  ;;  %11595 = vmatprep.subr.bf16.mxu1 %v11979_v12  ;;  %v6241_v6 = vld [vmem:[%s14530_s6 + $0xb0] sm:$0xff]  ;;  %v6242_v23 = vld [vmem:[%s14530_s6 + $0xb8] sm:$0xff] }
 0x910   : > { %10633 = vmatmul.mubr.msk.f32.vlgmr.msra.gmra.mrb[60].mxu0 %vm631_vm0, %v13397_v4  ;;  %10690 = vmatmul.mubr.msk.f32.vlgmr.msra.gmra.mrb[52].mxu1 %vm631_vm0, %v13397_v4 }
 0x911   : > { %11561 = vmatpush3.bf16.msra.mxu0 %v11560_v13  ;;  %11597 = vmatpush3.bf16.msra.mxu1 %v11596_v14  ;;  %v11614_v13 = vpack.c.bf16 %v5568_v9, %v5567_v8  ;;  %v11650_v14 = vpack.c.bf16 %v5592_v11, %v5591_v10  ;;  %v6227_v8 = vld [vmem:[%s14530_s6 + $0x40] sm:$0xff]  ;;  %v6228_v9 = vld [vmem:[%s14530_s6 + $0x48] sm:$0xff] }
 0x912   : > { %11562 = vmatprep.subr.bf16.mxu0 %v11979_v12  ;;  %11598 = vmatprep.subr.bf16.mxu1 %v11979_v12  ;;  %v6251_v10 = vld [vmem:[%s14530_s6 + $0x100] sm:$0xff]  ;;  %v6252_v11 = vld [vmem:[%s14530_s6 + $0x108] sm:$0xff] }
 0x913   : > { %10670 = vmatprep.mubr.msk.f32.mxu0 %vm11980_vm1, %v11981_v32  ;;  %10727 = vmatprep.mubr.msk.f32.mxu1 %vm11980_vm1, %v11981_v32 }
 0x915   : > { %11564 = vmatpush3.bf16.msra.mxu0 %v11563_v3  ;;  %11600 = vmatpush3.bf16.msra.mxu1 %v11599_v19  ;;  %v11617_v3 = vpack.c.bf16 %v5570_v28, %v5569_v15  ;;  %v11653_v19 = vpack.c.bf16 %v5594_v18, %v5593_v17  ;;  %v6229_v15 = vld [vmem:[%s14530_s6 + $0x50] sm:$0xff]  ;;  %v6230_v28 = vld [vmem:[%s14530_s6 + $0x58] sm:$0xff] }
 0x916   : > { %11565 = vmatprep.subr.bf16.mxu0 %v11979_v12  ;;  %11601 = vmatprep.subr.bf16.mxu1 %v11979_v12  ;;  %v6253_v17 = vld [vmem:[%s14530_s6 + $0x110] sm:$0xff]  ;;  %v6254_v18 = vld [vmem:[%s14530_s6 + $0x118] sm:$0xff] }
 0x919   : > { %11567 = vmatpush3.bf16.msra.mxu0 %v11566_v26  ;;  %11603 = vmatpush3.bf16.msra.mxu1 %v11602_v29  ;;  %v11632_v26 = vpack.c.bf16 %v5580_v53, %v5579_v27  ;;  %v11668_v29 = vpack.c.bf16 %v6220_v25, %v6219_v22  ;;  %v6231_v27 = vld [vmem:[%s14530_s6 + $0x60] sm:$0xff]  ;;  %v6232_v53 = vld [vmem:[%s14530_s6 + $0x68] sm:$0xff] }
 0x91a   : > { %11568 = vmatprep.subr.bf16.mxu0 %v11979_v12  ;;  %11604 = vmatprep.subr.bf16.mxu1 %v11979_v12  ;;  %v6255_v22 = vld [vmem:[%s14530_s6 + $0x120] sm:$0xff]  ;;  %v6256_v25 = vld [vmem:[%s14530_s6 + $0x128] sm:$0xff] }
 0x91d   : > { %11570 = vmatpush3.bf16.msra.mxu0 %v11569_v35  ;;  %11606 = vmatpush3.bf16.msra.mxu1 %v11605_v36  ;;  %v11635_v35 = vpack.c.bf16 %v5582_v31, %v5581_v30  ;;  %v11671_v36 = vpack.c.bf16 %v6222_v34, %v6221_v33  ;;  %v6233_v30 = vld [vmem:[%s14530_s6 + $0x70] sm:$0xff]  ;;  %v6234_v31 = vld [vmem:[%s14530_s6 + $0x78] sm:$0xff] }
 0x91e   : > { %11583 = vmatprep.subr.bf16.mxu0 %v11979_v12  ;;  %11619 = vmatprep.subr.bf16.mxu1 %v11979_v12  ;;  %v6257_v33 = vld [vmem:[%s14530_s6 + $0x130] sm:$0xff]  ;;  %v6258_v34 = vld [vmem:[%s14530_s6 + $0x138] sm:$0xff] }
 0x920   : > { %10671 = vmatmul.mubr.msk.f32.vlgmr.msra.gmra.mrb[62].mxu0 %vm631_vm0, %v13397_v4  ;;  %10728 = vmatmul.mubr.msk.f32.vlgmr.msra.gmra.mrb[54].mxu1 %vm631_vm0, %v13397_v4 }
 0x921   : > { %11585 = vmatpush3.bf16.msra.mxu0 %v11584_v41  ;;  %11621 = vmatpush3.bf16.msra.mxu1 %v11620_v42  ;;  %v11638_v41 = vpack.c.bf16 %v5584_v38, %v5583_v37  ;;  %v11674_v42 = vpack.c.bf16 %v6224_v40, %v6223_v39  ;;  %v6243_v37 = vld [vmem:[%s14530_s6 + $0xc0] sm:$0xff]  ;;  %v6244_v38 = vld [vmem:[%s14530_s6 + $0xc8] sm:$0xff] }
 0x922   : > { %11586 = vmatprep.subr.bf16.mxu0 %v11979_v12  ;;  %11622 = vmatprep.subr.bf16.mxu1 %v11979_v12  ;;  %v6267_v39 = vld [vmem:[%s14530_s6 + $0x180] sm:$0xff]  ;;  %v6268_v40 = vld [vmem:[%s14530_s6 + $0x188] sm:$0xff] }
 0x923   : > { %10708 = vmatprep.mubr.msk.f32.mxu0 %vm11980_vm1, %v11981_v32  ;;  %10765 = vmatprep.mubr.msk.f32.mxu1 %vm11980_vm1, %v11981_v32 }
 0x925   : > { %11588 = vmatpush3.bf16.msra.mxu0 %v11587_v47  ;;  %11624 = vmatpush3.bf16.msra.mxu1 %v11623_v48  ;;  %v11641_v47 = vpack.c.bf16 %v5586_v44, %v5585_v43  ;;  %v11677_v48 = vpack.c.bf16 %v6226_v46, %v6225_v45  ;;  %v6245_v43 = vld [vmem:[%s14530_s6 + $0xd0] sm:$0xff]  ;;  %v6246_v44 = vld [vmem:[%s14530_s6 + $0xd8] sm:$0xff] }
 0x926   : > { %11589 = vmatprep.subr.bf16.mxu0 %v11979_v12  ;;  %11625 = vmatprep.subr.bf16.mxu1 %v11979_v12  ;;  %v6269_v45 = vld [vmem:[%s14530_s6 + $0x190] sm:$0xff]  ;;  %v6270_v46 = vld [vmem:[%s14530_s6 + $0x198] sm:$0xff] }
 0x929   : > { %11591 = vmatpush3.bf16.msra.mxu0 %v11590_v54  ;;  %11627 = vmatpush3.bf16.msra.mxu1 %v11626_v55  ;;  %v11656_v54 = vpack.c.bf16 %v5596_v50, %v5595_v49  ;;  %v11692_v55 = vpack.c.bf16 %v6236_v52, %v6235_v51  ;;  %v6247_v49 = vld [vmem:[%s14530_s6 + $0xe0] sm:$0xff]  ;;  %v6248_v50 = vld [vmem:[%s14530_s6 + $0xe8] sm:$0xff] }
 0x92a   : > { %11592 = vmatprep.subr.bf16.mxu0 %v11979_v12  ;;  %11628 = vmatprep.subr.bf16.mxu1 %v11979_v12  ;;  %v6271_v51 = vld [vmem:[%s14530_s6 + $0x1a0] sm:$0xff]  ;;  %v6272_v52 = vld [vmem:[%s14530_s6 + $0x1a8] sm:$0xff] }
 0x92d   : > { %11594 = vmatpush3.bf16.msra.mxu0 %v11593_v60  ;;  %11630 = vmatpush3.bf16.msra.mxu1 %v11629_v20  ;;  %v11659_v60 = vpack.c.bf16 %v5598_v57, %v5597_v56  ;;  %v11695_v20 = vpack.c.bf16 %v6238_v59, %v6237_v58  ;;  %v6249_v56 = vld [vmem:[%s14530_s6 + $0xf0] sm:$0xff]  ;;  %v6250_v57 = vld [vmem:[%s14530_s6 + $0xf8] sm:$0xff] }
 0x92e   : > { %11607 = vmatprep.subr.bf16.mxu0 %v11979_v12  ;;  %11643 = vmatprep.subr.bf16.mxu1 %v11979_v12  ;;  %v6273_v58 = vld [vmem:[%s14530_s6 + $0x1b0] sm:$0xff]  ;;  %v6274_v59 = vld [vmem:[%s14530_s6 + $0x1b8] sm:$0xff] }
 0x930   : > { %10709 = vmatmul.mubr.msk.f32.vlgmr.msra.gmra.mrb[64].mxu0 %vm631_vm0, %v13397_v4  ;;  %10766 = vmatmul.mubr.msk.f32.vlgmr.msra.gmra.mrb[56].mxu1 %vm631_vm0, %v13397_v4 }
 0x931   : > { %11609 = vmatpush3.bf16.msra.mxu0 %v11608_v21  ;;  %11645 = vmatpush3.bf16.msra.mxu1 %v11644_v1  ;;  %v11662_v21 = vpack.c.bf16 %v5600_v62, %v5599_v61  ;;  %v11698_v1 = vpack.c.bf16 %v6240_v0, %v6239_v63  ;;  %v6259_v61 = vld [vmem:[%s14530_s6 + $0x140] sm:$0xff]  ;;  %v6260_v62 = vld [vmem:[%s14530_s6 + $0x148] sm:$0xff]  ;;  %v6261_v0 = vld [vmem:[%s14530_s6 + $0x150] sm:$0xff] }
 0x932   : > { %11610 = vmatprep.subr.bf16.mxu0 %v11979_v12  ;;  %11646 = vmatprep.subr.bf16.mxu1 %v11979_v12  ;;  %v11728_v63 = vpack.c.bf16 %v6260_v62, %v6259_v61  ;;  %v9221_v61 = vld [vmem:[%s14578_s0 + $0x2] ss:$0 sm:$0xff] }
 0x933   : > { %10746 = vmatprep.mubr.msk.f32.mxu0 %vm11980_vm1, %v11981_v32  ;;  %10803 = vmatprep.mubr.msk.f32.mxu1 %vm11980_vm1, %v11981_v32 }
 0x935   : > { %11612 = vmatpush3.bf16.msra.mxu0 %v11611_v7  ;;  %11648 = vmatpush3.bf16.msra.mxu1 %v11647_v24  ;;  %v11665_v7 = vpack.c.bf16 %v5602_v5, %v5601_v2  ;;  %v11701_v24 = vpack.c.bf16 %v6242_v23, %v6241_v6  ;;  %v6263_v2 = vld [vmem:[%s14530_s6 + $0x160] sm:$0xff]  ;;  %v6264_v5 = vld [vmem:[%s14530_s6 + $0x168] sm:$0xff]  ;;  %v6265_v23 = vld [vmem:[%s14530_s6 + $0x170] sm:$0xff] }
 0x936   : > { %11613 = vmatprep.subr.bf16.mxu0 %v11979_v12  ;;  %11649 = vmatprep.subr.bf16.mxu1 %v11979_v12  ;;  %v11734_v6 = vpack.c.bf16 %v6264_v5, %v6263_v2  ;;  %v9222_v5 = vld [vmem:[%s14578_s0 + $0x3] ss:$0 sm:$0xff] }
 0x939   : > { %11615 = vmatpush3.bf16.msra.mxu0 %v11614_v13  ;;  %11651 = vmatpush3.bf16.msra.mxu1 %v11650_v14  ;;  %v11680_v13 = vpack.c.bf16 %v6228_v9, %v6227_v8  ;;  %v11716_v14 = vpack.c.bf16 %v6252_v11, %v6251_v10  ;;  %v6275_v8 = vld [vmem:[%s14530_s6 + $0x1c0] sm:$0xff]  ;;  %v6276_v9 = vld [vmem:[%s14530_s6 + $0x1c8] sm:$0xff]  ;;  %v6277_v11 = vld [vmem:[%s14530_s6 + $0x1d0] sm:$0xff] }
 0x93a   : > { %11616 = vmatprep.subr.bf16.mxu0 %v11979_v12  ;;  %11652 = vmatprep.subr.bf16.mxu1 %v11979_v12  ;;  %v11752_v10 = vpack.c.bf16 %v6276_v9, %v6275_v8 }
 0x93d   : > { %11618 = vmatpush3.bf16.msra.mxu0 %v11617_v3  ;;  %11654 = vmatpush3.bf16.msra.mxu1 %v11653_v19  ;;  %v11683_v3 = vpack.c.bf16 %v6230_v28, %v6229_v15  ;;  %v11719_v19 = vpack.c.bf16 %v6254_v18, %v6253_v17  ;;  %v6279_v15 = vld [vmem:[%s14530_s6 + $0x1e0] sm:$0xff]  ;;  %v6280_v28 = vld [vmem:[%s14530_s6 + $0x1e8] sm:$0xff]  ;;  %v6281_v18 = vld [vmem:[%s14530_s6 + $0x1f0] sm:$0xff] }
 0x93e   : > { %11631 = vmatprep.subr.bf16.mxu0 %v11979_v12  ;;  %11667 = vmatprep.subr.bf16.mxu1 %v11979_v12  ;;  %v11758_v17 = vpack.c.bf16 %v6280_v28, %v6279_v15  ;;  %v9224_v28 = vld [vmem:[%s14578_s0 + $0x5] ss:$0 sm:$0xff] }
 0x940   : > { %10747 = vmatmul.mubr.msk.f32.vlgmr.msra.gmra.mrb[66].mxu0 %vm631_vm0, %v13397_v4  ;;  %10804 = vmatmul.mubr.msk.f32.vlgmr.msra.gmra.mrb[58].mxu1 %vm631_vm0, %v13397_v4 }
 0x941   : > { %11633 = vmatpush3.bf16.msra.mxu0 %v11632_v26  ;;  %11669 = vmatpush3.bf16.msra.mxu1 %v11668_v29  ;;  %v11686_v26 = vpack.c.bf16 %v6232_v53, %v6231_v27  ;;  %v11722_v29 = vpack.c.bf16 %v6256_v25, %v6255_v22 }
 0x942   : > { %11634 = vmatprep.subr.bf16.mxu0 %v11979_v12  ;;  %11670 = vmatprep.subr.bf16.mxu1 %v11979_v12 }
 0x943   : > { %10784 = vmatprep.mubr.msk.f32.mxu0 %vm11980_vm1, %v11981_v32  ;;  %10841 = vmatprep.mubr.msk.f32.mxu1 %vm11980_vm1, %v11981_v32 }
 0x945   : > { %11636 = vmatpush3.bf16.msra.mxu0 %v11635_v35  ;;  %11672 = vmatpush3.bf16.msra.mxu1 %v11671_v36  ;;  %v11689_v35 = vpack.c.bf16 %v6234_v31, %v6233_v30  ;;  %v11725_v36 = vpack.c.bf16 %v6258_v34, %v6257_v33 }
 0x946   : > { %11637 = vmatprep.subr.bf16.mxu0 %v11979_v12  ;;  %11673 = vmatprep.subr.bf16.mxu1 %v11979_v12 }
 0x949   : > { %11639 = vmatpush3.bf16.msra.mxu0 %v11638_v41  ;;  %11675 = vmatpush3.bf16.msra.mxu1 %v11674_v42  ;;  %v11704_v41 = vpack.c.bf16 %v6244_v38, %v6243_v37  ;;  %v11740_v42 = vpack.c.bf16 %v6268_v40, %v6267_v39  ;;  %v9235_v37 = vld [vmem:[%s14577_s5] ss:$0 sm:$0xff] }
 0x94a   : > { %11640 = vmatprep.subr.bf16.mxu0 %v11979_v12  ;;  %11676 = vmatprep.subr.bf16.mxu1 %v11979_v12  ;;  %v9219_v39 = vld [vmem:[%s14578_s0] ss:$0 sm:$0xff] }
 0x94d   : > { %11642 = vmatpush3.bf16.msra.mxu0 %v11641_v47  ;;  %11678 = vmatpush3.bf16.msra.mxu1 %v11677_v48  ;;  %v11707_v47 = vpack.c.bf16 %v6246_v44, %v6245_v43  ;;  %v11743_v48 = vpack.c.bf16 %v6270_v46, %v6269_v45 }
 0x94e   : > { %11655 = vmatprep.subr.bf16.mxu0 %v11979_v12  ;;  %11691 = vmatprep.subr.bf16.mxu1 %v11979_v12 }
 0x950   : > { %10785 = vmatmul.mubr.msk.f32.vlgmr.msra.gmra.mrb[68].mxu0 %vm631_vm0, %v13397_v4  ;;  %10842 = vmatmul.mubr.msk.f32.vlgmr.msra.gmra.mrb[60].mxu1 %vm631_vm0, %v13397_v4 }
 0x951   : > { %11657 = vmatpush3.bf16.msra.mxu0 %v11656_v54  ;;  %11693 = vmatpush3.bf16.msra.mxu1 %v11692_v55  ;;  %v11710_v54 = vpack.c.bf16 %v6248_v50, %v6247_v49  ;;  %v11746_v55 = vpack.c.bf16 %v6272_v52, %v6271_v51  ;;  %v9239_v49 = vld [vmem:[%s14577_s5 + $0x4] ss:$0 sm:$0xff]  ;;  %v9220_v52 = vld [vmem:[%s14578_s0 + $0x1] ss:$0 sm:$0xff] }
 0x952   : > { %11658 = vmatprep.subr.bf16.mxu0 %v11979_v12  ;;  %11694 = vmatprep.subr.bf16.mxu1 %v11979_v12 }
 0x953   : > { %10822 = vmatprep.mubr.msk.f32.mxu0 %vm11980_vm1, %v11981_v32  ;;  %10879 = vmatprep.mubr.msk.f32.mxu1 %vm11980_vm1, %v11981_v32 }
 0x955   : > { %11660 = vmatpush3.bf16.msra.mxu0 %v11659_v60  ;;  %11696 = vmatpush3.bf16.msra.mxu1 %v11695_v20  ;;  %v11713_v60 = vpack.c.bf16 %v6250_v57, %v6249_v56  ;;  %v11749_v20 = vpack.c.bf16 %v6274_v59, %v6273_v58  ;;  %v9237_v59 = vld [vmem:[%s14577_s5 + $0x2] ss:$0 sm:$0xff] }
 0x956   : > { %11661 = vmatprep.subr.bf16.mxu0 %v11979_v12  ;;  %11697 = vmatprep.subr.bf16.mxu1 %v11979_v12 }
 0x959   : > { %11663 = vmatpush3.bf16.msra.mxu0 %v11662_v21  ;;  %11699 = vmatpush3.bf16.msra.mxu1 %v11698_v1  ;;  %v6262_v21 = vld [vmem:[%s14530_s6 + $0x158] sm:$0xff] }
 0x95a   : > { %11664 = vmatprep.subr.bf16.mxu0 %v11979_v12  ;;  %11700 = vmatprep.subr.bf16.mxu1 %v11979_v12  ;;  %v11731_v1 = vpack.c.bf16 %v6262_v21, %v6261_v0  ;;  %v9238_v0 = vld [vmem:[%s14577_s5 + $0x3] ss:$0 sm:$0xff]  ;;  %v9241_v21 = vld [vmem:[%s14577_s5 + $0x6] ss:$0 sm:$0xff] }
 0x95d   : > { %11666 = vmatpush3.bf16.msra.mxu0 %v11665_v7  ;;  %11702 = vmatpush3.bf16.msra.mxu1 %v11701_v24  ;;  %v6266_v7 = vld [vmem:[%s14530_s6 + $0x178] sm:$0xff] }
 0x95e   : > { %11679 = vmatprep.subr.bf16.mxu0 %v11979_v12  ;;  %11715 = vmatprep.subr.bf16.mxu1 %v11979_v12  ;;  %v11737_v24 = vpack.c.bf16 %v6266_v7, %v6265_v23 }
 0x960   : > { %10823 = vmatmul.mubr.msk.f32.vlgmr.msra.gmra.mrb[70].mxu0 %vm631_vm0, %v13397_v4  ;;  %10880 = vmatmul.mubr.msk.f32.vlgmr.msra.gmra.mrb[62].mxu1 %vm631_vm0, %v13397_v4 }
 0x961   : > { %11681 = vmatpush3.bf16.msra.mxu0 %v11680_v13  ;;  %11717 = vmatpush3.bf16.msra.mxu1 %v11716_v14  ;;  %v6278_v13 = vld [vmem:[%s14530_s6 + $0x1d8] sm:$0xff] }
 0x962   : > { %11682 = vmatprep.subr.bf16.mxu0 %v11979_v12  ;;  %11718 = vmatprep.subr.bf16.mxu1 %v11979_v12  ;;  %v11755_v14 = vpack.c.bf16 %v6278_v13, %v6277_v11  ;;  %v9240_v11 = vld [vmem:[%s14577_s5 + $0x5] ss:$0 sm:$0xff]  ;;  %v9251_v13 = vld [vmem:[%s14531_s7] ss:$0 sm:$0xff] }
 0x963   : > { %10860 = vmatprep.mubr.msk.f32.mxu0 %vm11980_vm1, %v11981_v32  ;;  %10917 = vmatprep.mubr.msk.f32.mxu1 %vm11980_vm1, %v11981_v32 }
 0x965   : > { %11684 = vmatpush3.bf16.msra.mxu0 %v11683_v3  ;;  %11720 = vmatpush3.bf16.msra.mxu1 %v11719_v19  ;;  %v6282_v3 = vld [vmem:[%s14530_s6 + $0x1f8] sm:$0xff] }
 0x966   : > { %11685 = vmatprep.subr.bf16.mxu0 %v11979_v12  ;;  %11721 = vmatprep.subr.bf16.mxu1 %v11979_v12  ;;  %v11761_v19 = vpack.c.bf16 %v6282_v3, %v6281_v18 }
 0x969   : > { %11687 = vmatpush3.bf16.msra.mxu0 %v11686_v26  ;;  %11723 = vmatpush3.bf16.msra.mxu1 %v11722_v29 }
 0x96a   : > { %11688 = vmatprep.subr.bf16.mxu0 %v11979_v12  ;;  %11724 = vmatprep.subr.bf16.mxu1 %v11979_v12 }
 0x96d   : > { %11690 = vmatpush3.bf16.msra.mxu0 %v11689_v35  ;;  %11726 = vmatpush3.bf16.msra.mxu1 %v11725_v36 }
 0x96e   : > { %11703 = vmatprep.subr.bf16.mxu0 %v11979_v12  ;;  %11739 = vmatprep.subr.bf16.mxu1 %v11979_v12 }
 0x970   : > { %10861 = vmatmul.mubr.msk.f32.vlgmr.msra.gmra.mrb[72].mxu0 %vm631_vm0, %v13397_v4  ;;  %10918 = vmatmul.mubr.msk.f32.vlgmr.msra.gmra.mrb[64].mxu1 %vm631_vm0, %v13397_v4 }
 0x971   : > { %11705 = vmatpush3.bf16.msra.mxu0 %v11704_v41  ;;  %11741 = vmatpush3.bf16.msra.mxu1 %v11740_v42 }
 0x972   : > { %11706 = vmatprep.subr.bf16.mxu0 %v11979_v12  ;;  %11742 = vmatprep.subr.bf16.mxu1 %v11979_v12 }
 0x973   : > { %10898 = vmatprep.mubr.msk.f32.mxu0 %vm11980_vm1, %v11981_v32  ;;  %10955 = vmatprep.mubr.msk.f32.mxu1 %vm11980_vm1, %v11981_v32 }
 0x975   : > { %11708 = vmatpush3.bf16.msra.mxu0 %v11707_v47  ;;  %11744 = vmatpush3.bf16.msra.mxu1 %v11743_v48  ;;  %v9236_v48 = vld [vmem:[%s14577_s5 + $0x1] ss:$0 sm:$0xff] }
 0x976   : > { %11709 = vmatprep.subr.bf16.mxu0 %v11979_v12  ;;  %11745 = vmatprep.subr.bf16.mxu1 %v11979_v12 }
 0x979   : > { %11711 = vmatpush3.bf16.msra.mxu0 %v11710_v54  ;;  %11747 = vmatpush3.bf16.msra.mxu1 %v11746_v55  ;;  %v9223_v54 = vld [vmem:[%s14578_s0 + $0x4] ss:$0 sm:$0xff] }
 0x97a   : > { %11712 = vmatprep.subr.bf16.mxu0 %v11979_v12  ;;  %11748 = vmatprep.subr.bf16.mxu1 %v11979_v12 }
 0x97d   : > { %11714 = vmatpush3.bf16.msra.mxu0 %v11713_v60  ;;  %11750 = vmatpush3.bf16.msra.mxu1 %v11749_v20 }
 0x97e   : > { %11727 = vmatprep.subr.bf16.mxu0 %v11979_v12  ;;  %10977 = vmatprep.subr.mxu1 %v11981_v32 }
 0x980   : > { %10899 = vmatmul.mubr.msk.f32.vlgmr.msra.gmra.mrb[74].mxu0 %vm631_vm0, %v13397_v4  ;;  %10956 = vmatmul.mubr.msk.f32.vlgmr.msra.gmra.mrb[66].mxu1 %vm631_vm0, %v13397_v4 }
 0x981   : > { %11729 = vmatpush3.bf16.msra.mxu0 %v11728_v63  ;;  %10936 = vmatprep.mubr.msk.f32.mxu0 %vm11980_vm1, %v11981_v32 }
 0x982   : > { %11730 = vmatprep.subr.bf16.mxu0 %v11979_v12  ;;  %10979 = vmatprep.mubr.msk.f32.mxu1 %vm11980_vm1, %v11981_v32 }
 0x985   : > { %11732 = vmatpush3.bf16.msra.mxu0 %v11731_v1 }
 0x986   : > { %11733 = vmatprep.subr.bf16.mxu0 %v11979_v12 }
 0x989   : > { %11735 = vmatpush3.bf16.msra.mxu0 %v11734_v6  ;;  %v9225_v6 = vld [vmem:[%s14578_s0 + $0x6] ss:$0 sm:$0xff] }
 0x98a   : > { %11736 = vmatprep.subr.bf16.mxu0 %v11979_v12 }
 0x98d   : > { %11738 = vmatpush3.bf16.msra.mxu0 %v11737_v24 }
 0x98e   : > { %11751 = vmatprep.subr.bf16.mxu0 %v11979_v12 }
 0x990   : > { %10937 = vmatmul.mubr.msk.f32.vlgmr.msra.gmra.mrb[76].mxu0 %vm631_vm0, %v13397_v4 }
 0x991   : > { %11753 = vmatpush3.bf16.msra.mxu0 %v11752_v10  ;;  %10974 = vmatprep.mubr.msk.f32.mxu0 %vm11980_vm1, %v11981_v32 }
 0x992   : > { %11754 = vmatprep.subr.bf16.mxu0 %v11979_v12 }
 0x995   : > { %11756 = vmatpush3.bf16.msra.mxu0 %v11755_v14 }
 0x996   : > { %11757 = vmatprep.subr.bf16.mxu0 %v11979_v12 }
 0x999   : > { %11759 = vmatpush3.bf16.msra.mxu0 %v11758_v17 }
 0x99a   : > { %11760 = vmatprep.subr.bf16.mxu0 %v11979_v12 }
 0x99d   : > { %11762 = vmatpush3.bf16.msra.mxu0 %v11761_v19 }
 0x99e   : > { %10997 = vmatprep.subr.mxu0 %v11981_v32 }
 0x9a0   : > { %10975 = vmatmul.mubr.msk.f32.vlgmr.msra.gmra.mrb[78].mxu0 %vm631_vm0, %v13397_v4 }
 0x9a1   : > { %10999 = vmatprep.mubr.msk.f32.mxu0 %vm11980_vm1, %v11981_v32 }
 0x9b3   : > { %v5045_v27 = vpop.f32.mrb[54].mxu0  ;;  %v5185_v53 = vpop.f32.mrb[46].mxu1 }
 0x9b4   : > { %v10539_v22 = vpop.f32.mrb[55].mxu0  ;;  %v10577_v25 = vpop.f32.mrb[47].mxu1  ;;  %v5046_v43 = vadd.f32 %v9219_v39, %v5045_v27  ;;  %v5186_v63 = vadd.f32 %v9221_v61, %v5185_v53  ;;  %v9242_v53 = vld [vmem:[%s14577_s5 + $0x7] ss:$0 sm:$0xff]  ;;  %s14481_s5 = scalar_lea.hbm %s14580_s3, %s9308_s27 }
 0x9c3   : > { %v5115_v26 = vpop.f32.mrb[56].mxu0  ;;  %v5325_v29 = vpop.f32.mrb[48].mxu1 }
 0x9c4   : > { %v10558_v30 = vpop.f32.mrb[57].mxu0  ;;  %v10615_v31 = vpop.f32.mrb[49].mxu1  ;;  %v5116_v60 = vadd.f32 %v9220_v52, %v5115_v26  ;;  %v5326_v20 = vadd.f32 %v9223_v54, %v5325_v29  ;;  %v9226_v26 = vld [vmem:[%s14578_s0 + $0x7] ss:$0 sm:$0xff] }
 0x9d3   : > { %v5255_v33 = vpop.f32.mrb[58].mxu0  ;;  %v5465_v34 = vpop.f32.mrb[50].mxu1 }
 0x9d4   : > { %v10596_v35 = vpop.f32.mrb[59].mxu0  ;;  %v10653_v36 = vpop.f32.mrb[51].mxu1  ;;  %v5256_v9 = vadd.f32 %v9222_v5, %v5255_v33  ;;  %v5466_v10 = vadd.f32 %v9225_v6, %v5465_v34  ;;  %v9252_v34 = vld [vmem:[%s14531_s7 + $0x1] ss:$0 sm:$0xff] }
 0x9e3   : > { %v14099_v4 = vpop.f32.mrb[60].mxu0  ;;  %v5725_v38 = vpop.f32.mrb[52].mxu1 }
 0x9e4   : > { %v5726_v40 = vadd.f32 %v9235_v37, %v5725_v38  ;;  %v10634_v41 = vpop.f32.mrb[61].mxu0  ;;  %v10691_v42 = vpop.f32.mrb[53].mxu1  ;;  %v5396_v27 = vadd.f32 %v9224_v28, %v14099_v4 }
 0x9e6   : > { %10978 = vmatpush3.xpose.msk.msra.mxu1 %vm2705_vm2, %v5726_v40 }
 0x9e7   : > { %10982 = vmatprep.subr.mxu1 %v11981_v32 }
 0x9e9   : > { %10980 = vmatmul.mubr.msk.f32.vlgmr.msra.gmra.mrb[68].mxu1 %vm2705_vm2, %v5046_v43 }
 0x9ea   : > { %10984 = vmatprep.mubr.msk.f32.mxu1 %vm11980_vm1, %v11981_v32 }
 0x9f3   : > { %v14109_v44 = vpop.f32.mrb[62].mxu0  ;;  %v5865_v45 = vpop.f32.mrb[54].mxu1 }
 0x9f4   : > { %v10672_v46 = vpop.f32.mrb[63].mxu0  ;;  %v10729_v47 = vpop.f32.mrb[55].mxu1  ;;  %v5866_v62 = vadd.f32 %v9237_v59, %v5865_v45  ;;  %v5536_v33 = vadd.f32 %v9226_v26, %v14109_v44 }
 0xa03   : > { %v5795_v50 = vpop.f32.mrb[64].mxu0  ;;  %v6005_v51 = vpop.f32.mrb[56].mxu1 }
 0xa04   : > { %v5796_v55 = vadd.f32 %v9236_v48, %v5795_v50  ;;  %v6006_v56 = vadd.f32 %v9239_v49, %v6005_v51  ;;  %v10710_v57 = vpop.f32.mrb[65].mxu0  ;;  %v10767_v58 = vpop.f32.mrb[57].mxu1 }
 0xa06   : > { %10983 = vmatpush3.xpose.msk.msra.mxu1 %vm2705_vm2, %v5796_v55  ;;  %10998 = vmatpush3.xpose.msk.msra.mxu0 %vm2705_vm2, %v6006_v56 }
 0xa07   : > { %10987 = vmatprep.subr.mxu1 %v11981_v32  ;;  %11007 = vmatprep.subr.mxu0 %v11981_v32 }
 0xa09   : > { %10985 = vmatmul.mubr.msk.f32.vlgmr.msra.gmra.mrb[70].mxu1 %vm2705_vm2, %v5116_v60  ;;  %11000 = vmatmul.mubr.msk.f32.vlgmr.msra.gmra.mrb[80].mxu0 %vm2705_vm2, %v5326_v20 }
 0xa0a   : > { %10988 = vmatpush3.xpose.msk.msra.mxu1 %vm2705_vm2, %v5866_v62  ;;  %10989 = vmatprep.mubr.msk.f32.mxu1 %vm11980_vm1, %v11981_v32 }
 0xa0b   : > { %10992 = vmatprep.subr.mxu1 %v11981_v32  ;;  %11009 = vmatprep.mubr.msk.f32.mxu0 %vm11980_vm1, %v11981_v32 }
 0xa0d   : > { %10990 = vmatmul.mubr.msk.f32.vlgmr.msra.gmra.mrb[72].mxu1 %vm2705_vm2, %v5186_v63 }
 0xa0e   : > { %10994 = vmatprep.mubr.msk.f32.mxu1 %vm11980_vm1, %v11981_v32 }
 0xa13   : > { %v5935_v1 = vpop.f32.mrb[66].mxu0  ;;  %v6145_v2 = vpop.f32.mrb[58].mxu1 }
 0xa14   : > { %v5936_v23 = vadd.f32 %v9238_v0, %v5935_v1  ;;  %v6146_v7 = vadd.f32 %v9241_v21, %v6145_v2  ;;  %v10748_v24 = vpop.f32.mrb[67].mxu0  ;;  %v10805_v8 = vpop.f32.mrb[59].mxu1 }
 0xa16   : > { %10993 = vmatpush3.xpose.msk.msra.mxu1 %vm2705_vm2, %v5936_v23  ;;  %11008 = vmatpush3.xpose.msk.msra.mxu0 %vm2705_vm2, %v6146_v7 }
 0xa17   : > { %11002 = vmatprep.subr.mxu1 %v11981_v32  ;;  %11017 = vmatprep.subr.mxu0 %v11981_v32 }
 0xa19   : > { %10995 = vmatmul.mubr.msk.f32.vlgmr.msra.gmra.mrb[74].mxu1 %vm2705_vm2, %v5256_v9  ;;  %11010 = vmatmul.mubr.msk.f32.vlgmr.msra.gmra.mrb[82].mxu0 %vm2705_vm2, %v5466_v10 }
 0xa1a   : > { %11004 = vmatprep.mubr.msk.f32.mxu1 %vm11980_vm1, %v11981_v32  ;;  %11019 = vmatprep.mubr.msk.f32.mxu0 %vm11980_vm1, %v11981_v32 }
 0xa23   : > { %v6075_v14 = vpop.f32.mrb[68].mxu0  ;;  %v6405_v15 = vpop.f32.mrb[60].mxu1 }
 0xa24   : > { %v6076_v17 = vadd.f32 %v9240_v11, %v6075_v14  ;;  %v6406_v18 = vadd.f32 %v9251_v13, %v6405_v15  ;;  %v10786_v3 = vpop.f32.mrb[69].mxu0  ;;  %v10843_v19 = vpop.f32.mrb[61].mxu1 }
 0xa26   : > { %11003 = vmatpush3.xpose.msk.msra.mxu1 %vm2705_vm2, %v6076_v17  ;;  %11018 = vmatpush3.msra.mxu0 %v6406_v18 }
 0xa27   : > { %11012 = vmatprep.subr.mxu1 %v11981_v32  ;;  %11027 = vmatprep.subr.mxu0 %v11981_v32 }
 0xa29   : > { %11005 = vmatmul.mubr.msk.f32.vlgmr.msra.gmra.mrb[76].mxu1 %vm2705_vm2, %v5396_v27 }
 0xa2a   : > { %11014 = vmatprep.mubr.msk.f32.mxu1 %vm11980_vm1, %v11981_v32 }
 0xa33   : > { %v6215_v22 = vpop.f32.mrb[70].mxu0  ;;  %v14185_v25 = vpop.f32.mrb[62].mxu1 }
 0xa34   : > { %v6216_v29 = vadd.f32 %v9242_v53, %v6215_v22  ;;  %v10824_v30 = vpop.f32.mrb[71].mxu0  ;;  %v10881_v31 = vpop.f32.mrb[63].mxu1 }
 0xa36   : > { %11013 = vmatpush3.xpose.msk.msra.mxu1 %vm2705_vm2, %v6216_v29 }
 0xa37   : > { %11022 = vmatprep.subr.mxu1 %v11981_v32 }
 0xa39   : > { %11015 = vmatmul.mubr.msk.f32.vlgmr.msra.gmra.mrb[78].mxu1 %vm2705_vm2, %v5536_v33 }
 0xa3a   : > { %11024 = vmatprep.mubr.msk.f32.mxu1 %vm11980_vm1, %v11981_v32 }
 0xa43   : > { %v6475_v35 = vpop.f32.mrb[72].mxu0  ;;  %v14199_v36 = vpop.f32.mrb[64].mxu1 }
 0xa44   : > { %v6476_v37 = vadd.f32 %v9252_v34, %v6475_v35  ;;  %v10862_v4 = vpop.f32.mrb[73].mxu0  ;;  %v10919_v38 = vpop.f32.mrb[65].mxu1 }
 0xa46   : > { %11023 = vmatpush3.msra.mxu1 %v6476_v37 }
 0xa47   : > { %11032 = vmatprep.subr.mxu1 %v11981_v32 }
 0xa53   : > { %v14202_v39 = vpop.f32.mrb[74].mxu0  ;;  %v14204_v40 = vpop.f32.mrb[66].mxu1 }
 0xa54   : > { %v10900_v41 = vpop.f32.mrb[75].mxu0  ;;  %v10957_v42 = vpop.f32.mrb[67].mxu1 }
 0xa63   : > { %v14206_v43 = vpop.f32.mrb[76].mxu0 }
 0xa64   : > { %v10938_v44 = vpop.f32.mrb[77].mxu0 }
 0xa73   : > { %v14208_v45 = vpop.f32.mrb[78].mxu0 }
 0xa74   : > { %v10976_v46 = vpop.f32.mrb[79].mxu0 }
 0xabc   : > { %v6971_v47 = vpop.f32.mrb[68].mxu1 }
 0xabd   : > { %v7507_v48 = vmul.f32 0.35355338, %v6971_v47  ;;  %v10981_v49 = vpop.f32.mrb[69].mxu1 }
 0xabf   : > { %v7515_v50 = vsel %vm2705_vm2, %v7507_v48, -inf }
 0xac0   : > { %7516 = vmax.xlane.f32.xlu0 %v7515_v50 }
 0xadc   : > { %v7047_v51 = vpop.f32.mrb[70].mxu1  ;;  %v7275_v52 = vpop.f32.mrb[80].mxu0 }
 0xadd   : > { %v7508_v54 = vmul.f32 0.35355338, %v7047_v51  ;;  %v10986_v55 = vpop.f32.mrb[71].mxu1  ;;  %v11001_v56 = vpop.f32.mrb[81].mxu0  ;;  %v7511_v20 = vmul.f32 0.35355338, %v7275_v52 }
 0xadf   : > { %v7518_v57 = vsel %vm2705_vm2, %v7508_v54, -inf  ;;  %v7527_v62 = vsel %vm2705_vm2, %v7511_v20, -inf }
 0xae0   : > { %7519 = vmax.xlane.f32.xlu1 %v7518_v57  ;;  %v7123_v58 = vpop.f32.mrb[72].mxu1 }
 0xae1   : > { %v7509_v59 = vmul.f32 0.35355338, %v7123_v58  ;;  %v10991_v60 = vpop.f32.mrb[73].mxu1 }
 0xae3   : > { %v7521_v61 = vsel %vm2705_vm2, %v7509_v59, -inf }
 0xae4   : > { %7522 = vmax.xlane.f32.xlu0 %v7521_v61 }
 0xae8   : > { %7528 = vmax.xlane.f32.xlu0 %v7527_v62 }
 0xaec   : > { %v7199_v63 = vpop.f32.mrb[74].mxu1  ;;  %v7427_v0 = vpop.f32.mrb[82].mxu0 }
 0xaed   : > { %v7510_v21 = vmul.f32 0.35355338, %v7199_v63  ;;  %v7513_v1 = vmul.f32 0.35355338, %v7427_v0  ;;  %v10996_v2 = vpop.f32.mrb[75].mxu1  ;;  %v11011_v5 = vpop.f32.mrb[83].mxu0 }
 0xaef   : > { %v7524_v6 = vsel %vm2705_vm2, %v7510_v21, -inf  ;;  %v7533_v23 = vsel %vm2705_vm2, %v7513_v1, -inf }
 0xaf0   : > { %7525 = vmax.xlane.f32.xlu1 %v7524_v6  ;;  %7534 = vmax.xlane.f32.xlu0 %v7533_v23 }
 0xafc   : > { %v7351_v7 = vpop.f32.mrb[76].mxu1 }
 0xafd   : > { %v7512_v24 = vmul.f32 0.35355338, %v7351_v7  ;;  %v11006_v8 = vpop.f32.mrb[77].mxu1 }
 0xaff   : > { %v7530_v9 = vsel %vm2705_vm2, %v7512_v24, -inf }
 0xb00   : > { %7531 = vmax.xlane.f32.xlu1 %v7530_v9 }
 0xb0c   : > { %v7503_v10 = vpop.f32.mrb[78].mxu1 }
 0xb0d   : > { %v7514_v11 = vmul.f32 0.35355338, %v7503_v10  ;;  %v11016_v13 = vpop.f32.mrb[79].mxu1  ;;  %v9255_v10 = vld [vmem:[%s14531_s7 + $0x4] ss:$0 sm:$0xff] }
 0xb0f   : > { %v7536_v14 = vsel %vm2705_vm2, %v7514_v11, -inf }
 0xb10   : > { %7537 = vmax.xlane.f32.xlu1 %v7536_v14 }
 0xb4d   : > { %v7517_v15 = vpop.xlane.xlu0 %7516 }
 0xb4e   : > { %v7539_v28 = vsub.f32 %v7507_v48, %v7517_v15  ;;  %v6686_v15 = vadd.f32 %v9255_v10, %v14199_v36  ;;  %v9256_v36 = vld [vmem:[%s14531_s7 + $0x5] ss:$0 sm:$0xff] }
 0xb50   : > { %v7547_v17 = vmul.f32 1.442695, %v7539_v28 }
 0xb52   : > { %11879 = vpow2.f32 %v7547_v17 }
 0xb5c   : > { %v11880_v18 = vpop.eup %11879 }
 0xb5d   : > { %v7563_v3 = vsel %vm2705_vm2, %v11880_v18, 0.0 }
 0xb5e   : > { %7564 = vadd.xlane.f32.xlu0 %v7563_v3 }
 0xb6d   : > { %v7520_v19 = vpop.xlane.xlu1 %7519 }
 0xb6e   : > { %v7540_v27 = vsub.f32 %v7508_v54, %v7520_v19 }
 0xb70   : > { %v7549_v53 = vmul.f32 1.442695, %v7540_v27 }
 0xb71   : > { %v7523_v22 = vpop.xlane.xlu0 %7522 }
 0xb72   : > { %11881 = vpow2.f32 %v7549_v53  ;;  %v7541_v26 = vsub.f32 %v7509_v59, %v7523_v22  ;;  %v6756_v22 = vadd.f32 %v9256_v36, %v14206_v43  ;;  %v9258_v43 = vld [vmem:[%s14531_s7 + $0x7] ss:$0 sm:$0xff] }
 0xb74   : > { %v7551_v29 = vmul.f32 1.442695, %v7541_v26 }
 0xb75   : > { %v7529_v30 = vpop.xlane.xlu0 %7528 }
 0xb76   : > { %11883 = vpow2.f32 %v7551_v29  ;;  %v7543_v31 = vsub.f32 %v7511_v20, %v7529_v30 }
 0xb78   : > { %v7555_v33 = vmul.f32 1.442695, %v7543_v31  ;;  %v6896_v31 = vadd.f32 %v9258_v43, %v14208_v45  ;;  %v8187_v45 = vld [vmem:[%s14532_s8] sm:$0xff] }
 0xb79   : > { %v9299_v43 = vld [vmem:[%s14533_s9] ss:$0 sm:$0xff] }
 0xb7a   : > { %11885 = vpow2.f32 %v7555_v33 }
 0xb7c   : > { %v11882_v34 = vpop.eup %11881 }
 0xb7d   : > { %v7526_v35 = vpop.xlane.xlu1 %7525  ;;  %v7535_v37 = vpop.xlane.xlu0 %7534  ;;  %v7566_v4 = vsel %vm2705_vm2, %v11882_v34, 0.0 }
 0xb7e   : > { %v7542_v38 = vsub.f32 %v7510_v21, %v7526_v35  ;;  %v7545_v41 = vsub.f32 %v7513_v1, %v7535_v37  ;;  %7567 = vadd.xlane.f32.xlu1 %v7566_v4  ;;  %v9253_v21 = vld [vmem:[%s14531_s7 + $0x2] ss:$0 sm:$0xff]  ;;  %v8188_v37 = vld [vmem:[%s14532_s8 + $0x8] sm:$0xff]  ;;  %v8189_v4 = vld [vmem:[%s14532_s8 + $0x10] sm:$0xff] }
 0xb7f   : > { %v6546_v5 = vadd.f32 %v9253_v21, %v14185_v25 }
 0xb80   : > { %v11884_v42 = vpop.eup %11883  ;;  %v7553_v44 = vmul.f32 1.442695, %v7542_v38  ;;  %v7559_v46 = vmul.f32 1.442695, %v7545_v41 }
 0xb81   : > { %v7569_v47 = vsel %vm2705_vm2, %v11884_v42, 0.0 }
 0xb82   : > { %11887 = vpow2.f32 %v7553_v44  ;;  %7570 = vadd.xlane.f32.xlu0 %v7569_v47  ;;  %v8191_v47 = vld [vmem:[%s14532_s8 + $0x20] sm:$0xff] }
 0xb83   : > { %11889 = vpow2.f32 %v7559_v46 }
 0xb84   : > { %v11886_v48 = vpop.eup %11885 }
 0xb85   : > { %v7575_v49 = vsel %vm2705_vm2, %v11886_v48, 0.0 }
 0xb86   : > { %7576 = vadd.xlane.f32.xlu0 %v7575_v49 }
 0xb8c   : > { %v14222_v50 = vpop.eup %11887 }
 0xb8d   : > { %v14224_v51 = vpop.eup %11889  ;;  %v7532_v52 = vpop.xlane.xlu1 %7531  ;;  %v7572_v54 = vsel %vm2705_vm2, %v14222_v50, 0.0 }
 0xb8e   : > { %v7544_v55 = vsub.f32 %v7512_v24, %v7532_v52  ;;  %7573 = vadd.xlane.f32.xlu1 %v7572_v54  ;;  %v7581_v56 = vsel %vm2705_vm2, %v14224_v51, 0.0  ;;  %v9254_v24 = vld [vmem:[%s14531_s7 + $0x3] ss:$0 sm:$0xff]  ;;  %v8192_v54 = vld [vmem:[%s14532_s8 + $0x28] sm:$0xff] }
 0xb8f   : > { %7582 = vadd.xlane.f32.xlu0 %v7581_v56  ;;  %v6616_v9 = vadd.f32 %v9254_v24, %v14202_v39  ;;  %v9257_v39 = vld [vmem:[%s14531_s7 + $0x6] ss:$0 sm:$0xff] }
 0xb90   : > { %v7557_v57 = vmul.f32 1.442695, %v7544_v55  ;;  %v6826_v3 = vadd.f32 %v9257_v39, %v14204_v40 }
 0xb92   : > { %11891 = vpow2.f32 %v7557_v57 }
 0xb9c   : > { %v14230_v58 = vpop.eup %11891 }
 0xb9d   : > { %v7538_v59 = vpop.xlane.xlu1 %7537  ;;  %v7578_v60 = vsel %vm2705_vm2, %v14230_v58, 0.0 }
 0xb9e   : > { %v7546_v20 = vsub.f32 %v7514_v11, %v7538_v59  ;;  %7579 = vadd.xlane.f32.xlu1 %v7578_v60  ;;  %v8194_v59 = vld [vmem:[%s14532_s8 + $0x38] sm:$0xff] }
 0xba0   : > { %v7561_v61 = vmul.f32 1.442695, %v7546_v20 }
 0xba2   : > { %11893 = vpow2.f32 %v7561_v61 }
 0xbac   : > { %v14234_v62 = vpop.eup %11893 }
 0xbad   : > { %v7584_v63 = vsel %vm2705_vm2, %v14234_v62, 0.0 }
 0xbae   : > { %7585 = vadd.xlane.f32.xlu1 %v7584_v63 }
 0xbeb   : > { %v7565_v0 = vpop.xlane.xlu0 %7564 }
 0xbec   : > { %11895 = vrcp.f32 %v7565_v0 }
 0xbf6   : > { %v11896_v1 = vpop.eup %11895 }
 0xbf7   : > { %v7595_v2 = vmul.f32 %v11896_v1, %v11880_v18 }
 0xbf9   : > { %11020 = vmatmul.mubr.msk.f32.vlgmr.msra.gmra.mrb[84].mxu0 %vm2705_vm2, %v7595_v2 }
 0xbfa   : > { %11028 = vmatpush3.msra.mxu0 %v6546_v5  ;;  %11029 = vmatprep.mubr.msk.f32.mxu0 %vm11980_vm1, %v11981_v32 }
 0xbfb   : > { %11037 = vmatprep.subr.mxu0 %v11981_v32 }
 0xc0b   : > { %v7568_v6 = vpop.xlane.xlu1 %7567 }
 0xc0c   : > { %11897 = vrcp.f32 %v7568_v6 }
 0xc0f   : > { %v7571_v23 = vpop.xlane.xlu0 %7570 }
 0xc10   : > { %11899 = vrcp.f32 %v7571_v23 }
 0xc13   : > { %v7577_v7 = vpop.xlane.xlu0 %7576 }
 0xc14   : > { %11901 = vrcp.f32 %v7577_v7 }
 0xc16   : > { %v11898_v8 = vpop.eup %11897 }
 0xc17   : > { %v7596_v25 = vmul.f32 %v11898_v8, %v11882_v34 }
 0xc19   : > { %11025 = vmatmul.mubr.msk.f32.vlgmr.msra.gmra.mrb[80].mxu1 %vm2705_vm2, %v7596_v25 }
 0xc1a   : > { %v11900_v11 = vpop.eup %11899  ;;  %11033 = vmatpush3.msra.mxu1 %v6616_v9  ;;  %11034 = vmatprep.mubr.msk.f32.mxu1 %vm11980_vm1, %v11981_v32 }
 0xc1b   : > { %v7597_v13 = vmul.f32 %v11900_v11, %v11884_v42  ;;  %v7574_v14 = vpop.xlane.xlu1 %7573  ;;  %11042 = vmatprep.subr.mxu1 %v11981_v32  ;;  %v8190_v42 = vld [vmem:[%s14532_s8 + $0x18] sm:$0xff] }
 0xc1c   : > { %11903 = vrcp.f32 %v7574_v14  ;;  %v7583_v28 = vpop.xlane.xlu0 %7582 }
 0xc1d   : > { %11905 = vrcp.f32 %v7583_v28  ;;  %11030 = vmatmul.mubr.msk.f32.vlgmr.msra.gmra.mrb[86].mxu0 %vm2705_vm2, %v7597_v13 }
 0xc1e   : > { %v11902_v17 = vpop.eup %11901  ;;  %11038 = vmatpush3.msra.mxu0 %v6686_v15  ;;  %11039 = vmatprep.mubr.msk.f32.mxu0 %vm11980_vm1, %v11981_v32 }
 0xc1f   : > { %v7599_v18 = vmul.f32 %v11902_v17, %v11886_v48  ;;  %11047 = vmatprep.subr.mxu0 %v11981_v32 }
 0xc21   : > { %11040 = vmatmul.mubr.msk.f32.vlgmr.msra.gmra.mrb[88].mxu0 %vm2705_vm2, %v7599_v18 }
 0xc22   : > { %11048 = vmatpush3.msra.mxu0 %v6826_v3  ;;  %11049 = vmatprep.mubr.msk.f32.mxu0 %vm11980_vm1, %v11981_v32 }
 0xc23   : > { %11057 = vmatprep.subr.mxu0 %v11981_v32 }
 0xc26   : > { %v11904_v19 = vpop.eup %11903 }
 0xc27   : > { %v11906_v27 = vpop.eup %11905  ;;  %v7598_v53 = vmul.f32 %v11904_v19, %v14222_v50  ;;  %v8193_v50 = vld [vmem:[%s14532_s8 + $0x30] sm:$0xff] }
 0xc28   : > { %v7601_v40 = vmul.f32 %v11906_v27, %v14224_v51 }
 0xc29   : > { %11035 = vmatmul.mubr.msk.f32.vlgmr.msra.gmra.mrb[82].mxu1 %vm2705_vm2, %v7598_v53 }
 0xc2a   : > { %11043 = vmatpush3.msra.mxu1 %v6756_v22  ;;  %11050 = vmatmul.mubr.msk.f32.vlgmr.msra.gmra.mrb[90].mxu0 %vm2705_vm2, %v7601_v40 }
 0xc2b   : > { %v7580_v26 = vpop.xlane.xlu1 %7579  ;;  %11044 = vmatprep.mubr.msk.f32.mxu1 %vm11980_vm1, %v11981_v32  ;;  %11052 = vmatprep.subr.mxu1 %v11981_v32 }
 0xc2c   : > { %11907 = vrcp.f32 %v7580_v26  ;;  %11059 = vmatprep.mubr.msk.f32.mxu0 %vm11980_vm1, %v11981_v32  ;;  %11058 = vmatpush3.msra.mxu0 %v8187_v45 }
 0xc2d   : > { %11067 = vmatprep.subr.mxu0 %v11981_v32 }
 0xc36   : > { %v11908_v29 = vpop.eup %11907 }
 0xc37   : > { %v7600_v30 = vmul.f32 %v11908_v29, %v14230_v58 }
 0xc39   : > { %11045 = vmatmul.mubr.msk.f32.vlgmr.msra.gmra.mrb[84].mxu1 %vm2705_vm2, %v7600_v30 }
 0xc3a   : > { %11053 = vmatpush3.msra.mxu1 %v6896_v31  ;;  %11054 = vmatprep.mubr.msk.f32.mxu1 %vm11980_vm1, %v11981_v32 }
 0xc3b   : > { %v7586_v33 = vpop.xlane.xlu1 %7585  ;;  %11062 = vmatprep.subr.mxu1 %v11981_v32 }
 0xc3c   : > { %11909 = vrcp.f32 %v7586_v33 }
 0xc46   : > { %v11910_v34 = vpop.eup %11909 }
 0xc47   : > { %v7602_v35 = vmul.f32 %v11910_v34, %v14234_v62 }
 0xc49   : > { %11055 = vmatmul.mubr.msk.f32.vlgmr.msra.gmra.mrb[86].mxu1 %vm2705_vm2, %v7602_v35  ;;  %v8834_v35 = vld [vmem:[%s14534_s10] sm:$0xff] }
 0xc4a   : > { %11064 = vmatprep.mubr.msk.f32.mxu1 %vm11980_vm1, %v11981_v32  ;;  %11063 = vmatpush3.msra.mxu1 %v8188_v37  ;;  %v8836_v37 = vld [vmem:[%s14534_s10 + $0x10] sm:$0xff] }
 0xc4b   : > { %11072 = vmatprep.subr.mxu1 %v11981_v32 }
 0xccc   : > { %v7672_v38 = vpop.f32.mrb[84].mxu0 }
 0xccd   : > { %v11021_v41 = vpop.f32.mrb[85].mxu0  ;;  %11060 = vmatmul.mubr.msk.f32.vlgmr.msra.gmra.mrb[92].mxu0 %vm2705_vm2, %v7672_v38 }
 0xcce   : > { %11068 = vmatpush3.msra.mxu0 %v8189_v4  ;;  %11069 = vmatprep.mubr.msk.f32.mxu0 %vm11980_vm1, %v11981_v32  ;;  %v8837_v4 = vld [vmem:[%s14534_s10 + $0x18] sm:$0xff]  ;;  %v8838_v41 = vld [vmem:[%s14534_s10 + $0x20] sm:$0xff] }
 0xccf   : > { %11077 = vmatprep.subr.mxu0 %v11981_v32  ;;  %v11767_v38 = vpack.c.bf16 %v8837_v4, %v8836_v37 }
 0xcec   : > { %v7745_v44 = vpop.f32.mrb[80].mxu1 }
 0xced   : > { %v11026_v46 = vpop.f32.mrb[81].mxu1  ;;  %11065 = vmatmul.mubr.msk.f32.vlgmr.msra.gmra.mrb[88].mxu1 %vm2705_vm2, %v7745_v44 }
 0xcee   : > { %11073 = vmatpush3.msra.mxu1 %v8190_v42  ;;  %11074 = vmatprep.mubr.msk.f32.mxu1 %vm11980_vm1, %v11981_v32  ;;  %v8839_v42 = vld [vmem:[%s14534_s10 + $0x28] sm:$0xff]  ;;  %v8840_v46 = vld [vmem:[%s14534_s10 + $0x30] sm:$0xff] }
 0xcef   : > { %11082 = vmatprep.subr.mxu1 %v11981_v32  ;;  %v11770_v44 = vpack.c.bf16 %v8839_v42, %v8838_v41 }
 0xcf0   : > { %v7818_v48 = vpop.f32.mrb[86].mxu0 }
 0xcf1   : > { %v11031_v49 = vpop.f32.mrb[87].mxu0  ;;  %11070 = vmatmul.mubr.msk.f32.vlgmr.msra.gmra.mrb[94].mxu0 %vm2705_vm2, %v7818_v48 }
 0xcf2   : > { %11078 = vmatpush3.msra.mxu0 %v8191_v47  ;;  %11079 = vmatprep.mubr.msk.f32.mxu0 %vm11980_vm1, %v11981_v32  ;;  %v8841_v47 = vld [vmem:[%s14534_s10 + $0x38] sm:$0xff]  ;;  %v8923_v49 = vld [vmem:[%s14536_s12] sm:$0xff] }
 0xcf3   : > { %11087 = vmatprep.subr.mxu0 %v11981_v32  ;;  %v11773_v48 = vpack.c.bf16 %v8841_v47, %v8840_v46  ;;  %v9306_v47 = vld [vmem:[%s14579_s26] ss:$0 sm:$0xff] }
 0xcf4   : > { %v7964_v51 = vpop.f32.mrb[88].mxu0 }
 0xcf5   : > { %v11041_v52 = vpop.f32.mrb[89].mxu0  ;;  %11080 = vmatmul.mubr.msk.f32.vlgmr.msra.gmra.mrb[96].mxu0 %vm2705_vm2, %v7964_v51  ;;  %v8925_v51 = vld [vmem:[%s14536_s12 + $0x10] sm:$0xff] }
 0xcf6   : > { %11088 = vmatpush3.msra.mxu0 %v8193_v50  ;;  %11089 = vmatprep.mubr.msk.f32.mxu0 %vm11980_vm1, %v11981_v32  ;;  %v8924_v50 = vld [vmem:[%s14536_s12 + $0x8] sm:$0xff] }
 0xcf7   : > { %11763 = vmatprep.subr.bf16.mxu0 %v11979_v12  ;;  %v11776_v52 = vpack.c.bf16 %v8924_v50, %v8923_v49 }
 0xcfc   : > { %v7891_v55 = vpop.f32.mrb[82].mxu1 }
 0xcfd   : > { %v8110_v56 = vpop.f32.mrb[90].mxu0  ;;  %v11036_v57 = vpop.f32.mrb[83].mxu1  ;;  %11075 = vmatmul.mubr.msk.f32.vlgmr.msra.gmra.mrb[90].mxu1 %vm2705_vm2, %v7891_v55 }
 0xcfe   : > { %v11051_v58 = vpop.f32.mrb[91].mxu0  ;;  %11090 = vmatmul.mubr.msk.f32.vlgmr.msra.gmra.mrb[98].mxu0 %vm2705_vm2, %v8110_v56  ;;  %11083 = vmatpush3.msra.mxu1 %v8192_v54  ;;  %v8926_v54 = vld [vmem:[%s14536_s12 + $0x18] sm:$0xff]  ;;  %v8927_v56 = vld [vmem:[%s14536_s12 + $0x20] sm:$0xff]  ;;  %v8928_v57 = vld [vmem:[%s14536_s12 + $0x28] sm:$0xff] }
 0xcff   : > { %11084 = vmatprep.mubr.msk.f32.mxu1 %vm11980_vm1, %v11981_v32  ;;  %11092 = vmatprep.subr.mxu1 %v11981_v32  ;;  %v11779_v55 = vpack.c.bf16 %v8926_v54, %v8925_v51  ;;  %v11782_v58 = vpack.c.bf16 %v8928_v57, %v8927_v56 }
 0xd00   : > { %11113 = vmatprep.mubr.msk.f32.mxu0 %vm11980_vm1, %v11981_v32 }
 0xd0c   : > { %v8037_v60 = vpop.f32.mrb[84].mxu1 }
 0xd0d   : > { %v11046_v20 = vpop.f32.mrb[85].mxu1  ;;  %11085 = vmatmul.mubr.msk.f32.vlgmr.msra.gmra.mrb[92].mxu1 %vm2705_vm2, %v8037_v60  ;;  %v8930_v60 = vld [vmem:[%s14536_s12 + $0x38] sm:$0xff] }
 0xd0e   : > { %11093 = vmatpush3.msra.mxu1 %v8194_v59  ;;  %11094 = vmatprep.mubr.msk.f32.mxu1 %vm11980_vm1, %v11981_v32  ;;  %v8929_v59 = vld [vmem:[%s14536_s12 + $0x30] sm:$0xff] }
 0xd0f   : > { %11775 = vmatprep.subr.bf16.mxu1 %v11979_v12  ;;  %v11785_v20 = vpack.c.bf16 %v8930_v60, %v8929_v59 }
 0xd1c   : > { %v8183_v61 = vpop.f32.mrb[86].mxu1 }
 0xd1d   : > { %v11056_v62 = vpop.f32.mrb[87].mxu1  ;;  %11095 = vmatmul.mubr.msk.f32.vlgmr.msra.gmra.mrb[94].mxu1 %vm2705_vm2, %v8183_v61  ;;  %v8931_v61 = vld [vmem:[%s14536_s12 + $0x40] sm:$0xff] }
 0xd1e   : > { %11148 = vmatprep.mubr.msk.f32.mxu1 %vm11980_vm1, %v11981_v32  ;;  %11777 = vmatpush3.bf16.msra.mxu1 %v11776_v52  ;;  %v8932_v62 = vld [vmem:[%s14536_s12 + $0x48] sm:$0xff] }
 0xd1f   : > { %11778 = vmatprep.subr.bf16.mxu1 %v11979_v12 }
 0xd22   : > { %11780 = vmatpush3.bf16.msra.mxu1 %v11779_v55 }
 0xd23   : > { %11781 = vmatprep.subr.bf16.mxu1 %v11979_v12 }
 0xd26   : > { %11783 = vmatpush3.bf16.msra.mxu1 %v11782_v58 }
 0xd27   : > { %11784 = vmatprep.subr.bf16.mxu1 %v11979_v12 }
 0xd2a   : > { %11786 = vmatpush3.bf16.msra.mxu1 %v11785_v20 }
 0xd2b   : > { %11787 = vmatprep.subr.bf16.mxu1 %v11979_v12 }
 0xda0   : > { %v8264_v63 = vpop.f32.mrb[92].mxu0 }
 0xda1   : > { %v11061_v0 = vpop.f32.mrb[93].mxu0  ;;  %v8779_v1 = vsel %vm631_vm0, %v8264_v63, 0.0  ;;  %v11788_v63 = vpack.c.bf16 %v8932_v62, %v8931_v61 }
 0xda2   : > { %v8933_v0 = vld [vmem:[%s14536_s12 + $0x50] sm:$0xff] }
 0xda3   : > { %11789 = vmatpush3.bf16.msra.mxu1 %v11788_v63 }
 0xda4   : > { %11790 = vmatprep.subr.bf16.mxu1 %v11979_v12 }
 0xdc0   : > { %v8337_v21 = vpop.f32.mrb[88].mxu1 }
 0xdc1   : > { %v8780_v2 = vsel %vm631_vm0, %v8337_v21, 0.0  ;;  %v11066_v5 = vpop.f32.mrb[89].mxu1  ;;  %v8934_v21 = vld [vmem:[%s14536_s12 + $0x58] sm:$0xff] }
 0xdc2   : > { %v8781_v6 = vadd.f32 %v8780_v2, %v8779_v1  ;;  %v11791_v1 = vpack.c.bf16 %v8934_v21, %v8933_v0  ;;  %v8935_v2 = vld [vmem:[%s14536_s12 + $0x60] sm:$0xff]  ;;  %v8936_v5 = vld [vmem:[%s14536_s12 + $0x68] sm:$0xff] }
 0xdc4   : > { %v8410_v23 = vpop.f32.mrb[94].mxu0  ;;  %11792 = vmatpush3.bf16.msra.mxu1 %v11791_v1 }
 0xdc5   : > { %v8782_v7 = vsel %vm631_vm0, %v8410_v23, 0.0  ;;  %v11071_v24 = vpop.f32.mrb[95].mxu0  ;;  %11793 = vmatprep.subr.bf16.mxu1 %v11979_v12 }
 0xdc6   : > { %v8783_v8 = vadd.f32 %v8782_v7, %v8781_v6  ;;  %v11794_v6 = vpack.c.bf16 %v8936_v5, %v8935_v2 }
 0xdc8   : > { %v8556_v25 = vpop.f32.mrb[96].mxu0  ;;  %11795 = vmatpush3.bf16.msra.mxu1 %v11794_v6 }
 0xdc9   : > { %v11081_v9 = vpop.f32.mrb[97].mxu0  ;;  %v8786_v28 = vsel %vm631_vm0, %v8556_v25, 0.0  ;;  %11796 = vmatprep.subr.bf16.mxu1 %v11979_v12 }
 0xdd0   : > { %v8483_v10 = vpop.f32.mrb[90].mxu1 }
 0xdd1   : > { %v8784_v11 = vsel %vm631_vm0, %v8483_v10, 0.0  ;;  %v8702_v32 = vpop.f32.mrb[98].mxu0  ;;  %v11076_v13 = vpop.f32.mrb[91].mxu1 }
 0xdd2   : > { %v8785_v14 = vadd.f32 %v8784_v11, %v8783_v8  ;;  %v11091_v15 = vpop.f32.mrb[99].mxu0  ;;  %v8790_v19 = vsel %vm631_vm0, %v8702_v32, 0.0  ;;  %v9300_v13 = vld [vmem:[%s14540_s16] ss:$0 sm:$0xff] }
 0xdd4   : > { %v8787_v39 = vadd.f32 %v8786_v28, %v8785_v14 }
 0xde0   : > { %v8629_v17 = vpop.f32.mrb[92].mxu1 }
 0xde1   : > { %v8788_v18 = vsel %vm631_vm0, %v8629_v17, 0.0  ;;  %v11086_v3 = vpop.f32.mrb[93].mxu1  ;;  %v8938_v17 = vld [vmem:[%s14536_s12 + $0x78] sm:$0xff] }
 0xde2   : > { %v8789_v36 = vadd.f32 %v8788_v18, %v8787_v39  ;;  %v8937_v39 = vld [vmem:[%s14536_s12 + $0x70] sm:$0xff]  ;;  %v9302_v3 = vld [vmem:[%s14535_s11] ss:$0 sm:$0xff] }
 0xde3   : > { %v11797_v18 = vpack.c.bf16 %v8938_v17, %v8937_v39 }
 0xde4   : > { %v8791_v27 = vadd.f32 %v8790_v19, %v8789_v36 }
 0xde5   : > { %11798 = vmatpush3.bf16.msra.mxu1 %v11797_v18 }
 0xdf0   : > { %v8775_v53 = vpop.f32.mrb[94].mxu1 }
 0xdf1   : > { %v8792_v22 = vsel %vm631_vm0, %v8775_v53, 0.0  ;;  %v11096_v40 = vpop.f32.mrb[95].mxu1 }
 0xdf2   : > { %v8793_v26 = vadd.f32 %v8792_v22, %v8791_v27  ;;  %v9304_v40 = vld [vmem:[%s14537_s13] ss:$0 sm:$0xff] }
 0xdf4   : > { %v8794_v29 = vadd.f32 %v8793_v26, %v13312_v16  ;;  %v8835_v16 = vld [vmem:[%s14534_s10 + $0x8] sm:$0xff] }
 0xdf5   : > { %v11764_v45 = vpack.c.bf16 %v8835_v16, %v8834_v35 }
 0xdf6   : > { %v14364_v30 = vadd.f32 %v9299_v43, %v8794_v29 }
 0xdf7   : > { %11765 = vmatpush3.bf16.msra.mxu0 %v11764_v45 }
 0xdf8   : > { %v8805_v31 = vsel %vm631_vm0, %v14364_v30, 0.0  ;;  %v8809_v33 = vmul.f32 %v14364_v30, %v14364_v30  ;;  %11766 = vmatprep.subr.bf16.mxu0 %v11979_v12 }
 0xdf9   : > { %8806 = vadd.xlane.f32.xlu0 %v8805_v31 }
 0xdfa   : > { %v8810_v34 = vsel %vm631_vm0, %v8809_v33, 0.0 }
 0xdfb   : > { %8811 = vadd.xlane.f32.xlu1 %v8810_v34  ;;  %11768 = vmatpush3.bf16.msra.mxu0 %v11767_v38 }
 0xdfc   : > { %11769 = vmatprep.subr.bf16.mxu0 %v11979_v12 }
 0xdff   : > { %11771 = vmatpush3.bf16.msra.mxu0 %v11770_v44  ;;  %v9305_v44 = vld [vmem:[%s14542_s18] ss:$0 sm:$0xff] }
 0xe00   : > { %11772 = vmatprep.subr.bf16.mxu0 %v11979_v12  ;;  %v9301_v12 = vld [vmem:[%s14541_s17] ss:$0 sm:$0xff] }
 0xe03   : > { %11774 = vmatpush3.bf16.msra.mxu0 %v11773_v48 }
 0xe86   : > { %v8807_v23 = vpop.xlane.xlu0 %8806 }
 0xe87   : > { %v8808_v7 = vmul.f32 0.015625, %v8807_v23 }
 0xe88   : > { %v8812_v24 = vpop.xlane.xlu1 %8811 }
 0xe89   : > { %v8814_v8 = vmul.f32 %v8808_v7, %v8808_v7  ;;  %v8813_v25 = vmul.f32 0.015625, %v8812_v24  ;;  %v8816_v11 = vsub.f32 %v14364_v30, %v8808_v7 }
 0xe8b   : > { %v8815_v9 = vsub.f32 %v8813_v25, %v8814_v8 }
 0xe8d   : > { %v8817_v10 = vadd.f32 1e-05, %v8815_v9 }
 0xe8f   : > { %11911 = vrsqrt.f32 %v8817_v10 }
 0xe99   : > { %v11912_v32 = vpop.eup %11911 }
 0xe9a   : > { %v8819_v14 = vmul.f32 %v11912_v32, %v8816_v11 }
 0xe9c   : > { %v8826_v15 = vmul.f32 %v9300_v13, %v8819_v14 }
 0xe9e   : > { %v8833_v28 = vadd.f32 %v9301_v12, %v8826_v15 }
 0xea0   : > { %11114 = vmatmul.mubr.msk.f32.vlgmr.msra.gmra.mrb[100].mxu0 %vm631_vm0, %v8833_v28 }
 0xf73   : > { %v8918_v36 = vpop.f32.mrb[100].mxu0 }
 0xf74   : > { %v8919_v19 = vadd.f32 %v9302_v3, %v8918_v36  ;;  %v11115_v27 = vpop.f32.mrb[101].mxu0 }
 0xf76   : > { %v8922_v53 = vmax.f32 %v8919_v19, 0.0 }
 0xf78   : > { %11149 = vmatmul.mubr.f32.vlgmr.msra.gmra.mrb[96].mxu1 %v8922_v53 }
0x104b   : > { %v9005_v22 = vpop.f32.mrb[96].mxu1 }
0x104c   : > { %v9009_v26 = vadd.f32 %v9005_v22, %v14364_v30  ;;  %v11150_v43 = vpop.f32.mrb[97].mxu1 }
0x104e   : > { %v9017_v29 = vadd.f32 %v9304_v40, %v9009_v26 }
0x1050   : > { %v9020_v31 = vsel %vm631_vm0, %v9017_v29, 0.0  ;;  %v9024_v33 = vmul.f32 %v9017_v29, %v9017_v29 }
0x1051   : > { %9021 = vadd.xlane.f32.xlu0 %v9020_v31 }
0x1052   : > { %v9025_v34 = vsel %vm631_vm0, %v9024_v33, 0.0 }
0x1053   : > { %9026 = vadd.xlane.f32.xlu1 %v9025_v34 }
0x10de   : > { %v9022_v35 = vpop.xlane.xlu0 %9021 }
0x10df   : > { %v9023_v16 = vmul.f32 0.015625, %v9022_v35 }
0x10e0   : > { %v9027_v45 = vpop.xlane.xlu1 %9026 }
0x10e1   : > { %v9029_v37 = vmul.f32 %v9023_v16, %v9023_v16  ;;  %v9028_v4 = vmul.f32 0.015625, %v9027_v45  ;;  %v9031_v30 = vsub.f32 %v9017_v29, %v9023_v16 }
0x10e3   : > { %v9030_v38 = vsub.f32 %v9028_v4, %v9029_v37 }
0x10e5   : > { %v9032_v41 = vadd.f32 1e-05, %v9030_v38 }
0x10e7   : > { %11913 = vrsqrt.f32 %v9032_v41 }
0x10f1   : > { %v11914_v42 = vpop.eup %11913 }
0x10f2   : > { %v9034_v46 = vmul.f32 %v11914_v42, %v9031_v30 }
0x10f4   : > { %v9041_v48 = vmul.f32 %v9305_v44, %v9034_v46 }
0x10f6   : > { %v9048_v49 = vadd.f32 %v9306_v47, %v9041_v48 }
0x10f8   : > { %9049 = vst.msk [vmem:[%s620_s30] sm:$0xff] %vm631_vm0, %v9048_v49 }
0x10f9   : > { %11928 = shalt.err (!%p11925_p3)
}
0x10fa   : > { %s11929_s0 = scalar_lea.hbm %s14481_s5, 128  ;;  %s11933_s26 = scalar_lea.hbm %s14580_s3, 256 }
0x10fb   : > { %p11930_p4 = scmp.ne.s32.totalorder %s14481_s5, %s11929_s0  ;;  %p11934_p9 = scmp.lt.u32.totalorder %s14481_s5, %s14580_s3 }
0x10fc   : > { %p11935_p10 = scmp.lt.u32.totalorder %s11933_s26, %s11929_s0  ;;  %p11937_p12 = scmp.lt.u32.totalorder %s11929_s0, %s14481_s5 }
0x10fd   : > { %p11931_p7 = pnand %p11930_p4, %p12126_p5 }
0x10fe   : > { %p11936_p11 = por %p11935_p10, %p11934_p9 }
0x10ff   : > { %p11932_p8 = pneg %p11931_p7 }
0x1100   : > { %p11938_p13 = por %p11937_p12, %p11936_p11 }
0x1102   : > { %p11939_p0 = pnand %p11938_p13, %p11932_p8 }
0x1104   : > { %11942 = shalt.err (!%p11939_p0)
}
0x1105   : > { %11799 = dma.vmem_to_hbm [thread:$0]  (%p12126_p5), %s14483_s23, 128, %s14481_s5, %s9051_s1  }
0x1106 PF: > { %s14581_s28 = sld [smem:[#allocation7_spill]]  ;;  %s14582_s19 = sld [smem:[#allocation5_spill]] }
0x110c   : > { %p11805_p1 = scmp.ge.s32.totalorder %s14581_s28, 2  ;;  %s9076_s20 = sand.u32 1, %s14582_s19  }
0x110d   : > { %s9077_s29 = scalar_lea.sflag [#allocation3], %s9076_s20 }
0x110e   : > { %p11802_p2 = pnand %p11805_p1, %p12130_p6 }
0x1110   : > { %11960 = dma.done.wait (!%p11802_p2), %s9077_s29, 128  }
0x1111   : > { %11962 = vsyncadd (!%p11802_p2), %s9077_s29, 4294967168  ;;  %s14584_s24 = sld [smem:[#allocation8_spill]]  ;;  %s14585_s0 = sld [smem:[#allocation6_spill]] }
0x1112   : > { %s14586_s23 = sld [smem:[#allocation9_spill]]  ;;  %s14587_s1 = smov %s11969_s22 }
0x1117   : > { %p30_p3 = scmp.ge.s32.totalorder %s14584_s24, 4   ;;  %s14588_s22 = smov %s14585_s0 }
0x1119   :  { %32 = sbr.rel (!%p30_p3) target bundleno = 12 (0xc), region = 135 }
0x1120   :  { %9082 = vsyncpa [#allocation3], 1 }
0x1121   :  { %9084 = vsyncpa [#allocation3 + $0x1], 1 }

</bundles_post_ra>
